<compile_context>
chip_gen: v7x
topology: tpu7x:2x2x1
jax: 0.10.0
libtpu: 0.0.40
codegen_flags: <defaults>
</compile_context>

<pallas_src>
import jax
import jax.numpy as jnp
from jax import lax
from jax.experimental import pallas as pl
from jax.experimental.pallas import tpu as pltpu

N_STEPS = 20          # Euler steps over t in [0, 1]
H_STEP = 0.05         # step size
BN_EPS = 1e-5
LEAKY_SLOPE = 0.01    # nn.LeakyReLU() default


def moons_classifier_kernel(
    x_ref,                     # (N, 2)
    w1a_ref,                   # (2, 32)  z-part of Linear(3,32) weight
    g1_ref, be1_ref,           # (1, 32), (1, 32)
    w2_ref,                    # (32, 32)
    g2_ref, be2_ref,           # (1, 32), (1, 32)
    w3h_ref, b3h_ref,          # (32, 2), (1, 2)  pre-scaled by H_STEP
    out_ref,                   # (N, 2)
):
    # Load weights once; they stay in vregs across the unrolled loop.
    w1_r0 = w1a_ref[0:1, :]
    w1_r1 = w1a_ref[1:2, :]
    g1, be1 = g1_ref[...], be1_ref[...]
    w2 = w2_ref[...]
    g2, be2 = g2_ref[...], be2_ref[...]
    w3h = w3h_ref[...]
    b3h = b3h_ref[...]

    def bn_lrelu(h, gamma, beta):
        # Training-mode BatchNorm with two INDEPENDENT sublane reductions
        # (mean and second moment issue concurrently on the XLU), affine
        # folded into a single scale/shift, then LeakyReLU as max(y, a*y).
        mu = jnp.mean(h, axis=0, keepdims=True)
        m2 = jnp.mean(h * h, axis=0, keepdims=True)
        var = m2 - mu * mu
        scale = gamma * lax.rsqrt(var + BN_EPS)
        shift = beta - mu * scale
        y = h * scale + shift
        return jnp.maximum(y, LEAKY_SLOPE * y)

    def ode_f(z):
        # First Linear: K=2 contraction as two VPU broadcast mul-adds.
        # t*W1[2], b1 (and b2 below) are batch-constant -> exactly cancelled
        # by the BatchNorm mean subtraction, so they are omitted.
        h1 = z[:, 0:1] * w1_r0 + z[:, 1:2] * w1_r1
        h1 = bn_lrelu(h1, g1, be1)
        h2 = jnp.dot(h1, w2, preferred_element_type=jnp.float32)
        h2 = bn_lrelu(h2, g2, be2)
        # Output Linear already scaled by the Euler step size.
        return jnp.dot(h2, w3h, preferred_element_type=jnp.float32) + b3h

    def euler_step(_, z):
        return z + ode_f(z)

    # Fully unrolled fixed-step Euler (autonomous f after BN cancellation).
    z_final = lax.fori_loop(0, N_STEPS, euler_step, x_ref[...], unroll=True)

    # Softmax(dim=-1) head.
    m = jnp.max(z_final, axis=-1, keepdims=True)
    e = jnp.exp(z_final - m)
    out_ref[...] = e / jnp.sum(e, axis=-1, keepdims=True)


def make_params(key):
    """Deterministic parameter init matching the PyTorch module's shapes."""
    ks = jax.random.split(key, 3)

    def lin(k, fan_in, fan_out):
        # Uniform(-1/sqrt(fan_in), 1/sqrt(fan_in)), like torch.nn.Linear.
        bound = 1.0 / jnp.sqrt(jnp.float32(fan_in))
        kw, kb = jax.random.split(k)
        w = jax.random.uniform(kw, (fan_in, fan_out), jnp.float32, -bound, bound)
        b = jax.random.uniform(kb, (1, fan_out), jnp.float32, -bound, bound)
        return w, b

    w1, b1 = lin(ks[0], 3, 32)
    w2, b2 = lin(ks[1], 32, 32)
    w3, b3 = lin(ks[2], 32, 2)
    # BatchNorm1d default init: gamma=1, beta=0.
    g1 = jnp.ones((1, 32), jnp.float32)
    be1 = jnp.zeros((1, 32), jnp.float32)
    g2 = jnp.ones((1, 32), jnp.float32)
    be2 = jnp.zeros((1, 32), jnp.float32)
    return dict(w1=w1, b1=b1, g1=g1, be1=be1,
                w2=w2, b2=b2, g2=g2, be2=be2,
                w3=w3, b3=b3)


def moons_classifier(x, p):
    # Fold/pre-scale once at trace time:
    #   - keep only the z-rows of W1 (t-row and biases cancel in training BN),
    #   - absorb the Euler step size into the output layer.
    w1a = p["w1"][:2, :]
    w3h = H_STEP * p["w3"]
    b3h = H_STEP * p["b3"]
    args = (x, w1a, p["g1"], p["be1"], p["w2"], p["g2"], p["be2"], w3h, b3h)
    vmem = pl.BlockSpec(memory_space=pltpu.MemorySpace.VMEM)
    return pl.pallas_call(
        moons_classifier_kernel,
        out_shape=jax.ShapeDtypeStruct((x.shape[0], 2), jnp.float32),
        in_specs=[vmem] * len(args),
        out_specs=vmem,
    )(*args)


def moons_classifier_ref(x, p):
    """Pure-JAX reference with the ORIGINAL (un-optimized) semantics:
    concat([z, t]) @ W1 + b1, training-mode BatchNorm, LeakyReLU(0.01),
    explicit-t Euler, Softmax head."""
    def bn(h, gamma, beta):
        mu = jnp.mean(h, axis=0, keepdims=True)
        var = jnp.mean((h - mu) ** 2, axis=0, keepdims=True)
        return gamma * (h - mu) * lax.rsqrt(var + BN_EPS) + beta

    def lrelu(h):
        return jnp.where(h >= 0.0, h, LEAKY_SLOPE * h)

    def f(t, z):
        zt = jnp.concatenate(
            [z, jnp.full((z.shape[0], 1), t, jnp.float32)], axis=-1)
        h1 = lrelu(bn(zt @ p["w1"] + p["b1"], p["g1"], p["be1"]))
        h2 = lrelu(bn(h1 @ p["w2"] + p["b2"], p["g2"], p["be2"]))
        return h2 @ p["w3"] + p["b3"]

    z = x
    for i in range(N_STEPS):
        z = z + H_STEP * f(i * H_STEP, z)
    m = jnp.max(z, axis=-1, keepdims=True)
    e = jnp.exp(z - m)
    return e / jnp.sum(e, axis=-1, keepdims=True)


if __name__ == "__main__":
    key = jax.random.PRNGKey(0)
    k_x, k_p = jax.random.split(key)

    # Moons-style input: (batch, 2) points.
    batch = 8
    x = jax.random.normal(k_x, (batch, 2), jnp.float32)

    params = make_params(k_p)

    probs = moons_classifier(x, params)
    probs = jax.block_until_ready(probs)

    assert probs.shape == (batch, 2)
    # Softmax rows must sum to 1.
    assert bool(jnp.allclose(jnp.sum(probs, axis=-1), 1.0, atol=1e-5))

    # Exact-formulation reference check (optimizations are algebraically exact;
    # only FP-rounding-level differences expected).
    ref = moons_classifier_ref(x, params)
    assert bool(jnp.allclose(probs, ref, atol=2e-4, rtol=2e-4))

    print("KERNEL_OK")
</pallas_src>

<mosaic_0001>
module attributes {stable_mosaic.version = 11 : i64} {
  func.func @moons_classifier_kernel(%arg0: memref<8x2xf32, #tpu.memory_space<vmem>>, %arg1: memref<2x32xf32, #tpu.memory_space<vmem>>, %arg2: memref<1x32xf32, #tpu.memory_space<vmem>>, %arg3: memref<1x32xf32, #tpu.memory_space<vmem>>, %arg4: memref<32x32xf32, #tpu.memory_space<vmem>>, %arg5: memref<1x32xf32, #tpu.memory_space<vmem>>, %arg6: memref<1x32xf32, #tpu.memory_space<vmem>>, %arg7: memref<32x2xf32, #tpu.memory_space<vmem>>, %arg8: memref<1x2xf32, #tpu.memory_space<vmem>>, %arg9: memref<8x2xf32, #tpu.memory_space<vmem>>) attributes {dimension_semantics = [], scalar_prefetch = 0 : i64, scratch_operands = 0 : i64, tpu.core_type = #tpu.core_type<tc>} {
    %c0 = arith.constant 0 : index
    %c0_0 = arith.constant 0 : index
    %0 = vector.load %arg1[%c0, %c0_0] : memref<2x32xf32, #tpu.memory_space<vmem>>, vector<1x32xf32>
    %c1 = arith.constant 1 : index
    %c0_1 = arith.constant 0 : index
    %1 = vector.load %arg1[%c1, %c0_1] : memref<2x32xf32, #tpu.memory_space<vmem>>, vector<1x32xf32>
    %c0_2 = arith.constant 0 : index
    %c0_3 = arith.constant 0 : index
    %2 = vector.load %arg2[%c0_2, %c0_3] : memref<1x32xf32, #tpu.memory_space<vmem>>, vector<1x32xf32>
    %c0_4 = arith.constant 0 : index
    %c0_5 = arith.constant 0 : index
    %3 = vector.load %arg3[%c0_4, %c0_5] : memref<1x32xf32, #tpu.memory_space<vmem>>, vector<1x32xf32>
    %c0_6 = arith.constant 0 : index
    %c0_7 = arith.constant 0 : index
    %4 = vector.load %arg4[%c0_6, %c0_7] : memref<32x32xf32, #tpu.memory_space<vmem>>, vector<32x32xf32>
    %c0_8 = arith.constant 0 : index
    %c0_9 = arith.constant 0 : index
    %5 = vector.load %arg5[%c0_8, %c0_9] : memref<1x32xf32, #tpu.memory_space<vmem>>, vector<1x32xf32>
    %c0_10 = arith.constant 0 : index
    %c0_11 = arith.constant 0 : index
    %6 = vector.load %arg6[%c0_10, %c0_11] : memref<1x32xf32, #tpu.memory_space<vmem>>, vector<1x32xf32>
    %c0_12 = arith.constant 0 : index
    %c0_13 = arith.constant 0 : index
    %7 = vector.load %arg7[%c0_12, %c0_13] : memref<32x2xf32, #tpu.memory_space<vmem>>, vector<32x2xf32>
    %c0_14 = arith.constant 0 : index
    %c0_15 = arith.constant 0 : index
    %8 = vector.load %arg8[%c0_14, %c0_15] : memref<1x2xf32, #tpu.memory_space<vmem>>, vector<1x2xf32>
    %c0_16 = arith.constant 0 : index
    %c0_17 = arith.constant 0 : index
    %9 = vector.load %arg0[%c0_16, %c0_17] : memref<8x2xf32, #tpu.memory_space<vmem>>, vector<8x2xf32>
    %c0_i32 = arith.constant 0 : i32
    %10 = vector.extract_strided_slice %9 {offsets = [0, 0], sizes = [8, 1], strides = [1, 1]} : vector<8x2xf32> to vector<8x1xf32>
    %11 = vector.broadcast %10 : vector<8x1xf32> to vector<8x32xf32>
    %12 = vector.broadcast %0 : vector<1x32xf32> to vector<8x32xf32>
    %13 = arith.mulf %11, %12 : vector<8x32xf32>
    %14 = vector.extract_strided_slice %9 {offsets = [0, 1], sizes = [8, 1], strides = [1, 1]} : vector<8x2xf32> to vector<8x1xf32>
    %15 = vector.broadcast %14 : vector<8x1xf32> to vector<8x32xf32>
    %16 = vector.broadcast %1 : vector<1x32xf32> to vector<8x32xf32>
    %17 = arith.mulf %15, %16 : vector<8x32xf32>
    %18 = arith.addf %13, %17 : vector<8x32xf32>
    %cst = arith.constant dense<0.000000e+00> : vector<32xf32>
    %19 = vector.multi_reduction <add>, %18, %cst [0] : vector<8x32xf32> to vector<32xf32>
    %20 = vector.shape_cast %19 : vector<32xf32> to vector<1x32xf32>
    %cst_18 = arith.constant 8.000000e+00 : f32
    %21 = vector.broadcast %cst_18 : f32 to vector<1x32xf32>
    %22 = arith.divf %20, %21 : vector<1x32xf32>
    %23 = arith.mulf %18, %18 : vector<8x32xf32>
    %cst_19 = arith.constant dense<0.000000e+00> : vector<32xf32>
    %24 = vector.multi_reduction <add>, %23, %cst_19 [0] : vector<8x32xf32> to vector<32xf32>
    %25 = vector.shape_cast %24 : vector<32xf32> to vector<1x32xf32>
    %cst_20 = arith.constant 8.000000e+00 : f32
    %26 = vector.broadcast %cst_20 : f32 to vector<1x32xf32>
    %27 = arith.divf %25, %26 : vector<1x32xf32>
    %28 = arith.mulf %22, %22 : vector<1x32xf32>
    %29 = arith.subf %27, %28 : vector<1x32xf32>
    %cst_21 = arith.constant 9.99999974E-6 : f32
    %30 = vector.broadcast %cst_21 : f32 to vector<1x32xf32>
    %31 = arith.addf %29, %30 : vector<1x32xf32>
    %32 = math.rsqrt %31 : vector<1x32xf32>
    %33 = arith.mulf %2, %32 : vector<1x32xf32>
    %34 = arith.mulf %22, %33 : vector<1x32xf32>
    %35 = arith.subf %3, %34 : vector<1x32xf32>
    %36 = vector.broadcast %33 : vector<1x32xf32> to vector<8x32xf32>
    %37 = arith.mulf %18, %36 : vector<8x32xf32>
    %38 = vector.broadcast %35 : vector<1x32xf32> to vector<8x32xf32>
    %39 = arith.addf %37, %38 : vector<8x32xf32>
    %cst_22 = arith.constant 0.00999999977 : f32
    %40 = vector.broadcast %cst_22 : f32 to vector<8x32xf32>
    %41 = arith.mulf %40, %39 : vector<8x32xf32>
    %42 = arith.maximumf %39, %41 : vector<8x32xf32>
    %cst_23 = arith.constant dense<0.000000e+00> : vector<8x32xf32>
    %43 = tpu.matmul %42, %4, %cst_23 {dimension_numbers = #tpu.dot_dimension_numbers<[1], [0], [0], [1], [0, 0, 1, 1], [], []>} : vector<8x32xf32>, vector<32x32xf32>, vector<8x32xf32> -> vector<8x32xf32>
    %cst_24 = arith.constant dense<0.000000e+00> : vector<32xf32>
    %44 = vector.multi_reduction <add>, %43, %cst_24 [0] : vector<8x32xf32> to vector<32xf32>
    %45 = vector.shape_cast %44 : vector<32xf32> to vector<1x32xf32>
    %cst_25 = arith.constant 8.000000e+00 : f32
    %46 = vector.broadcast %cst_25 : f32 to vector<1x32xf32>
    %47 = arith.divf %45, %46 : vector<1x32xf32>
    %48 = arith.mulf %43, %43 : vector<8x32xf32>
    %cst_26 = arith.constant dense<0.000000e+00> : vector<32xf32>
    %49 = vector.multi_reduction <add>, %48, %cst_26 [0] : vector<8x32xf32> to vector<32xf32>
    %50 = vector.shape_cast %49 : vector<32xf32> to vector<1x32xf32>
    %cst_27 = arith.constant 8.000000e+00 : f32
    %51 = vector.broadcast %cst_27 : f32 to vector<1x32xf32>
    %52 = arith.divf %50, %51 : vector<1x32xf32>
    %53 = arith.mulf %47, %47 : vector<1x32xf32>
    %54 = arith.subf %52, %53 : vector<1x32xf32>
    %cst_28 = arith.constant 9.99999974E-6 : f32
    %55 = vector.broadcast %cst_28 : f32 to vector<1x32xf32>
    %56 = arith.addf %54, %55 : vector<1x32xf32>
    %57 = math.rsqrt %56 : vector<1x32xf32>
    %58 = arith.mulf %5, %57 : vector<1x32xf32>
    %59 = arith.mulf %47, %58 : vector<1x32xf32>
    %60 = arith.subf %6, %59 : vector<1x32xf32>
    %61 = vector.broadcast %58 : vector<1x32xf32> to vector<8x32xf32>
    %62 = arith.mulf %43, %61 : vector<8x32xf32>
    %63 = vector.broadcast %60 : vector<1x32xf32> to vector<8x32xf32>
    %64 = arith.addf %62, %63 : vector<8x32xf32>
    %cst_29 = arith.constant 0.00999999977 : f32
    %65 = vector.broadcast %cst_29 : f32 to vector<8x32xf32>
    %66 = arith.mulf %65, %64 : vector<8x32xf32>
    %67 = arith.maximumf %64, %66 : vector<8x32xf32>
    %cst_30 = arith.constant dense<0.000000e+00> : vector<8x2xf32>
    %68 = tpu.matmul %67, %7, %cst_30 {dimension_numbers = #tpu.dot_dimension_numbers<[1], [0], [0], [1], [0, 0, 1, 1], [], []>} : vector<8x32xf32>, vector<32x2xf32>, vector<8x2xf32> -> vector<8x2xf32>
    %69 = vector.broadcast %8 : vector<1x2xf32> to vector<8x2xf32>
    %70 = arith.addf %68, %69 : vector<8x2xf32>
    %71 = arith.addf %9, %70 : vector<8x2xf32>
    %c1_i32 = arith.constant 1 : i32
    %72 = vector.extract_strided_slice %71 {offsets = [0, 0], sizes = [8, 1], strides = [1, 1]} : vector<8x2xf32> to vector<8x1xf32>
    %73 = vector.broadcast %72 : vector<8x1xf32> to vector<8x32xf32>
    %74 = vector.broadcast %0 : vector<1x32xf32> to vector<8x32xf32>
    %75 = arith.mulf %73, %74 : vector<8x32xf32>
    %76 = vector.extract_strided_slice %71 {offsets = [0, 1], sizes = [8, 1], strides = [1, 1]} : vector<8x2xf32> to vector<8x1xf32>
    %77 = vector.broadcast %76 : vector<8x1xf32> to vector<8x32xf32>
    %78 = vector.broadcast %1 : vector<1x32xf32> to vector<8x32xf32>
    %79 = arith.mulf %77, %78 : vector<8x32xf32>
    %80 = arith.addf %75, %79 : vector<8x32xf32>
    %cst_31 = arith.constant dense<0.000000e+00> : vector<32xf32>
    %81 = vector.multi_reduction <add>, %80, %cst_31 [0] : vector<8x32xf32> to vector<32xf32>
    %82 = vector.shape_cast %81 : vector<32xf32> to vector<1x32xf32>
    %cst_32 = arith.constant 8.000000e+00 : f32
    %83 = vector.broadcast %cst_32 : f32 to vector<1x32xf32>
    %84 = arith.divf %82, %83 : vector<1x32xf32>
    %85 = arith.mulf %80, %80 : vector<8x32xf32>
    %cst_33 = arith.constant dense<0.000000e+00> : vector<32xf32>
    %86 = vector.multi_reduction <add>, %85, %cst_33 [0] : vector<8x32xf32> to vector<32xf32>
    %87 = vector.shape_cast %86 : vector<32xf32> to vector<1x32xf32>
    %cst_34 = arith.constant 8.000000e+00 : f32
    %88 = vector.broadcast %cst_34 : f32 to vector<1x32xf32>
    %89 = arith.divf %87, %88 : vector<1x32xf32>
    %90 = arith.mulf %84, %84 : vector<1x32xf32>
    %91 = arith.subf %89, %90 : vector<1x32xf32>
    %cst_35 = arith.constant 9.99999974E-6 : f32
    %92 = vector.broadcast %cst_35 : f32 to vector<1x32xf32>
    %93 = arith.addf %91, %92 : vector<1x32xf32>
    %94 = math.rsqrt %93 : vector<1x32xf32>
    %95 = arith.mulf %2, %94 : vector<1x32xf32>
    %96 = arith.mulf %84, %95 : vector<1x32xf32>
    %97 = arith.subf %3, %96 : vector<1x32xf32>
    %98 = vector.broadcast %95 : vector<1x32xf32> to vector<8x32xf32>
    %99 = arith.mulf %80, %98 : vector<8x32xf32>
    %100 = vector.broadcast %97 : vector<1x32xf32> to vector<8x32xf32>
    %101 = arith.addf %99, %100 : vector<8x32xf32>
    %cst_36 = arith.constant 0.00999999977 : f32
    %102 = vector.broadcast %cst_36 : f32 to vector<8x32xf32>
    %103 = arith.mulf %102, %101 : vector<8x32xf32>
    %104 = arith.maximumf %101, %103 : vector<8x32xf32>
    %cst_37 = arith.constant dense<0.000000e+00> : vector<8x32xf32>
    %105 = tpu.matmul %104, %4, %cst_37 {dimension_numbers = #tpu.dot_dimension_numbers<[1], [0], [0], [1], [0, 0, 1, 1], [], []>} : vector<8x32xf32>, vector<32x32xf32>, vector<8x32xf32> -> vector<8x32xf32>
    %cst_38 = arith.constant dense<0.000000e+00> : vector<32xf32>
    %106 = vector.multi_reduction <add>, %105, %cst_38 [0] : vector<8x32xf32> to vector<32xf32>
    %107 = vector.shape_cast %106 : vector<32xf32> to vector<1x32xf32>
    %cst_39 = arith.constant 8.000000e+00 : f32
    %108 = vector.broadcast %cst_39 : f32 to vector<1x32xf32>
    %109 = arith.divf %107, %108 : vector<1x32xf32>
    %110 = arith.mulf %105, %105 : vector<8x32xf32>
    %cst_40 = arith.constant dense<0.000000e+00> : vector<32xf32>
    %111 = vector.multi_reduction <add>, %110, %cst_40 [0] : vector<8x32xf32> to vector<32xf32>
    %112 = vector.shape_cast %111 : vector<32xf32> to vector<1x32xf32>
    %cst_41 = arith.constant 8.000000e+00 : f32
    %113 = vector.broadcast %cst_41 : f32 to vector<1x32xf32>
    %114 = arith.divf %112, %113 : vector<1x32xf32>
    %115 = arith.mulf %109, %109 : vector<1x32xf32>
    %116 = arith.subf %114, %115 : vector<1x32xf32>
    %cst_42 = arith.constant 9.99999974E-6 : f32
    %117 = vector.broadcast %cst_42 : f32 to vector<1x32xf32>
    %118 = arith.addf %116, %117 : vector<1x32xf32>
    %119 = math.rsqrt %118 : vector<1x32xf32>
    %120 = arith.mulf %5, %119 : vector<1x32xf32>
    %121 = arith.mulf %109, %120 : vector<1x32xf32>
    %122 = arith.subf %6, %121 : vector<1x32xf32>
    %123 = vector.broadcast %120 : vector<1x32xf32> to vector<8x32xf32>
    %124 = arith.mulf %105, %123 : vector<8x32xf32>
    %125 = vector.broadcast %122 : vector<1x32xf32> to vector<8x32xf32>
    %126 = arith.addf %124, %125 : vector<8x32xf32>
    %cst_43 = arith.constant 0.00999999977 : f32
    %127 = vector.broadcast %cst_43 : f32 to vector<8x32xf32>
    %128 = arith.mulf %127, %126 : vector<8x32xf32>
    %129 = arith.maximumf %126, %128 : vector<8x32xf32>
    %cst_44 = arith.constant dense<0.000000e+00> : vector<8x2xf32>
    %130 = tpu.matmul %129, %7, %cst_44 {dimension_numbers = #tpu.dot_dimension_numbers<[1], [0], [0], [1], [0, 0, 1, 1], [], []>} : vector<8x32xf32>, vector<32x2xf32>, vector<8x2xf32> -> vector<8x2xf32>
    %131 = vector.broadcast %8 : vector<1x2xf32> to vector<8x2xf32>
    %132 = arith.addf %130, %131 : vector<8x2xf32>
    %133 = arith.addf %71, %132 : vector<8x2xf32>
    %c2_i32 = arith.constant 2 : i32
    %134 = vector.extract_strided_slice %133 {offsets = [0, 0], sizes = [8, 1], strides = [1, 1]} : vector<8x2xf32> to vector<8x1xf32>
    %135 = vector.broadcast %134 : vector<8x1xf32> to vector<8x32xf32>
    %136 = vector.broadcast %0 : vector<1x32xf32> to vector<8x32xf32>
    %137 = arith.mulf %135, %136 : vector<8x32xf32>
    %138 = vector.extract_strided_slice %133 {offsets = [0, 1], sizes = [8, 1], strides = [1, 1]} : vector<8x2xf32> to vector<8x1xf32>
    %139 = vector.broadcast %138 : vector<8x1xf32> to vector<8x32xf32>
    %140 = vector.broadcast %1 : vector<1x32xf32> to vector<8x32xf32>
    %141 = arith.mulf %139, %140 : vector<8x32xf32>
    %142 = arith.addf %137, %141 : vector<8x32xf32>
    %cst_45 = arith.constant dense<0.000000e+00> : vector<32xf32>
    %143 = vector.multi_reduction <add>, %142, %cst_45 [0] : vector<8x32xf32> to vector<32xf32>
    %144 = vector.shape_cast %143 : vector<32xf32> to vector<1x32xf32>
    %cst_46 = arith.constant 8.000000e+00 : f32
    %145 = vector.broadcast %cst_46 : f32 to vector<1x32xf32>
    %146 = arith.divf %144, %145 : vector<1x32xf32>
    %147 = arith.mulf %142, %142 : vector<8x32xf32>
    %cst_47 = arith.constant dense<0.000000e+00> : vector<32xf32>
    %148 = vector.multi_reduction <add>, %147, %cst_47 [0] : vector<8x32xf32> to vector<32xf32>
    %149 = vector.shape_cast %148 : vector<32xf32> to vector<1x32xf32>
    %cst_48 = arith.constant 8.000000e+00 : f32
    %150 = vector.broadcast %cst_48 : f32 to vector<1x32xf32>
    %151 = arith.divf %149, %150 : vector<1x32xf32>
    %152 = arith.mulf %146, %146 : vector<1x32xf32>
    %153 = arith.subf %151, %152 : vector<1x32xf32>
    %cst_49 = arith.constant 9.99999974E-6 : f32
    %154 = vector.broadcast %cst_49 : f32 to vector<1x32xf32>
    %155 = arith.addf %153, %154 : vector<1x32xf32>
    %156 = math.rsqrt %155 : vector<1x32xf32>
    %157 = arith.mulf %2, %156 : vector<1x32xf32>
    %158 = arith.mulf %146, %157 : vector<1x32xf32>
    %159 = arith.subf %3, %158 : vector<1x32xf32>
    %160 = vector.broadcast %157 : vector<1x32xf32> to vector<8x32xf32>
    %161 = arith.mulf %142, %160 : vector<8x32xf32>
    %162 = vector.broadcast %159 : vector<1x32xf32> to vector<8x32xf32>
    %163 = arith.addf %161, %162 : vector<8x32xf32>
    %cst_50 = arith.constant 0.00999999977 : f32
    %164 = vector.broadcast %cst_50 : f32 to vector<8x32xf32>
    %165 = arith.mulf %164, %163 : vector<8x32xf32>
    %166 = arith.maximumf %163, %165 : vector<8x32xf32>
    %cst_51 = arith.constant dense<0.000000e+00> : vector<8x32xf32>
    %167 = tpu.matmul %166, %4, %cst_51 {dimension_numbers = #tpu.dot_dimension_numbers<[1], [0], [0], [1], [0, 0, 1, 1], [], []>} : vector<8x32xf32>, vector<32x32xf32>, vector<8x32xf32> -> vector<8x32xf32>
    %cst_52 = arith.constant dense<0.000000e+00> : vector<32xf32>
    %168 = vector.multi_reduction <add>, %167, %cst_52 [0] : vector<8x32xf32> to vector<32xf32>
    %169 = vector.shape_cast %168 : vector<32xf32> to vector<1x32xf32>
    %cst_53 = arith.constant 8.000000e+00 : f32
    %170 = vector.broadcast %cst_53 : f32 to vector<1x32xf32>
    %171 = arith.divf %169, %170 : vector<1x32xf32>
    %172 = arith.mulf %167, %167 : vector<8x32xf32>
    %cst_54 = arith.constant dense<0.000000e+00> : vector<32xf32>
    %173 = vector.multi_reduction <add>, %172, %cst_54 [0] : vector<8x32xf32> to vector<32xf32>
    %174 = vector.shape_cast %173 : vector<32xf32> to vector<1x32xf32>
    %cst_55 = arith.constant 8.000000e+00 : f32
    %175 = vector.broadcast %cst_55 : f32 to vector<1x32xf32>
    %176 = arith.divf %174, %175 : vector<1x32xf32>
    %177 = arith.mulf %171, %171 : vector<1x32xf32>
    %178 = arith.subf %176, %177 : vector<1x32xf32>
    %cst_56 = arith.constant 9.99999974E-6 : f32
    %179 = vector.broadcast %cst_56 : f32 to vector<1x32xf32>
    %180 = arith.addf %178, %179 : vector<1x32xf32>
    %181 = math.rsqrt %180 : vector<1x32xf32>
    %182 = arith.mulf %5, %181 : vector<1x32xf32>
    %183 = arith.mulf %171, %182 : vector<1x32xf32>
    %184 = arith.subf %6, %183 : vector<1x32xf32>
    %185 = vector.broadcast %182 : vector<1x32xf32> to vector<8x32xf32>
    %186 = arith.mulf %167, %185 : vector<8x32xf32>
    %187 = vector.broadcast %184 : vector<1x32xf32> to vector<8x32xf32>
    %188 = arith.addf %186, %187 : vector<8x32xf32>
    %cst_57 = arith.constant 0.00999999977 : f32
    %189 = vector.broadcast %cst_57 : f32 to vector<8x32xf32>
    %190 = arith.mulf %189, %188 : vector<8x32xf32>
    %191 = arith.maximumf %188, %190 : vector<8x32xf32>
    %cst_58 = arith.constant dense<0.000000e+00> : vector<8x2xf32>
    %192 = tpu.matmul %191, %7, %cst_58 {dimension_numbers = #tpu.dot_dimension_numbers<[1], [0], [0], [1], [0, 0, 1, 1], [], []>} : vector<8x32xf32>, vector<32x2xf32>, vector<8x2xf32> -> vector<8x2xf32>
    %193 = vector.broadcast %8 : vector<1x2xf32> to vector<8x2xf32>
    %194 = arith.addf %192, %193 : vector<8x2xf32>
    %195 = arith.addf %133, %194 : vector<8x2xf32>
    %c3_i32 = arith.constant 3 : i32
    %196 = vector.extract_strided_slice %195 {offsets = [0, 0], sizes = [8, 1], strides = [1, 1]} : vector<8x2xf32> to vector<8x1xf32>
    %197 = vector.broadcast %196 : vector<8x1xf32> to vector<8x32xf32>
    %198 = vector.broadcast %0 : vector<1x32xf32> to vector<8x32xf32>
    %199 = arith.mulf %197, %198 : vector<8x32xf32>
    %200 = vector.extract_strided_slice %195 {offsets = [0, 1], sizes = [8, 1], strides = [1, 1]} : vector<8x2xf32> to vector<8x1xf32>
    %201 = vector.broadcast %200 : vector<8x1xf32> to vector<8x32xf32>
    %202 = vector.broadcast %1 : vector<1x32xf32> to vector<8x32xf32>
    %203 = arith.mulf %201, %202 : vector<8x32xf32>
    %204 = arith.addf %199, %203 : vector<8x32xf32>
    %cst_59 = arith.constant dense<0.000000e+00> : vector<32xf32>
    %205 = vector.multi_reduction <add>, %204, %cst_59 [0] : vector<8x32xf32> to vector<32xf32>
    %206 = vector.shape_cast %205 : vector<32xf32> to vector<1x32xf32>
    %cst_60 = arith.constant 8.000000e+00 : f32
    %207 = vector.broadcast %cst_60 : f32 to vector<1x32xf32>
    %208 = arith.divf %206, %207 : vector<1x32xf32>
    %209 = arith.mulf %204, %204 : vector<8x32xf32>
    %cst_61 = arith.constant dense<0.000000e+00> : vector<32xf32>
    %210 = vector.multi_reduction <add>, %209, %cst_61 [0] : vector<8x32xf32> to vector<32xf32>
    %211 = vector.shape_cast %210 : vector<32xf32> to vector<1x32xf32>
    %cst_62 = arith.constant 8.000000e+00 : f32
    %212 = vector.broadcast %cst_62 : f32 to vector<1x32xf32>
    %213 = arith.divf %211, %212 : vector<1x32xf32>
    %214 = arith.mulf %208, %208 : vector<1x32xf32>
    %215 = arith.subf %213, %214 : vector<1x32xf32>
    %cst_63 = arith.constant 9.99999974E-6 : f32
    %216 = vector.broadcast %cst_63 : f32 to vector<1x32xf32>
    %217 = arith.addf %215, %216 : vector<1x32xf32>
    %218 = math.rsqrt %217 : vector<1x32xf32>
    %219 = arith.mulf %2, %218 : vector<1x32xf32>
    %220 = arith.mulf %208, %219 : vector<1x32xf32>
    %221 = arith.subf %3, %220 : vector<1x32xf32>
    %222 = vector.broadcast %219 : vector<1x32xf32> to vector<8x32xf32>
    %223 = arith.mulf %204, %222 : vector<8x32xf32>
    %224 = vector.broadcast %221 : vector<1x32xf32> to vector<8x32xf32>
    %225 = arith.addf %223, %224 : vector<8x32xf32>
    %cst_64 = arith.constant 0.00999999977 : f32
    %226 = vector.broadcast %cst_64 : f32 to vector<8x32xf32>
    %227 = arith.mulf %226, %225 : vector<8x32xf32>
    %228 = arith.maximumf %225, %227 : vector<8x32xf32>
    %cst_65 = arith.constant dense<0.000000e+00> : vector<8x32xf32>
    %229 = tpu.matmul %228, %4, %cst_65 {dimension_numbers = #tpu.dot_dimension_numbers<[1], [0], [0], [1], [0, 0, 1, 1], [], []>} : vector<8x32xf32>, vector<32x32xf32>, vector<8x32xf32> -> vector<8x32xf32>
    %cst_66 = arith.constant dense<0.000000e+00> : vector<32xf32>
    %230 = vector.multi_reduction <add>, %229, %cst_66 [0] : vector<8x32xf32> to vector<32xf32>
    %231 = vector.shape_cast %230 : vector<32xf32> to vector<1x32xf32>
    %cst_67 = arith.constant 8.000000e+00 : f32
    %232 = vector.broadcast %cst_67 : f32 to vector<1x32xf32>
    %233 = arith.divf %231, %232 : vector<1x32xf32>
    %234 = arith.mulf %229, %229 : vector<8x32xf32>
    %cst_68 = arith.constant dense<0.000000e+00> : vector<32xf32>
    %235 = vector.multi_reduction <add>, %234, %cst_68 [0] : vector<8x32xf32> to vector<32xf32>
    %236 = vector.shape_cast %235 : vector<32xf32> to vector<1x32xf32>
    %cst_69 = arith.constant 8.000000e+00 : f32
    %237 = vector.broadcast %cst_69 : f32 to vector<1x32xf32>
    %238 = arith.divf %236, %237 : vector<1x32xf32>
    %239 = arith.mulf %233, %233 : vector<1x32xf32>
    %240 = arith.subf %238, %239 : vector<1x32xf32>
    %cst_70 = arith.constant 9.99999974E-6 : f32
    %241 = vector.broadcast %cst_70 : f32 to vector<1x32xf32>
    %242 = arith.addf %240, %241 : vector<1x32xf32>
    %243 = math.rsqrt %242 : vector<1x32xf32>
    %244 = arith.mulf %5, %243 : vector<1x32xf32>
    %245 = arith.mulf %233, %244 : vector<1x32xf32>
    %246 = arith.subf %6, %245 : vector<1x32xf32>
    %247 = vector.broadcast %244 : vector<1x32xf32> to vector<8x32xf32>
    %248 = arith.mulf %229, %247 : vector<8x32xf32>
    %249 = vector.broadcast %246 : vector<1x32xf32> to vector<8x32xf32>
    %250 = arith.addf %248, %249 : vector<8x32xf32>
    %cst_71 = arith.constant 0.00999999977 : f32
    %251 = vector.broadcast %cst_71 : f32 to vector<8x32xf32>
    %252 = arith.mulf %251, %250 : vector<8x32xf32>
    %253 = arith.maximumf %250, %252 : vector<8x32xf32>
    %cst_72 = arith.constant dense<0.000000e+00> : vector<8x2xf32>
    %254 = tpu.matmul %253, %7, %cst_72 {dimension_numbers = #tpu.dot_dimension_numbers<[1], [0], [0], [1], [0, 0, 1, 1], [], []>} : vector<8x32xf32>, vector<32x2xf32>, vector<8x2xf32> -> vector<8x2xf32>
    %255 = vector.broadcast %8 : vector<1x2xf32> to vector<8x2xf32>
    %256 = arith.addf %254, %255 : vector<8x2xf32>
    %257 = arith.addf %195, %256 : vector<8x2xf32>
    %c4_i32 = arith.constant 4 : i32
    %258 = vector.extract_strided_slice %257 {offsets = [0, 0], sizes = [8, 1], strides = [1, 1]} : vector<8x2xf32> to vector<8x1xf32>
    %259 = vector.broadcast %258 : vector<8x1xf32> to vector<8x32xf32>
    %260 = vector.broadcast %0 : vector<1x32xf32> to vector<8x32xf32>
    %261 = arith.mulf %259, %260 : vector<8x32xf32>
    %262 = vector.extract_strided_slice %257 {offsets = [0, 1], sizes = [8, 1], strides = [1, 1]} : vector<8x2xf32> to vector<8x1xf32>
    %263 = vector.broadcast %262 : vector<8x1xf32> to vector<8x32xf32>
    %264 = vector.broadcast %1 : vector<1x32xf32> to vector<8x32xf32>
    %265 = arith.mulf %263, %264 : vector<8x32xf32>
    %266 = arith.addf %261, %265 : vector<8x32xf32>
    %cst_73 = arith.constant dense<0.000000e+00> : vector<32xf32>
    %267 = vector.multi_reduction <add>, %266, %cst_73 [0] : vector<8x32xf32> to vector<32xf32>
    %268 = vector.shape_cast %267 : vector<32xf32> to vector<1x32xf32>
    %cst_74 = arith.constant 8.000000e+00 : f32
    %269 = vector.broadcast %cst_74 : f32 to vector<1x32xf32>
    %270 = arith.divf %268, %269 : vector<1x32xf32>
    %271 = arith.mulf %266, %266 : vector<8x32xf32>
    %cst_75 = arith.constant dense<0.000000e+00> : vector<32xf32>
    %272 = vector.multi_reduction <add>, %271, %cst_75 [0] : vector<8x32xf32> to vector<32xf32>
    %273 = vector.shape_cast %272 : vector<32xf32> to vector<1x32xf32>
    %cst_76 = arith.constant 8.000000e+00 : f32
    %274 = vector.broadcast %cst_76 : f32 to vector<1x32xf32>
    %275 = arith.divf %273, %274 : vector<1x32xf32>
    %276 = arith.mulf %270, %270 : vector<1x32xf32>
    %277 = arith.subf %275, %276 : vector<1x32xf32>
    %cst_77 = arith.constant 9.99999974E-6 : f32
    %278 = vector.broadcast %cst_77 : f32 to vector<1x32xf32>
    %279 = arith.addf %277, %278 : vector<1x32xf32>
    %280 = math.rsqrt %279 : vector<1x32xf32>
    %281 = arith.mulf %2, %280 : vector<1x32xf32>
    %282 = arith.mulf %270, %281 : vector<1x32xf32>
    %283 = arith.subf %3, %282 : vector<1x32xf32>
    %284 = vector.broadcast %281 : vector<1x32xf32> to vector<8x32xf32>
    %285 = arith.mulf %266, %284 : vector<8x32xf32>
    %286 = vector.broadcast %283 : vector<1x32xf32> to vector<8x32xf32>
    %287 = arith.addf %285, %286 : vector<8x32xf32>
    %cst_78 = arith.constant 0.00999999977 : f32
    %288 = vector.broadcast %cst_78 : f32 to vector<8x32xf32>
    %289 = arith.mulf %288, %287 : vector<8x32xf32>
    %290 = arith.maximumf %287, %289 : vector<8x32xf32>
    %cst_79 = arith.constant dense<0.000000e+00> : vector<8x32xf32>
    %291 = tpu.matmul %290, %4, %cst_79 {dimension_numbers = #tpu.dot_dimension_numbers<[1], [0], [0], [1], [0, 0, 1, 1], [], []>} : vector<8x32xf32>, vector<32x32xf32>, vector<8x32xf32> -> vector<8x32xf32>
    %cst_80 = arith.constant dense<0.000000e+00> : vector<32xf32>
    %292 = vector.multi_reduction <add>, %291, %cst_80 [0] : vector<8x32xf32> to vector<32xf32>
    %293 = vector.shape_cast %292 : vector<32xf32> to vector<1x32xf32>
    %cst_81 = arith.constant 8.000000e+00 : f32
    %294 = vector.broadcast %cst_81 : f32 to vector<1x32xf32>
    %295 = arith.divf %293, %294 : vector<1x32xf32>
    %296 = arith.mulf %291, %291 : vector<8x32xf32>
    %cst_82 = arith.constant dense<0.000000e+00> : vector<32xf32>
    %297 = vector.multi_reduction <add>, %296, %cst_82 [0] : vector<8x32xf32> to vector<32xf32>
    %298 = vector.shape_cast %297 : vector<32xf32> to vector<1x32xf32>
    %cst_83 = arith.constant 8.000000e+00 : f32
    %299 = vector.broadcast %cst_83 : f32 to vector<1x32xf32>
    %300 = arith.divf %298, %299 : vector<1x32xf32>
    %301 = arith.mulf %295, %295 : vector<1x32xf32>
    %302 = arith.subf %300, %301 : vector<1x32xf32>
    %cst_84 = arith.constant 9.99999974E-6 : f32
    %303 = vector.broadcast %cst_84 : f32 to vector<1x32xf32>
    %304 = arith.addf %302, %303 : vector<1x32xf32>
    %305 = math.rsqrt %304 : vector<1x32xf32>
    %306 = arith.mulf %5, %305 : vector<1x32xf32>
    %307 = arith.mulf %295, %306 : vector<1x32xf32>
    %308 = arith.subf %6, %307 : vector<1x32xf32>
    %309 = vector.broadcast %306 : vector<1x32xf32> to vector<8x32xf32>
    %310 = arith.mulf %291, %309 : vector<8x32xf32>
    %311 = vector.broadcast %308 : vector<1x32xf32> to vector<8x32xf32>
    %312 = arith.addf %310, %311 : vector<8x32xf32>
    %cst_85 = arith.constant 0.00999999977 : f32
    %313 = vector.broadcast %cst_85 : f32 to vector<8x32xf32>
    %314 = arith.mulf %313, %312 : vector<8x32xf32>
    %315 = arith.maximumf %312, %314 : vector<8x32xf32>
    %cst_86 = arith.constant dense<0.000000e+00> : vector<8x2xf32>
    %316 = tpu.matmul %315, %7, %cst_86 {dimension_numbers = #tpu.dot_dimension_numbers<[1], [0], [0], [1], [0, 0, 1, 1], [], []>} : vector<8x32xf32>, vector<32x2xf32>, vector<8x2xf32> -> vector<8x2xf32>
    %317 = vector.broadcast %8 : vector<1x2xf32> to vector<8x2xf32>
    %318 = arith.addf %316, %317 : vector<8x2xf32>
    %319 = arith.addf %257, %318 : vector<8x2xf32>
    %c5_i32 = arith.constant 5 : i32
    %320 = vector.extract_strided_slice %319 {offsets = [0, 0], sizes = [8, 1], strides = [1, 1]} : vector<8x2xf32> to vector<8x1xf32>
    %321 = vector.broadcast %320 : vector<8x1xf32> to vector<8x32xf32>
    %322 = vector.broadcast %0 : vector<1x32xf32> to vector<8x32xf32>
    %323 = arith.mulf %321, %322 : vector<8x32xf32>
    %324 = vector.extract_strided_slice %319 {offsets = [0, 1], sizes = [8, 1], strides = [1, 1]} : vector<8x2xf32> to vector<8x1xf32>
    %325 = vector.broadcast %324 : vector<8x1xf32> to vector<8x32xf32>
    %326 = vector.broadcast %1 : vector<1x32xf32> to vector<8x32xf32>
    %327 = arith.mulf %325, %326 : vector<8x32xf32>
    %328 = arith.addf %323, %327 : vector<8x32xf32>
    %cst_87 = arith.constant dense<0.000000e+00> : vector<32xf32>
    %329 = vector.multi_reduction <add>, %328, %cst_87 [0] : vector<8x32xf32> to vector<32xf32>
    %330 = vector.shape_cast %329 : vector<32xf32> to vector<1x32xf32>
    %cst_88 = arith.constant 8.000000e+00 : f32
    %331 = vector.broadcast %cst_88 : f32 to vector<1x32xf32>
    %332 = arith.divf %330, %331 : vector<1x32xf32>
    %333 = arith.mulf %328, %328 : vector<8x32xf32>
    %cst_89 = arith.constant dense<0.000000e+00> : vector<32xf32>
    %334 = vector.multi_reduction <add>, %333, %cst_89 [0] : vector<8x32xf32> to vector<32xf32>
    %335 = vector.shape_cast %334 : vector<32xf32> to vector<1x32xf32>
    %cst_90 = arith.constant 8.000000e+00 : f32
    %336 = vector.broadcast %cst_90 : f32 to vector<1x32xf32>
    %337 = arith.divf %335, %336 : vector<1x32xf32>
    %338 = arith.mulf %332, %332 : vector<1x32xf32>
    %339 = arith.subf %337, %338 : vector<1x32xf32>
    %cst_91 = arith.constant 9.99999974E-6 : f32
    %340 = vector.broadcast %cst_91 : f32 to vector<1x32xf32>
    %341 = arith.addf %339, %340 : vector<1x32xf32>
    %342 = math.rsqrt %341 : vector<1x32xf32>
    %343 = arith.mulf %2, %342 : vector<1x32xf32>
    %344 = arith.mulf %332, %343 : vector<1x32xf32>
    %345 = arith.subf %3, %344 : vector<1x32xf32>
    %346 = vector.broadcast %343 : vector<1x32xf32> to vector<8x32xf32>
    %347 = arith.mulf %328, %346 : vector<8x32xf32>
    %348 = vector.broadcast %345 : vector<1x32xf32> to vector<8x32xf32>
    %349 = arith.addf %347, %348 : vector<8x32xf32>
    %cst_92 = arith.constant 0.00999999977 : f32
    %350 = vector.broadcast %cst_92 : f32 to vector<8x32xf32>
    %351 = arith.mulf %350, %349 : vector<8x32xf32>
    %352 = arith.maximumf %349, %351 : vector<8x32xf32>
    %cst_93 = arith.constant dense<0.000000e+00> : vector<8x32xf32>
    %353 = tpu.matmul %352, %4, %cst_93 {dimension_numbers = #tpu.dot_dimension_numbers<[1], [0], [0], [1], [0, 0, 1, 1], [], []>} : vector<8x32xf32>, vector<32x32xf32>, vector<8x32xf32> -> vector<8x32xf32>
    %cst_94 = arith.constant dense<0.000000e+00> : vector<32xf32>
    %354 = vector.multi_reduction <add>, %353, %cst_94 [0] : vector<8x32xf32> to vector<32xf32>
    %355 = vector.shape_cast %354 : vector<32xf32> to vector<1x32xf32>
    %cst_95 = arith.constant 8.000000e+00 : f32
    %356 = vector.broadcast %cst_95 : f32 to vector<1x32xf32>
    %357 = arith.divf %355, %356 : vector<1x32xf32>
    %358 = arith.mulf %353, %353 : vector<8x32xf32>
    %cst_96 = arith.constant dense<0.000000e+00> : vector<32xf32>
    %359 = vector.multi_reduction <add>, %358, %cst_96 [0] : vector<8x32xf32> to vector<32xf32>
    %360 = vector.shape_cast %359 : vector<32xf32> to vector<1x32xf32>
    %cst_97 = arith.constant 8.000000e+00 : f32
    %361 = vector.broadcast %cst_97 : f32 to vector<1x32xf32>
    %362 = arith.divf %360, %361 : vector<1x32xf32>
    %363 = arith.mulf %357, %357 : vector<1x32xf32>
    %364 = arith.subf %362, %363 : vector<1x32xf32>
    %cst_98 = arith.constant 9.99999974E-6 : f32
    %365 = vector.broadcast %cst_98 : f32 to vector<1x32xf32>
    %366 = arith.addf %364, %365 : vector<1x32xf32>
    %367 = math.rsqrt %366 : vector<1x32xf32>
    %368 = arith.mulf %5, %367 : vector<1x32xf32>
    %369 = arith.mulf %357, %368 : vector<1x32xf32>
    %370 = arith.subf %6, %369 : vector<1x32xf32>
    %371 = vector.broadcast %368 : vector<1x32xf32> to vector<8x32xf32>
    %372 = arith.mulf %353, %371 : vector<8x32xf32>
    %373 = vector.broadcast %370 : vector<1x32xf32> to vector<8x32xf32>
    %374 = arith.addf %372, %373 : vector<8x32xf32>
    %cst_99 = arith.constant 0.00999999977 : f32
    %375 = vector.broadcast %cst_99 : f32 to vector<8x32xf32>
    %376 = arith.mulf %375, %374 : vector<8x32xf32>
    %377 = arith.maximumf %374, %376 : vector<8x32xf32>
    %cst_100 = arith.constant dense<0.000000e+00> : vector<8x2xf32>
    %378 = tpu.matmul %377, %7, %cst_100 {dimension_numbers = #tpu.dot_dimension_numbers<[1], [0], [0], [1], [0, 0, 1, 1], [], []>} : vector<8x32xf32>, vector<32x2xf32>, vector<8x2xf32> -> vector<8x2xf32>
    %379 = vector.broadcast %8 : vector<1x2xf32> to vector<8x2xf32>
    %380 = arith.addf %378, %379 : vector<8x2xf32>
    %381 = arith.addf %319, %380 : vector<8x2xf32>
    %c6_i32 = arith.constant 6 : i32
    %382 = vector.extract_strided_slice %381 {offsets = [0, 0], sizes = [8, 1], strides = [1, 1]} : vector<8x2xf32> to vector<8x1xf32>
    %383 = vector.broadcast %382 : vector<8x1xf32> to vector<8x32xf32>
    %384 = vector.broadcast %0 : vector<1x32xf32> to vector<8x32xf32>
    %385 = arith.mulf %383, %384 : vector<8x32xf32>
    %386 = vector.extract_strided_slice %381 {offsets = [0, 1], sizes = [8, 1], strides = [1, 1]} : vector<8x2xf32> to vector<8x1xf32>
    %387 = vector.broadcast %386 : vector<8x1xf32> to vector<8x32xf32>
    %388 = vector.broadcast %1 : vector<1x32xf32> to vector<8x32xf32>
    %389 = arith.mulf %387, %388 : vector<8x32xf32>
    %390 = arith.addf %385, %389 : vector<8x32xf32>
    %cst_101 = arith.constant dense<0.000000e+00> : vector<32xf32>
    %391 = vector.multi_reduction <add>, %390, %cst_101 [0] : vector<8x32xf32> to vector<32xf32>
    %392 = vector.shape_cast %391 : vector<32xf32> to vector<1x32xf32>
    %cst_102 = arith.constant 8.000000e+00 : f32
    %393 = vector.broadcast %cst_102 : f32 to vector<1x32xf32>
    %394 = arith.divf %392, %393 : vector<1x32xf32>
    %395 = arith.mulf %390, %390 : vector<8x32xf32>
    %cst_103 = arith.constant dense<0.000000e+00> : vector<32xf32>
    %396 = vector.multi_reduction <add>, %395, %cst_103 [0] : vector<8x32xf32> to vector<32xf32>
    %397 = vector.shape_cast %396 : vector<32xf32> to vector<1x32xf32>
    %cst_104 = arith.constant 8.000000e+00 : f32
    %398 = vector.broadcast %cst_104 : f32 to vector<1x32xf32>
    %399 = arith.divf %397, %398 : vector<1x32xf32>
    %400 = arith.mulf %394, %394 : vector<1x32xf32>
    %401 = arith.subf %399, %400 : vector<1x32xf32>
    %cst_105 = arith.constant 9.99999974E-6 : f32
    %402 = vector.broadcast %cst_105 : f32 to vector<1x32xf32>
    %403 = arith.addf %401, %402 : vector<1x32xf32>
    %404 = math.rsqrt %403 : vector<1x32xf32>
    %405 = arith.mulf %2, %404 : vector<1x32xf32>
    %406 = arith.mulf %394, %405 : vector<1x32xf32>
    %407 = arith.subf %3, %406 : vector<1x32xf32>
    %408 = vector.broadcast %405 : vector<1x32xf32> to vector<8x32xf32>
    %409 = arith.mulf %390, %408 : vector<8x32xf32>
    %410 = vector.broadcast %407 : vector<1x32xf32> to vector<8x32xf32>
    %411 = arith.addf %409, %410 : vector<8x32xf32>
    %cst_106 = arith.constant 0.00999999977 : f32
    %412 = vector.broadcast %cst_106 : f32 to vector<8x32xf32>
    %413 = arith.mulf %412, %411 : vector<8x32xf32>
    %414 = arith.maximumf %411, %413 : vector<8x32xf32>
    %cst_107 = arith.constant dense<0.000000e+00> : vector<8x32xf32>
    %415 = tpu.matmul %414, %4, %cst_107 {dimension_numbers = #tpu.dot_dimension_numbers<[1], [0], [0], [1], [0, 0, 1, 1], [], []>} : vector<8x32xf32>, vector<32x32xf32>, vector<8x32xf32> -> vector<8x32xf32>
    %cst_108 = arith.constant dense<0.000000e+00> : vector<32xf32>
    %416 = vector.multi_reduction <add>, %415, %cst_108 [0] : vector<8x32xf32> to vector<32xf32>
    %417 = vector.shape_cast %416 : vector<32xf32> to vector<1x32xf32>
    %cst_109 = arith.constant 8.000000e+00 : f32
    %418 = vector.broadcast %cst_109 : f32 to vector<1x32xf32>
    %419 = arith.divf %417, %418 : vector<1x32xf32>
    %420 = arith.mulf %415, %415 : vector<8x32xf32>
    %cst_110 = arith.constant dense<0.000000e+00> : vector<32xf32>
    %421 = vector.multi_reduction <add>, %420, %cst_110 [0] : vector<8x32xf32> to vector<32xf32>
    %422 = vector.shape_cast %421 : vector<32xf32> to vector<1x32xf32>
    %cst_111 = arith.constant 8.000000e+00 : f32
    %423 = vector.broadcast %cst_111 : f32 to vector<1x32xf32>
    %424 = arith.divf %422, %423 : vector<1x32xf32>
    %425 = arith.mulf %419, %419 : vector<1x32xf32>
    %426 = arith.subf %424, %425 : vector<1x32xf32>
    %cst_112 = arith.constant 9.99999974E-6 : f32
    %427 = vector.broadcast %cst_112 : f32 to vector<1x32xf32>
    %428 = arith.addf %426, %427 : vector<1x32xf32>
    %429 = math.rsqrt %428 : vector<1x32xf32>
    %430 = arith.mulf %5, %429 : vector<1x32xf32>
    %431 = arith.mulf %419, %430 : vector<1x32xf32>
    %432 = arith.subf %6, %431 : vector<1x32xf32>
    %433 = vector.broadcast %430 : vector<1x32xf32> to vector<8x32xf32>
    %434 = arith.mulf %415, %433 : vector<8x32xf32>
    %435 = vector.broadcast %432 : vector<1x32xf32> to vector<8x32xf32>
    %436 = arith.addf %434, %435 : vector<8x32xf32>
    %cst_113 = arith.constant 0.00999999977 : f32
    %437 = vector.broadcast %cst_113 : f32 to vector<8x32xf32>
    %438 = arith.mulf %437, %436 : vector<8x32xf32>
    %439 = arith.maximumf %436, %438 : vector<8x32xf32>
    %cst_114 = arith.constant dense<0.000000e+00> : vector<8x2xf32>
    %440 = tpu.matmul %439, %7, %cst_114 {dimension_numbers = #tpu.dot_dimension_numbers<[1], [0], [0], [1], [0, 0, 1, 1], [], []>} : vector<8x32xf32>, vector<32x2xf32>, vector<8x2xf32> -> vector<8x2xf32>
    %441 = vector.broadcast %8 : vector<1x2xf32> to vector<8x2xf32>
    %442 = arith.addf %440, %441 : vector<8x2xf32>
    %443 = arith.addf %381, %442 : vector<8x2xf32>
    %c7_i32 = arith.constant 7 : i32
    %444 = vector.extract_strided_slice %443 {offsets = [0, 0], sizes = [8, 1], strides = [1, 1]} : vector<8x2xf32> to vector<8x1xf32>
    %445 = vector.broadcast %444 : vector<8x1xf32> to vector<8x32xf32>
    %446 = vector.broadcast %0 : vector<1x32xf32> to vector<8x32xf32>
    %447 = arith.mulf %445, %446 : vector<8x32xf32>
    %448 = vector.extract_strided_slice %443 {offsets = [0, 1], sizes = [8, 1], strides = [1, 1]} : vector<8x2xf32> to vector<8x1xf32>
    %449 = vector.broadcast %448 : vector<8x1xf32> to vector<8x32xf32>
    %450 = vector.broadcast %1 : vector<1x32xf32> to vector<8x32xf32>
    %451 = arith.mulf %449, %450 : vector<8x32xf32>
    %452 = arith.addf %447, %451 : vector<8x32xf32>
    %cst_115 = arith.constant dense<0.000000e+00> : vector<32xf32>
    %453 = vector.multi_reduction <add>, %452, %cst_115 [0] : vector<8x32xf32> to vector<32xf32>
    %454 = vector.shape_cast %453 : vector<32xf32> to vector<1x32xf32>
    %cst_116 = arith.constant 8.000000e+00 : f32
    %455 = vector.broadcast %cst_116 : f32 to vector<1x32xf32>
    %456 = arith.divf %454, %455 : vector<1x32xf32>
    %457 = arith.mulf %452, %452 : vector<8x32xf32>
    %cst_117 = arith.constant dense<0.000000e+00> : vector<32xf32>
    %458 = vector.multi_reduction <add>, %457, %cst_117 [0] : vector<8x32xf32> to vector<32xf32>
    %459 = vector.shape_cast %458 : vector<32xf32> to vector<1x32xf32>
    %cst_118 = arith.constant 8.000000e+00 : f32
    %460 = vector.broadcast %cst_118 : f32 to vector<1x32xf32>
    %461 = arith.divf %459, %460 : vector<1x32xf32>
    %462 = arith.mulf %456, %456 : vector<1x32xf32>
    %463 = arith.subf %461, %462 : vector<1x32xf32>
    %cst_119 = arith.constant 9.99999974E-6 : f32
    %464 = vector.broadcast %cst_119 : f32 to vector<1x32xf32>
    %465 = arith.addf %463, %464 : vector<1x32xf32>
    %466 = math.rsqrt %465 : vector<1x32xf32>
    %467 = arith.mulf %2, %466 : vector<1x32xf32>
    %468 = arith.mulf %456, %467 : vector<1x32xf32>
    %469 = arith.subf %3, %468 : vector<1x32xf32>
    %470 = vector.broadcast %467 : vector<1x32xf32> to vector<8x32xf32>
    %471 = arith.mulf %452, %470 : vector<8x32xf32>
    %472 = vector.broadcast %469 : vector<1x32xf32> to vector<8x32xf32>
    %473 = arith.addf %471, %472 : vector<8x32xf32>
    %cst_120 = arith.constant 0.00999999977 : f32
    %474 = vector.broadcast %cst_120 : f32 to vector<8x32xf32>
    %475 = arith.mulf %474, %473 : vector<8x32xf32>
    %476 = arith.maximumf %473, %475 : vector<8x32xf32>
    %cst_121 = arith.constant dense<0.000000e+00> : vector<8x32xf32>
    %477 = tpu.matmul %476, %4, %cst_121 {dimension_numbers = #tpu.dot_dimension_numbers<[1], [0], [0], [1], [0, 0, 1, 1], [], []>} : vector<8x32xf32>, vector<32x32xf32>, vector<8x32xf32> -> vector<8x32xf32>
    %cst_122 = arith.constant dense<0.000000e+00> : vector<32xf32>
    %478 = vector.multi_reduction <add>, %477, %cst_122 [0] : vector<8x32xf32> to vector<32xf32>
    %479 = vector.shape_cast %478 : vector<32xf32> to vector<1x32xf32>
    %cst_123 = arith.constant 8.000000e+00 : f32
    %480 = vector.broadcast %cst_123 : f32 to vector<1x32xf32>
    %481 = arith.divf %479, %480 : vector<1x32xf32>
    %482 = arith.mulf %477, %477 : vector<8x32xf32>
    %cst_124 = arith.constant dense<0.000000e+00> : vector<32xf32>
    %483 = vector.multi_reduction <add>, %482, %cst_124 [0] : vector<8x32xf32> to vector<32xf32>
    %484 = vector.shape_cast %483 : vector<32xf32> to vector<1x32xf32>
    %cst_125 = arith.constant 8.000000e+00 : f32
    %485 = vector.broadcast %cst_125 : f32 to vector<1x32xf32>
    %486 = arith.divf %484, %485 : vector<1x32xf32>
    %487 = arith.mulf %481, %481 : vector<1x32xf32>
    %488 = arith.subf %486, %487 : vector<1x32xf32>
    %cst_126 = arith.constant 9.99999974E-6 : f32
    %489 = vector.broadcast %cst_126 : f32 to vector<1x32xf32>
    %490 = arith.addf %488, %489 : vector<1x32xf32>
    %491 = math.rsqrt %490 : vector<1x32xf32>
    %492 = arith.mulf %5, %491 : vector<1x32xf32>
    %493 = arith.mulf %481, %492 : vector<1x32xf32>
    %494 = arith.subf %6, %493 : vector<1x32xf32>
    %495 = vector.broadcast %492 : vector<1x32xf32> to vector<8x32xf32>
    %496 = arith.mulf %477, %495 : vector<8x32xf32>
    %497 = vector.broadcast %494 : vector<1x32xf32> to vector<8x32xf32>
    %498 = arith.addf %496, %497 : vector<8x32xf32>
    %cst_127 = arith.constant 0.00999999977 : f32
    %499 = vector.broadcast %cst_127 : f32 to vector<8x32xf32>
    %500 = arith.mulf %499, %498 : vector<8x32xf32>
    %501 = arith.maximumf %498, %500 : vector<8x32xf32>
    %cst_128 = arith.constant dense<0.000000e+00> : vector<8x2xf32>
    %502 = tpu.matmul %501, %7, %cst_128 {dimension_numbers = #tpu.dot_dimension_numbers<[1], [0], [0], [1], [0, 0, 1, 1], [], []>} : vector<8x32xf32>, vector<32x2xf32>, vector<8x2xf32> -> vector<8x2xf32>
    %503 = vector.broadcast %8 : vector<1x2xf32> to vector<8x2xf32>
    %504 = arith.addf %502, %503 : vector<8x2xf32>
    %505 = arith.addf %443, %504 : vector<8x2xf32>
    %c8_i32 = arith.constant 8 : i32
    %506 = vector.extract_strided_slice %505 {offsets = [0, 0], sizes = [8, 1], strides = [1, 1]} : vector<8x2xf32> to vector<8x1xf32>
    %507 = vector.broadcast %506 : vector<8x1xf32> to vector<8x32xf32>
    %508 = vector.broadcast %0 : vector<1x32xf32> to vector<8x32xf32>
    %509 = arith.mulf %507, %508 : vector<8x32xf32>
    %510 = vector.extract_strided_slice %505 {offsets = [0, 1], sizes = [8, 1], strides = [1, 1]} : vector<8x2xf32> to vector<8x1xf32>
    %511 = vector.broadcast %510 : vector<8x1xf32> to vector<8x32xf32>
    %512 = vector.broadcast %1 : vector<1x32xf32> to vector<8x32xf32>
    %513 = arith.mulf %511, %512 : vector<8x32xf32>
    %514 = arith.addf %509, %513 : vector<8x32xf32>
    %cst_129 = arith.constant dense<0.000000e+00> : vector<32xf32>
    %515 = vector.multi_reduction <add>, %514, %cst_129 [0] : vector<8x32xf32> to vector<32xf32>
    %516 = vector.shape_cast %515 : vector<32xf32> to vector<1x32xf32>
    %cst_130 = arith.constant 8.000000e+00 : f32
    %517 = vector.broadcast %cst_130 : f32 to vector<1x32xf32>
    %518 = arith.divf %516, %517 : vector<1x32xf32>
    %519 = arith.mulf %514, %514 : vector<8x32xf32>
    %cst_131 = arith.constant dense<0.000000e+00> : vector<32xf32>
    %520 = vector.multi_reduction <add>, %519, %cst_131 [0] : vector<8x32xf32> to vector<32xf32>
    %521 = vector.shape_cast %520 : vector<32xf32> to vector<1x32xf32>
    %cst_132 = arith.constant 8.000000e+00 : f32
    %522 = vector.broadcast %cst_132 : f32 to vector<1x32xf32>
    %523 = arith.divf %521, %522 : vector<1x32xf32>
    %524 = arith.mulf %518, %518 : vector<1x32xf32>
    %525 = arith.subf %523, %524 : vector<1x32xf32>
    %cst_133 = arith.constant 9.99999974E-6 : f32
    %526 = vector.broadcast %cst_133 : f32 to vector<1x32xf32>
    %527 = arith.addf %525, %526 : vector<1x32xf32>
    %528 = math.rsqrt %527 : vector<1x32xf32>
    %529 = arith.mulf %2, %528 : vector<1x32xf32>
    %530 = arith.mulf %518, %529 : vector<1x32xf32>
    %531 = arith.subf %3, %530 : vector<1x32xf32>
    %532 = vector.broadcast %529 : vector<1x32xf32> to vector<8x32xf32>
    %533 = arith.mulf %514, %532 : vector<8x32xf32>
    %534 = vector.broadcast %531 : vector<1x32xf32> to vector<8x32xf32>
    %535 = arith.addf %533, %534 : vector<8x32xf32>
    %cst_134 = arith.constant 0.00999999977 : f32
    %536 = vector.broadcast %cst_134 : f32 to vector<8x32xf32>
    %537 = arith.mulf %536, %535 : vector<8x32xf32>
    %538 = arith.maximumf %535, %537 : vector<8x32xf32>
    %cst_135 = arith.constant dense<0.000000e+00> : vector<8x32xf32>
    %539 = tpu.matmul %538, %4, %cst_135 {dimension_numbers = #tpu.dot_dimension_numbers<[1], [0], [0], [1], [0, 0, 1, 1], [], []>} : vector<8x32xf32>, vector<32x32xf32>, vector<8x32xf32> -> vector<8x32xf32>
    %cst_136 = arith.constant dense<0.000000e+00> : vector<32xf32>
    %540 = vector.multi_reduction <add>, %539, %cst_136 [0] : vector<8x32xf32> to vector<32xf32>
    %541 = vector.shape_cast %540 : vector<32xf32> to vector<1x32xf32>
    %cst_137 = arith.constant 8.000000e+00 : f32
    %542 = vector.broadcast %cst_137 : f32 to vector<1x32xf32>
    %543 = arith.divf %541, %542 : vector<1x32xf32>
    %544 = arith.mulf %539, %539 : vector<8x32xf32>
    %cst_138 = arith.constant dense<0.000000e+00> : vector<32xf32>
    %545 = vector.multi_reduction <add>, %544, %cst_138 [0] : vector<8x32xf32> to vector<32xf32>
    %546 = vector.shape_cast %545 : vector<32xf32> to vector<1x32xf32>
    %cst_139 = arith.constant 8.000000e+00 : f32
    %547 = vector.broadcast %cst_139 : f32 to vector<1x32xf32>
    %548 = arith.divf %546, %547 : vector<1x32xf32>
    %549 = arith.mulf %543, %543 : vector<1x32xf32>
    %550 = arith.subf %548, %549 : vector<1x32xf32>
    %cst_140 = arith.constant 9.99999974E-6 : f32
    %551 = vector.broadcast %cst_140 : f32 to vector<1x32xf32>
    %552 = arith.addf %550, %551 : vector<1x32xf32>
    %553 = math.rsqrt %552 : vector<1x32xf32>
    %554 = arith.mulf %5, %553 : vector<1x32xf32>
    %555 = arith.mulf %543, %554 : vector<1x32xf32>
    %556 = arith.subf %6, %555 : vector<1x32xf32>
    %557 = vector.broadcast %554 : vector<1x32xf32> to vector<8x32xf32>
    %558 = arith.mulf %539, %557 : vector<8x32xf32>
    %559 = vector.broadcast %556 : vector<1x32xf32> to vector<8x32xf32>
    %560 = arith.addf %558, %559 : vector<8x32xf32>
    %cst_141 = arith.constant 0.00999999977 : f32
    %561 = vector.broadcast %cst_141 : f32 to vector<8x32xf32>
    %562 = arith.mulf %561, %560 : vector<8x32xf32>
    %563 = arith.maximumf %560, %562 : vector<8x32xf32>
    %cst_142 = arith.constant dense<0.000000e+00> : vector<8x2xf32>
    %564 = tpu.matmul %563, %7, %cst_142 {dimension_numbers = #tpu.dot_dimension_numbers<[1], [0], [0], [1], [0, 0, 1, 1], [], []>} : vector<8x32xf32>, vector<32x2xf32>, vector<8x2xf32> -> vector<8x2xf32>
    %565 = vector.broadcast %8 : vector<1x2xf32> to vector<8x2xf32>
    %566 = arith.addf %564, %565 : vector<8x2xf32>
    %567 = arith.addf %505, %566 : vector<8x2xf32>
    %c9_i32 = arith.constant 9 : i32
    %568 = vector.extract_strided_slice %567 {offsets = [0, 0], sizes = [8, 1], strides = [1, 1]} : vector<8x2xf32> to vector<8x1xf32>
    %569 = vector.broadcast %568 : vector<8x1xf32> to vector<8x32xf32>
    %570 = vector.broadcast %0 : vector<1x32xf32> to vector<8x32xf32>
    %571 = arith.mulf %569, %570 : vector<8x32xf32>
    %572 = vector.extract_strided_slice %567 {offsets = [0, 1], sizes = [8, 1], strides = [1, 1]} : vector<8x2xf32> to vector<8x1xf32>
    %573 = vector.broadcast %572 : vector<8x1xf32> to vector<8x32xf32>
    %574 = vector.broadcast %1 : vector<1x32xf32> to vector<8x32xf32>
    %575 = arith.mulf %573, %574 : vector<8x32xf32>
    %576 = arith.addf %571, %575 : vector<8x32xf32>
    %cst_143 = arith.constant dense<0.000000e+00> : vector<32xf32>
    %577 = vector.multi_reduction <add>, %576, %cst_143 [0] : vector<8x32xf32> to vector<32xf32>
    %578 = vector.shape_cast %577 : vector<32xf32> to vector<1x32xf32>
    %cst_144 = arith.constant 8.000000e+00 : f32
    %579 = vector.broadcast %cst_144 : f32 to vector<1x32xf32>
    %580 = arith.divf %578, %579 : vector<1x32xf32>
    %581 = arith.mulf %576, %576 : vector<8x32xf32>
    %cst_145 = arith.constant dense<0.000000e+00> : vector<32xf32>
    %582 = vector.multi_reduction <add>, %581, %cst_145 [0] : vector<8x32xf32> to vector<32xf32>
    %583 = vector.shape_cast %582 : vector<32xf32> to vector<1x32xf32>
    %cst_146 = arith.constant 8.000000e+00 : f32
    %584 = vector.broadcast %cst_146 : f32 to vector<1x32xf32>
    %585 = arith.divf %583, %584 : vector<1x32xf32>
    %586 = arith.mulf %580, %580 : vector<1x32xf32>
    %587 = arith.subf %585, %586 : vector<1x32xf32>
    %cst_147 = arith.constant 9.99999974E-6 : f32
    %588 = vector.broadcast %cst_147 : f32 to vector<1x32xf32>
    %589 = arith.addf %587, %588 : vector<1x32xf32>
    %590 = math.rsqrt %589 : vector<1x32xf32>
    %591 = arith.mulf %2, %590 : vector<1x32xf32>
    %592 = arith.mulf %580, %591 : vector<1x32xf32>
    %593 = arith.subf %3, %592 : vector<1x32xf32>
    %594 = vector.broadcast %591 : vector<1x32xf32> to vector<8x32xf32>
    %595 = arith.mulf %576, %594 : vector<8x32xf32>
    %596 = vector.broadcast %593 : vector<1x32xf32> to vector<8x32xf32>
    %597 = arith.addf %595, %596 : vector<8x32xf32>
    %cst_148 = arith.constant 0.00999999977 : f32
    %598 = vector.broadcast %cst_148 : f32 to vector<8x32xf32>
    %599 = arith.mulf %598, %597 : vector<8x32xf32>
    %600 = arith.maximumf %597, %599 : vector<8x32xf32>
    %cst_149 = arith.constant dense<0.000000e+00> : vector<8x32xf32>
    %601 = tpu.matmul %600, %4, %cst_149 {dimension_numbers = #tpu.dot_dimension_numbers<[1], [0], [0], [1], [0, 0, 1, 1], [], []>} : vector<8x32xf32>, vector<32x32xf32>, vector<8x32xf32> -> vector<8x32xf32>
    %cst_150 = arith.constant dense<0.000000e+00> : vector<32xf32>
    %602 = vector.multi_reduction <add>, %601, %cst_150 [0] : vector<8x32xf32> to vector<32xf32>
    %603 = vector.shape_cast %602 : vector<32xf32> to vector<1x32xf32>
    %cst_151 = arith.constant 8.000000e+00 : f32
    %604 = vector.broadcast %cst_151 : f32 to vector<1x32xf32>
    %605 = arith.divf %603, %604 : vector<1x32xf32>
    %606 = arith.mulf %601, %601 : vector<8x32xf32>
    %cst_152 = arith.constant dense<0.000000e+00> : vector<32xf32>
    %607 = vector.multi_reduction <add>, %606, %cst_152 [0] : vector<8x32xf32> to vector<32xf32>
    %608 = vector.shape_cast %607 : vector<32xf32> to vector<1x32xf32>
    %cst_153 = arith.constant 8.000000e+00 : f32
    %609 = vector.broadcast %cst_153 : f32 to vector<1x32xf32>
    %610 = arith.divf %608, %609 : vector<1x32xf32>
    %611 = arith.mulf %605, %605 : vector<1x32xf32>
    %612 = arith.subf %610, %611 : vector<1x32xf32>
    %cst_154 = arith.constant 9.99999974E-6 : f32
    %613 = vector.broadcast %cst_154 : f32 to vector<1x32xf32>
    %614 = arith.addf %612, %613 : vector<1x32xf32>
    %615 = math.rsqrt %614 : vector<1x32xf32>
    %616 = arith.mulf %5, %615 : vector<1x32xf32>
    %617 = arith.mulf %605, %616 : vector<1x32xf32>
    %618 = arith.subf %6, %617 : vector<1x32xf32>
    %619 = vector.broadcast %616 : vector<1x32xf32> to vector<8x32xf32>
    %620 = arith.mulf %601, %619 : vector<8x32xf32>
    %621 = vector.broadcast %618 : vector<1x32xf32> to vector<8x32xf32>
    %622 = arith.addf %620, %621 : vector<8x32xf32>
    %cst_155 = arith.constant 0.00999999977 : f32
    %623 = vector.broadcast %cst_155 : f32 to vector<8x32xf32>
    %624 = arith.mulf %623, %622 : vector<8x32xf32>
    %625 = arith.maximumf %622, %624 : vector<8x32xf32>
    %cst_156 = arith.constant dense<0.000000e+00> : vector<8x2xf32>
    %626 = tpu.matmul %625, %7, %cst_156 {dimension_numbers = #tpu.dot_dimension_numbers<[1], [0], [0], [1], [0, 0, 1, 1], [], []>} : vector<8x32xf32>, vector<32x2xf32>, vector<8x2xf32> -> vector<8x2xf32>
    %627 = vector.broadcast %8 : vector<1x2xf32> to vector<8x2xf32>
    %628 = arith.addf %626, %627 : vector<8x2xf32>
    %629 = arith.addf %567, %628 : vector<8x2xf32>
    %c10_i32 = arith.constant 10 : i32
    %630 = vector.extract_strided_slice %629 {offsets = [0, 0], sizes = [8, 1], strides = [1, 1]} : vector<8x2xf32> to vector<8x1xf32>
    %631 = vector.broadcast %630 : vector<8x1xf32> to vector<8x32xf32>
    %632 = vector.broadcast %0 : vector<1x32xf32> to vector<8x32xf32>
    %633 = arith.mulf %631, %632 : vector<8x32xf32>
    %634 = vector.extract_strided_slice %629 {offsets = [0, 1], sizes = [8, 1], strides = [1, 1]} : vector<8x2xf32> to vector<8x1xf32>
    %635 = vector.broadcast %634 : vector<8x1xf32> to vector<8x32xf32>
    %636 = vector.broadcast %1 : vector<1x32xf32> to vector<8x32xf32>
    %637 = arith.mulf %635, %636 : vector<8x32xf32>
    %638 = arith.addf %633, %637 : vector<8x32xf32>
    %cst_157 = arith.constant dense<0.000000e+00> : vector<32xf32>
    %639 = vector.multi_reduction <add>, %638, %cst_157 [0] : vector<8x32xf32> to vector<32xf32>
    %640 = vector.shape_cast %639 : vector<32xf32> to vector<1x32xf32>
    %cst_158 = arith.constant 8.000000e+00 : f32
    %641 = vector.broadcast %cst_158 : f32 to vector<1x32xf32>
    %642 = arith.divf %640, %641 : vector<1x32xf32>
    %643 = arith.mulf %638, %638 : vector<8x32xf32>
    %cst_159 = arith.constant dense<0.000000e+00> : vector<32xf32>
    %644 = vector.multi_reduction <add>, %643, %cst_159 [0] : vector<8x32xf32> to vector<32xf32>
    %645 = vector.shape_cast %644 : vector<32xf32> to vector<1x32xf32>
    %cst_160 = arith.constant 8.000000e+00 : f32
    %646 = vector.broadcast %cst_160 : f32 to vector<1x32xf32>
    %647 = arith.divf %645, %646 : vector<1x32xf32>
    %648 = arith.mulf %642, %642 : vector<1x32xf32>
    %649 = arith.subf %647, %648 : vector<1x32xf32>
    %cst_161 = arith.constant 9.99999974E-6 : f32
    %650 = vector.broadcast %cst_161 : f32 to vector<1x32xf32>
    %651 = arith.addf %649, %650 : vector<1x32xf32>
    %652 = math.rsqrt %651 : vector<1x32xf32>
    %653 = arith.mulf %2, %652 : vector<1x32xf32>
    %654 = arith.mulf %642, %653 : vector<1x32xf32>
    %655 = arith.subf %3, %654 : vector<1x32xf32>
    %656 = vector.broadcast %653 : vector<1x32xf32> to vector<8x32xf32>
    %657 = arith.mulf %638, %656 : vector<8x32xf32>
    %658 = vector.broadcast %655 : vector<1x32xf32> to vector<8x32xf32>
    %659 = arith.addf %657, %658 : vector<8x32xf32>
    %cst_162 = arith.constant 0.00999999977 : f32
    %660 = vector.broadcast %cst_162 : f32 to vector<8x32xf32>
    %661 = arith.mulf %660, %659 : vector<8x32xf32>
    %662 = arith.maximumf %659, %661 : vector<8x32xf32>
    %cst_163 = arith.constant dense<0.000000e+00> : vector<8x32xf32>
    %663 = tpu.matmul %662, %4, %cst_163 {dimension_numbers = #tpu.dot_dimension_numbers<[1], [0], [0], [1], [0, 0, 1, 1], [], []>} : vector<8x32xf32>, vector<32x32xf32>, vector<8x32xf32> -> vector<8x32xf32>
    %cst_164 = arith.constant dense<0.000000e+00> : vector<32xf32>
    %664 = vector.multi_reduction <add>, %663, %cst_164 [0] : vector<8x32xf32> to vector<32xf32>
    %665 = vector.shape_cast %664 : vector<32xf32> to vector<1x32xf32>
    %cst_165 = arith.constant 8.000000e+00 : f32
    %666 = vector.broadcast %cst_165 : f32 to vector<1x32xf32>
    %667 = arith.divf %665, %666 : vector<1x32xf32>
    %668 = arith.mulf %663, %663 : vector<8x32xf32>
    %cst_166 = arith.constant dense<0.000000e+00> : vector<32xf32>
    %669 = vector.multi_reduction <add>, %668, %cst_166 [0] : vector<8x32xf32> to vector<32xf32>
    %670 = vector.shape_cast %669 : vector<32xf32> to vector<1x32xf32>
    %cst_167 = arith.constant 8.000000e+00 : f32
    %671 = vector.broadcast %cst_167 : f32 to vector<1x32xf32>
    %672 = arith.divf %670, %671 : vector<1x32xf32>
    %673 = arith.mulf %667, %667 : vector<1x32xf32>
    %674 = arith.subf %672, %673 : vector<1x32xf32>
    %cst_168 = arith.constant 9.99999974E-6 : f32
    %675 = vector.broadcast %cst_168 : f32 to vector<1x32xf32>
    %676 = arith.addf %674, %675 : vector<1x32xf32>
    %677 = math.rsqrt %676 : vector<1x32xf32>
    %678 = arith.mulf %5, %677 : vector<1x32xf32>
    %679 = arith.mulf %667, %678 : vector<1x32xf32>
    %680 = arith.subf %6, %679 : vector<1x32xf32>
    %681 = vector.broadcast %678 : vector<1x32xf32> to vector<8x32xf32>
    %682 = arith.mulf %663, %681 : vector<8x32xf32>
    %683 = vector.broadcast %680 : vector<1x32xf32> to vector<8x32xf32>
    %684 = arith.addf %682, %683 : vector<8x32xf32>
    %cst_169 = arith.constant 0.00999999977 : f32
    %685 = vector.broadcast %cst_169 : f32 to vector<8x32xf32>
    %686 = arith.mulf %685, %684 : vector<8x32xf32>
    %687 = arith.maximumf %684, %686 : vector<8x32xf32>
    %cst_170 = arith.constant dense<0.000000e+00> : vector<8x2xf32>
    %688 = tpu.matmul %687, %7, %cst_170 {dimension_numbers = #tpu.dot_dimension_numbers<[1], [0], [0], [1], [0, 0, 1, 1], [], []>} : vector<8x32xf32>, vector<32x2xf32>, vector<8x2xf32> -> vector<8x2xf32>
    %689 = vector.broadcast %8 : vector<1x2xf32> to vector<8x2xf32>
    %690 = arith.addf %688, %689 : vector<8x2xf32>
    %691 = arith.addf %629, %690 : vector<8x2xf32>
    %c11_i32 = arith.constant 11 : i32
    %692 = vector.extract_strided_slice %691 {offsets = [0, 0], sizes = [8, 1], strides = [1, 1]} : vector<8x2xf32> to vector<8x1xf32>
    %693 = vector.broadcast %692 : vector<8x1xf32> to vector<8x32xf32>
    %694 = vector.broadcast %0 : vector<1x32xf32> to vector<8x32xf32>
    %695 = arith.mulf %693, %694 : vector<8x32xf32>
    %696 = vector.extract_strided_slice %691 {offsets = [0, 1], sizes = [8, 1], strides = [1, 1]} : vector<8x2xf32> to vector<8x1xf32>
    %697 = vector.broadcast %696 : vector<8x1xf32> to vector<8x32xf32>
    %698 = vector.broadcast %1 : vector<1x32xf32> to vector<8x32xf32>
    %699 = arith.mulf %697, %698 : vector<8x32xf32>
    %700 = arith.addf %695, %699 : vector<8x32xf32>
    %cst_171 = arith.constant dense<0.000000e+00> : vector<32xf32>
    %701 = vector.multi_reduction <add>, %700, %cst_171 [0] : vector<8x32xf32> to vector<32xf32>
    %702 = vector.shape_cast %701 : vector<32xf32> to vector<1x32xf32>
    %cst_172 = arith.constant 8.000000e+00 : f32
    %703 = vector.broadcast %cst_172 : f32 to vector<1x32xf32>
    %704 = arith.divf %702, %703 : vector<1x32xf32>
    %705 = arith.mulf %700, %700 : vector<8x32xf32>
    %cst_173 = arith.constant dense<0.000000e+00> : vector<32xf32>
    %706 = vector.multi_reduction <add>, %705, %cst_173 [0] : vector<8x32xf32> to vector<32xf32>
    %707 = vector.shape_cast %706 : vector<32xf32> to vector<1x32xf32>
    %cst_174 = arith.constant 8.000000e+00 : f32
    %708 = vector.broadcast %cst_174 : f32 to vector<1x32xf32>
    %709 = arith.divf %707, %708 : vector<1x32xf32>
    %710 = arith.mulf %704, %704 : vector<1x32xf32>
    %711 = arith.subf %709, %710 : vector<1x32xf32>
    %cst_175 = arith.constant 9.99999974E-6 : f32
    %712 = vector.broadcast %cst_175 : f32 to vector<1x32xf32>
    %713 = arith.addf %711, %712 : vector<1x32xf32>
    %714 = math.rsqrt %713 : vector<1x32xf32>
    %715 = arith.mulf %2, %714 : vector<1x32xf32>
    %716 = arith.mulf %704, %715 : vector<1x32xf32>
    %717 = arith.subf %3, %716 : vector<1x32xf32>
    %718 = vector.broadcast %715 : vector<1x32xf32> to vector<8x32xf32>
    %719 = arith.mulf %700, %718 : vector<8x32xf32>
    %720 = vector.broadcast %717 : vector<1x32xf32> to vector<8x32xf32>
    %721 = arith.addf %719, %720 : vector<8x32xf32>
    %cst_176 = arith.constant 0.00999999977 : f32
    %722 = vector.broadcast %cst_176 : f32 to vector<8x32xf32>
    %723 = arith.mulf %722, %721 : vector<8x32xf32>
    %724 = arith.maximumf %721, %723 : vector<8x32xf32>
    %cst_177 = arith.constant dense<0.000000e+00> : vector<8x32xf32>
    %725 = tpu.matmul %724, %4, %cst_177 {dimension_numbers = #tpu.dot_dimension_numbers<[1], [0], [0], [1], [0, 0, 1, 1], [], []>} : vector<8x32xf32>, vector<32x32xf32>, vector<8x32xf32> -> vector<8x32xf32>
    %cst_178 = arith.constant dense<0.000000e+00> : vector<32xf32>
    %726 = vector.multi_reduction <add>, %725, %cst_178 [0] : vector<8x32xf32> to vector<32xf32>
    %727 = vector.shape_cast %726 : vector<32xf32> to vector<1x32xf32>
    %cst_179 = arith.constant 8.000000e+00 : f32
    %728 = vector.broadcast %cst_179 : f32 to vector<1x32xf32>
    %729 = arith.divf %727, %728 : vector<1x32xf32>
    %730 = arith.mulf %725, %725 : vector<8x32xf32>
    %cst_180 = arith.constant dense<0.000000e+00> : vector<32xf32>
    %731 = vector.multi_reduction <add>, %730, %cst_180 [0] : vector<8x32xf32> to vector<32xf32>
    %732 = vector.shape_cast %731 : vector<32xf32> to vector<1x32xf32>
    %cst_181 = arith.constant 8.000000e+00 : f32
    %733 = vector.broadcast %cst_181 : f32 to vector<1x32xf32>
    %734 = arith.divf %732, %733 : vector<1x32xf32>
    %735 = arith.mulf %729, %729 : vector<1x32xf32>
    %736 = arith.subf %734, %735 : vector<1x32xf32>
    %cst_182 = arith.constant 9.99999974E-6 : f32
    %737 = vector.broadcast %cst_182 : f32 to vector<1x32xf32>
    %738 = arith.addf %736, %737 : vector<1x32xf32>
    %739 = math.rsqrt %738 : vector<1x32xf32>
    %740 = arith.mulf %5, %739 : vector<1x32xf32>
    %741 = arith.mulf %729, %740 : vector<1x32xf32>
    %742 = arith.subf %6, %741 : vector<1x32xf32>
    %743 = vector.broadcast %740 : vector<1x32xf32> to vector<8x32xf32>
    %744 = arith.mulf %725, %743 : vector<8x32xf32>
    %745 = vector.broadcast %742 : vector<1x32xf32> to vector<8x32xf32>
    %746 = arith.addf %744, %745 : vector<8x32xf32>
    %cst_183 = arith.constant 0.00999999977 : f32
    %747 = vector.broadcast %cst_183 : f32 to vector<8x32xf32>
    %748 = arith.mulf %747, %746 : vector<8x32xf32>
    %749 = arith.maximumf %746, %748 : vector<8x32xf32>
    %cst_184 = arith.constant dense<0.000000e+00> : vector<8x2xf32>
    %750 = tpu.matmul %749, %7, %cst_184 {dimension_numbers = #tpu.dot_dimension_numbers<[1], [0], [0], [1], [0, 0, 1, 1], [], []>} : vector<8x32xf32>, vector<32x2xf32>, vector<8x2xf32> -> vector<8x2xf32>
    %751 = vector.broadcast %8 : vector<1x2xf32> to vector<8x2xf32>
    %752 = arith.addf %750, %751 : vector<8x2xf32>
    %753 = arith.addf %691, %752 : vector<8x2xf32>
    %c12_i32 = arith.constant 12 : i32
    %754 = vector.extract_strided_slice %753 {offsets = [0, 0], sizes = [8, 1], strides = [1, 1]} : vector<8x2xf32> to vector<8x1xf32>
    %755 = vector.broadcast %754 : vector<8x1xf32> to vector<8x32xf32>
    %756 = vector.broadcast %0 : vector<1x32xf32> to vector<8x32xf32>
    %757 = arith.mulf %755, %756 : vector<8x32xf32>
    %758 = vector.extract_strided_slice %753 {offsets = [0, 1], sizes = [8, 1], strides = [1, 1]} : vector<8x2xf32> to vector<8x1xf32>
    %759 = vector.broadcast %758 : vector<8x1xf32> to vector<8x32xf32>
    %760 = vector.broadcast %1 : vector<1x32xf32> to vector<8x32xf32>
    %761 = arith.mulf %759, %760 : vector<8x32xf32>
    %762 = arith.addf %757, %761 : vector<8x32xf32>
    %cst_185 = arith.constant dense<0.000000e+00> : vector<32xf32>
    %763 = vector.multi_reduction <add>, %762, %cst_185 [0] : vector<8x32xf32> to vector<32xf32>
    %764 = vector.shape_cast %763 : vector<32xf32> to vector<1x32xf32>
    %cst_186 = arith.constant 8.000000e+00 : f32
    %765 = vector.broadcast %cst_186 : f32 to vector<1x32xf32>
    %766 = arith.divf %764, %765 : vector<1x32xf32>
    %767 = arith.mulf %762, %762 : vector<8x32xf32>
    %cst_187 = arith.constant dense<0.000000e+00> : vector<32xf32>
    %768 = vector.multi_reduction <add>, %767, %cst_187 [0] : vector<8x32xf32> to vector<32xf32>
    %769 = vector.shape_cast %768 : vector<32xf32> to vector<1x32xf32>
    %cst_188 = arith.constant 8.000000e+00 : f32
    %770 = vector.broadcast %cst_188 : f32 to vector<1x32xf32>
    %771 = arith.divf %769, %770 : vector<1x32xf32>
    %772 = arith.mulf %766, %766 : vector<1x32xf32>
    %773 = arith.subf %771, %772 : vector<1x32xf32>
    %cst_189 = arith.constant 9.99999974E-6 : f32
    %774 = vector.broadcast %cst_189 : f32 to vector<1x32xf32>
    %775 = arith.addf %773, %774 : vector<1x32xf32>
    %776 = math.rsqrt %775 : vector<1x32xf32>
    %777 = arith.mulf %2, %776 : vector<1x32xf32>
    %778 = arith.mulf %766, %777 : vector<1x32xf32>
    %779 = arith.subf %3, %778 : vector<1x32xf32>
    %780 = vector.broadcast %777 : vector<1x32xf32> to vector<8x32xf32>
    %781 = arith.mulf %762, %780 : vector<8x32xf32>
    %782 = vector.broadcast %779 : vector<1x32xf32> to vector<8x32xf32>
    %783 = arith.addf %781, %782 : vector<8x32xf32>
    %cst_190 = arith.constant 0.00999999977 : f32
    %784 = vector.broadcast %cst_190 : f32 to vector<8x32xf32>
    %785 = arith.mulf %784, %783 : vector<8x32xf32>
    %786 = arith.maximumf %783, %785 : vector<8x32xf32>
    %cst_191 = arith.constant dense<0.000000e+00> : vector<8x32xf32>
    %787 = tpu.matmul %786, %4, %cst_191 {dimension_numbers = #tpu.dot_dimension_numbers<[1], [0], [0], [1], [0, 0, 1, 1], [], []>} : vector<8x32xf32>, vector<32x32xf32>, vector<8x32xf32> -> vector<8x32xf32>
    %cst_192 = arith.constant dense<0.000000e+00> : vector<32xf32>
    %788 = vector.multi_reduction <add>, %787, %cst_192 [0] : vector<8x32xf32> to vector<32xf32>
    %789 = vector.shape_cast %788 : vector<32xf32> to vector<1x32xf32>
    %cst_193 = arith.constant 8.000000e+00 : f32
    %790 = vector.broadcast %cst_193 : f32 to vector<1x32xf32>
    %791 = arith.divf %789, %790 : vector<1x32xf32>
    %792 = arith.mulf %787, %787 : vector<8x32xf32>
    %cst_194 = arith.constant dense<0.000000e+00> : vector<32xf32>
    %793 = vector.multi_reduction <add>, %792, %cst_194 [0] : vector<8x32xf32> to vector<32xf32>
    %794 = vector.shape_cast %793 : vector<32xf32> to vector<1x32xf32>
    %cst_195 = arith.constant 8.000000e+00 : f32
    %795 = vector.broadcast %cst_195 : f32 to vector<1x32xf32>
    %796 = arith.divf %794, %795 : vector<1x32xf32>
    %797 = arith.mulf %791, %791 : vector<1x32xf32>
    %798 = arith.subf %796, %797 : vector<1x32xf32>
    %cst_196 = arith.constant 9.99999974E-6 : f32
    %799 = vector.broadcast %cst_196 : f32 to vector<1x32xf32>
    %800 = arith.addf %798, %799 : vector<1x32xf32>
    %801 = math.rsqrt %800 : vector<1x32xf32>
    %802 = arith.mulf %5, %801 : vector<1x32xf32>
    %803 = arith.mulf %791, %802 : vector<1x32xf32>
    %804 = arith.subf %6, %803 : vector<1x32xf32>
    %805 = vector.broadcast %802 : vector<1x32xf32> to vector<8x32xf32>
    %806 = arith.mulf %787, %805 : vector<8x32xf32>
    %807 = vector.broadcast %804 : vector<1x32xf32> to vector<8x32xf32>
    %808 = arith.addf %806, %807 : vector<8x32xf32>
    %cst_197 = arith.constant 0.00999999977 : f32
    %809 = vector.broadcast %cst_197 : f32 to vector<8x32xf32>
    %810 = arith.mulf %809, %808 : vector<8x32xf32>
    %811 = arith.maximumf %808, %810 : vector<8x32xf32>
    %cst_198 = arith.constant dense<0.000000e+00> : vector<8x2xf32>
    %812 = tpu.matmul %811, %7, %cst_198 {dimension_numbers = #tpu.dot_dimension_numbers<[1], [0], [0], [1], [0, 0, 1, 1], [], []>} : vector<8x32xf32>, vector<32x2xf32>, vector<8x2xf32> -> vector<8x2xf32>
    %813 = vector.broadcast %8 : vector<1x2xf32> to vector<8x2xf32>
    %814 = arith.addf %812, %813 : vector<8x2xf32>
    %815 = arith.addf %753, %814 : vector<8x2xf32>
    %c13_i32 = arith.constant 13 : i32
    %816 = vector.extract_strided_slice %815 {offsets = [0, 0], sizes = [8, 1], strides = [1, 1]} : vector<8x2xf32> to vector<8x1xf32>
    %817 = vector.broadcast %816 : vector<8x1xf32> to vector<8x32xf32>
    %818 = vector.broadcast %0 : vector<1x32xf32> to vector<8x32xf32>
    %819 = arith.mulf %817, %818 : vector<8x32xf32>
    %820 = vector.extract_strided_slice %815 {offsets = [0, 1], sizes = [8, 1], strides = [1, 1]} : vector<8x2xf32> to vector<8x1xf32>
    %821 = vector.broadcast %820 : vector<8x1xf32> to vector<8x32xf32>
    %822 = vector.broadcast %1 : vector<1x32xf32> to vector<8x32xf32>
    %823 = arith.mulf %821, %822 : vector<8x32xf32>
    %824 = arith.addf %819, %823 : vector<8x32xf32>
    %cst_199 = arith.constant dense<0.000000e+00> : vector<32xf32>
    %825 = vector.multi_reduction <add>, %824, %cst_199 [0] : vector<8x32xf32> to vector<32xf32>
    %826 = vector.shape_cast %825 : vector<32xf32> to vector<1x32xf32>
    %cst_200 = arith.constant 8.000000e+00 : f32
    %827 = vector.broadcast %cst_200 : f32 to vector<1x32xf32>
    %828 = arith.divf %826, %827 : vector<1x32xf32>
    %829 = arith.mulf %824, %824 : vector<8x32xf32>
    %cst_201 = arith.constant dense<0.000000e+00> : vector<32xf32>
    %830 = vector.multi_reduction <add>, %829, %cst_201 [0] : vector<8x32xf32> to vector<32xf32>
    %831 = vector.shape_cast %830 : vector<32xf32> to vector<1x32xf32>
    %cst_202 = arith.constant 8.000000e+00 : f32
    %832 = vector.broadcast %cst_202 : f32 to vector<1x32xf32>
    %833 = arith.divf %831, %832 : vector<1x32xf32>
    %834 = arith.mulf %828, %828 : vector<1x32xf32>
    %835 = arith.subf %833, %834 : vector<1x32xf32>
    %cst_203 = arith.constant 9.99999974E-6 : f32
    %836 = vector.broadcast %cst_203 : f32 to vector<1x32xf32>
    %837 = arith.addf %835, %836 : vector<1x32xf32>
    %838 = math.rsqrt %837 : vector<1x32xf32>
    %839 = arith.mulf %2, %838 : vector<1x32xf32>
    %840 = arith.mulf %828, %839 : vector<1x32xf32>
    %841 = arith.subf %3, %840 : vector<1x32xf32>
    %842 = vector.broadcast %839 : vector<1x32xf32> to vector<8x32xf32>
    %843 = arith.mulf %824, %842 : vector<8x32xf32>
    %844 = vector.broadcast %841 : vector<1x32xf32> to vector<8x32xf32>
    %845 = arith.addf %843, %844 : vector<8x32xf32>
    %cst_204 = arith.constant 0.00999999977 : f32
    %846 = vector.broadcast %cst_204 : f32 to vector<8x32xf32>
    %847 = arith.mulf %846, %845 : vector<8x32xf32>
    %848 = arith.maximumf %845, %847 : vector<8x32xf32>
    %cst_205 = arith.constant dense<0.000000e+00> : vector<8x32xf32>
    %849 = tpu.matmul %848, %4, %cst_205 {dimension_numbers = #tpu.dot_dimension_numbers<[1], [0], [0], [1], [0, 0, 1, 1], [], []>} : vector<8x32xf32>, vector<32x32xf32>, vector<8x32xf32> -> vector<8x32xf32>
    %cst_206 = arith.constant dense<0.000000e+00> : vector<32xf32>
    %850 = vector.multi_reduction <add>, %849, %cst_206 [0] : vector<8x32xf32> to vector<32xf32>
    %851 = vector.shape_cast %850 : vector<32xf32> to vector<1x32xf32>
    %cst_207 = arith.constant 8.000000e+00 : f32
    %852 = vector.broadcast %cst_207 : f32 to vector<1x32xf32>
    %853 = arith.divf %851, %852 : vector<1x32xf32>
    %854 = arith.mulf %849, %849 : vector<8x32xf32>
    %cst_208 = arith.constant dense<0.000000e+00> : vector<32xf32>
    %855 = vector.multi_reduction <add>, %854, %cst_208 [0] : vector<8x32xf32> to vector<32xf32>
    %856 = vector.shape_cast %855 : vector<32xf32> to vector<1x32xf32>
    %cst_209 = arith.constant 8.000000e+00 : f32
    %857 = vector.broadcast %cst_209 : f32 to vector<1x32xf32>
    %858 = arith.divf %856, %857 : vector<1x32xf32>
    %859 = arith.mulf %853, %853 : vector<1x32xf32>
    %860 = arith.subf %858, %859 : vector<1x32xf32>
    %cst_210 = arith.constant 9.99999974E-6 : f32
    %861 = vector.broadcast %cst_210 : f32 to vector<1x32xf32>
    %862 = arith.addf %860, %861 : vector<1x32xf32>
    %863 = math.rsqrt %862 : vector<1x32xf32>
    %864 = arith.mulf %5, %863 : vector<1x32xf32>
    %865 = arith.mulf %853, %864 : vector<1x32xf32>
    %866 = arith.subf %6, %865 : vector<1x32xf32>
    %867 = vector.broadcast %864 : vector<1x32xf32> to vector<8x32xf32>
    %868 = arith.mulf %849, %867 : vector<8x32xf32>
    %869 = vector.broadcast %866 : vector<1x32xf32> to vector<8x32xf32>
    %870 = arith.addf %868, %869 : vector<8x32xf32>
    %cst_211 = arith.constant 0.00999999977 : f32
    %871 = vector.broadcast %cst_211 : f32 to vector<8x32xf32>
    %872 = arith.mulf %871, %870 : vector<8x32xf32>
    %873 = arith.maximumf %870, %872 : vector<8x32xf32>
    %cst_212 = arith.constant dense<0.000000e+00> : vector<8x2xf32>
    %874 = tpu.matmul %873, %7, %cst_212 {dimension_numbers = #tpu.dot_dimension_numbers<[1], [0], [0], [1], [0, 0, 1, 1], [], []>} : vector<8x32xf32>, vector<32x2xf32>, vector<8x2xf32> -> vector<8x2xf32>
    %875 = vector.broadcast %8 : vector<1x2xf32> to vector<8x2xf32>
    %876 = arith.addf %874, %875 : vector<8x2xf32>
    %877 = arith.addf %815, %876 : vector<8x2xf32>
    %c14_i32 = arith.constant 14 : i32
    %878 = vector.extract_strided_slice %877 {offsets = [0, 0], sizes = [8, 1], strides = [1, 1]} : vector<8x2xf32> to vector<8x1xf32>
    %879 = vector.broadcast %878 : vector<8x1xf32> to vector<8x32xf32>
    %880 = vector.broadcast %0 : vector<1x32xf32> to vector<8x32xf32>
    %881 = arith.mulf %879, %880 : vector<8x32xf32>
    %882 = vector.extract_strided_slice %877 {offsets = [0, 1], sizes = [8, 1], strides = [1, 1]} : vector<8x2xf32> to vector<8x1xf32>
    %883 = vector.broadcast %882 : vector<8x1xf32> to vector<8x32xf32>
    %884 = vector.broadcast %1 : vector<1x32xf32> to vector<8x32xf32>
    %885 = arith.mulf %883, %884 : vector<8x32xf32>
    %886 = arith.addf %881, %885 : vector<8x32xf32>
    %cst_213 = arith.constant dense<0.000000e+00> : vector<32xf32>
    %887 = vector.multi_reduction <add>, %886, %cst_213 [0] : vector<8x32xf32> to vector<32xf32>
    %888 = vector.shape_cast %887 : vector<32xf32> to vector<1x32xf32>
    %cst_214 = arith.constant 8.000000e+00 : f32
    %889 = vector.broadcast %cst_214 : f32 to vector<1x32xf32>
    %890 = arith.divf %888, %889 : vector<1x32xf32>
    %891 = arith.mulf %886, %886 : vector<8x32xf32>
    %cst_215 = arith.constant dense<0.000000e+00> : vector<32xf32>
    %892 = vector.multi_reduction <add>, %891, %cst_215 [0] : vector<8x32xf32> to vector<32xf32>
    %893 = vector.shape_cast %892 : vector<32xf32> to vector<1x32xf32>
    %cst_216 = arith.constant 8.000000e+00 : f32
    %894 = vector.broadcast %cst_216 : f32 to vector<1x32xf32>
    %895 = arith.divf %893, %894 : vector<1x32xf32>
    %896 = arith.mulf %890, %890 : vector<1x32xf32>
    %897 = arith.subf %895, %896 : vector<1x32xf32>
    %cst_217 = arith.constant 9.99999974E-6 : f32
    %898 = vector.broadcast %cst_217 : f32 to vector<1x32xf32>
    %899 = arith.addf %897, %898 : vector<1x32xf32>
    %900 = math.rsqrt %899 : vector<1x32xf32>
    %901 = arith.mulf %2, %900 : vector<1x32xf32>
    %902 = arith.mulf %890, %901 : vector<1x32xf32>
    %903 = arith.subf %3, %902 : vector<1x32xf32>
    %904 = vector.broadcast %901 : vector<1x32xf32> to vector<8x32xf32>
    %905 = arith.mulf %886, %904 : vector<8x32xf32>
    %906 = vector.broadcast %903 : vector<1x32xf32> to vector<8x32xf32>
    %907 = arith.addf %905, %906 : vector<8x32xf32>
    %cst_218 = arith.constant 0.00999999977 : f32
    %908 = vector.broadcast %cst_218 : f32 to vector<8x32xf32>
    %909 = arith.mulf %908, %907 : vector<8x32xf32>
    %910 = arith.maximumf %907, %909 : vector<8x32xf32>
    %cst_219 = arith.constant dense<0.000000e+00> : vector<8x32xf32>
    %911 = tpu.matmul %910, %4, %cst_219 {dimension_numbers = #tpu.dot_dimension_numbers<[1], [0], [0], [1], [0, 0, 1, 1], [], []>} : vector<8x32xf32>, vector<32x32xf32>, vector<8x32xf32> -> vector<8x32xf32>
    %cst_220 = arith.constant dense<0.000000e+00> : vector<32xf32>
    %912 = vector.multi_reduction <add>, %911, %cst_220 [0] : vector<8x32xf32> to vector<32xf32>
    %913 = vector.shape_cast %912 : vector<32xf32> to vector<1x32xf32>
    %cst_221 = arith.constant 8.000000e+00 : f32
    %914 = vector.broadcast %cst_221 : f32 to vector<1x32xf32>
    %915 = arith.divf %913, %914 : vector<1x32xf32>
    %916 = arith.mulf %911, %911 : vector<8x32xf32>
    %cst_222 = arith.constant dense<0.000000e+00> : vector<32xf32>
    %917 = vector.multi_reduction <add>, %916, %cst_222 [0] : vector<8x32xf32> to vector<32xf32>
    %918 = vector.shape_cast %917 : vector<32xf32> to vector<1x32xf32>
    %cst_223 = arith.constant 8.000000e+00 : f32
    %919 = vector.broadcast %cst_223 : f32 to vector<1x32xf32>
    %920 = arith.divf %918, %919 : vector<1x32xf32>
    %921 = arith.mulf %915, %915 : vector<1x32xf32>
    %922 = arith.subf %920, %921 : vector<1x32xf32>
    %cst_224 = arith.constant 9.99999974E-6 : f32
    %923 = vector.broadcast %cst_224 : f32 to vector<1x32xf32>
    %924 = arith.addf %922, %923 : vector<1x32xf32>
    %925 = math.rsqrt %924 : vector<1x32xf32>
    %926 = arith.mulf %5, %925 : vector<1x32xf32>
    %927 = arith.mulf %915, %926 : vector<1x32xf32>
    %928 = arith.subf %6, %927 : vector<1x32xf32>
    %929 = vector.broadcast %926 : vector<1x32xf32> to vector<8x32xf32>
    %930 = arith.mulf %911, %929 : vector<8x32xf32>
    %931 = vector.broadcast %928 : vector<1x32xf32> to vector<8x32xf32>
    %932 = arith.addf %930, %931 : vector<8x32xf32>
    %cst_225 = arith.constant 0.00999999977 : f32
    %933 = vector.broadcast %cst_225 : f32 to vector<8x32xf32>
    %934 = arith.mulf %933, %932 : vector<8x32xf32>
    %935 = arith.maximumf %932, %934 : vector<8x32xf32>
    %cst_226 = arith.constant dense<0.000000e+00> : vector<8x2xf32>
    %936 = tpu.matmul %935, %7, %cst_226 {dimension_numbers = #tpu.dot_dimension_numbers<[1], [0], [0], [1], [0, 0, 1, 1], [], []>} : vector<8x32xf32>, vector<32x2xf32>, vector<8x2xf32> -> vector<8x2xf32>
    %937 = vector.broadcast %8 : vector<1x2xf32> to vector<8x2xf32>
    %938 = arith.addf %936, %937 : vector<8x2xf32>
    %939 = arith.addf %877, %938 : vector<8x2xf32>
    %c15_i32 = arith.constant 15 : i32
    %940 = vector.extract_strided_slice %939 {offsets = [0, 0], sizes = [8, 1], strides = [1, 1]} : vector<8x2xf32> to vector<8x1xf32>
    %941 = vector.broadcast %940 : vector<8x1xf32> to vector<8x32xf32>
    %942 = vector.broadcast %0 : vector<1x32xf32> to vector<8x32xf32>
    %943 = arith.mulf %941, %942 : vector<8x32xf32>
    %944 = vector.extract_strided_slice %939 {offsets = [0, 1], sizes = [8, 1], strides = [1, 1]} : vector<8x2xf32> to vector<8x1xf32>
    %945 = vector.broadcast %944 : vector<8x1xf32> to vector<8x32xf32>
    %946 = vector.broadcast %1 : vector<1x32xf32> to vector<8x32xf32>
    %947 = arith.mulf %945, %946 : vector<8x32xf32>
    %948 = arith.addf %943, %947 : vector<8x32xf32>
    %cst_227 = arith.constant dense<0.000000e+00> : vector<32xf32>
    %949 = vector.multi_reduction <add>, %948, %cst_227 [0] : vector<8x32xf32> to vector<32xf32>
    %950 = vector.shape_cast %949 : vector<32xf32> to vector<1x32xf32>
    %cst_228 = arith.constant 8.000000e+00 : f32
    %951 = vector.broadcast %cst_228 : f32 to vector<1x32xf32>
    %952 = arith.divf %950, %951 : vector<1x32xf32>
    %953 = arith.mulf %948, %948 : vector<8x32xf32>
    %cst_229 = arith.constant dense<0.000000e+00> : vector<32xf32>
    %954 = vector.multi_reduction <add>, %953, %cst_229 [0] : vector<8x32xf32> to vector<32xf32>
    %955 = vector.shape_cast %954 : vector<32xf32> to vector<1x32xf32>
    %cst_230 = arith.constant 8.000000e+00 : f32
    %956 = vector.broadcast %cst_230 : f32 to vector<1x32xf32>
    %957 = arith.divf %955, %956 : vector<1x32xf32>
    %958 = arith.mulf %952, %952 : vector<1x32xf32>
    %959 = arith.subf %957, %958 : vector<1x32xf32>
    %cst_231 = arith.constant 9.99999974E-6 : f32
    %960 = vector.broadcast %cst_231 : f32 to vector<1x32xf32>
    %961 = arith.addf %959, %960 : vector<1x32xf32>
    %962 = math.rsqrt %961 : vector<1x32xf32>
    %963 = arith.mulf %2, %962 : vector<1x32xf32>
    %964 = arith.mulf %952, %963 : vector<1x32xf32>
    %965 = arith.subf %3, %964 : vector<1x32xf32>
    %966 = vector.broadcast %963 : vector<1x32xf32> to vector<8x32xf32>
    %967 = arith.mulf %948, %966 : vector<8x32xf32>
    %968 = vector.broadcast %965 : vector<1x32xf32> to vector<8x32xf32>
    %969 = arith.addf %967, %968 : vector<8x32xf32>
    %cst_232 = arith.constant 0.00999999977 : f32
    %970 = vector.broadcast %cst_232 : f32 to vector<8x32xf32>
    %971 = arith.mulf %970, %969 : vector<8x32xf32>
    %972 = arith.maximumf %969, %971 : vector<8x32xf32>
    %cst_233 = arith.constant dense<0.000000e+00> : vector<8x32xf32>
    %973 = tpu.matmul %972, %4, %cst_233 {dimension_numbers = #tpu.dot_dimension_numbers<[1], [0], [0], [1], [0, 0, 1, 1], [], []>} : vector<8x32xf32>, vector<32x32xf32>, vector<8x32xf32> -> vector<8x32xf32>
    %cst_234 = arith.constant dense<0.000000e+00> : vector<32xf32>
    %974 = vector.multi_reduction <add>, %973, %cst_234 [0] : vector<8x32xf32> to vector<32xf32>
    %975 = vector.shape_cast %974 : vector<32xf32> to vector<1x32xf32>
    %cst_235 = arith.constant 8.000000e+00 : f32
    %976 = vector.broadcast %cst_235 : f32 to vector<1x32xf32>
    %977 = arith.divf %975, %976 : vector<1x32xf32>
    %978 = arith.mulf %973, %973 : vector<8x32xf32>
    %cst_236 = arith.constant dense<0.000000e+00> : vector<32xf32>
    %979 = vector.multi_reduction <add>, %978, %cst_236 [0] : vector<8x32xf32> to vector<32xf32>
    %980 = vector.shape_cast %979 : vector<32xf32> to vector<1x32xf32>
    %cst_237 = arith.constant 8.000000e+00 : f32
    %981 = vector.broadcast %cst_237 : f32 to vector<1x32xf32>
    %982 = arith.divf %980, %981 : vector<1x32xf32>
    %983 = arith.mulf %977, %977 : vector<1x32xf32>
    %984 = arith.subf %982, %983 : vector<1x32xf32>
    %cst_238 = arith.constant 9.99999974E-6 : f32
    %985 = vector.broadcast %cst_238 : f32 to vector<1x32xf32>
    %986 = arith.addf %984, %985 : vector<1x32xf32>
    %987 = math.rsqrt %986 : vector<1x32xf32>
    %988 = arith.mulf %5, %987 : vector<1x32xf32>
    %989 = arith.mulf %977, %988 : vector<1x32xf32>
    %990 = arith.subf %6, %989 : vector<1x32xf32>
    %991 = vector.broadcast %988 : vector<1x32xf32> to vector<8x32xf32>
    %992 = arith.mulf %973, %991 : vector<8x32xf32>
    %993 = vector.broadcast %990 : vector<1x32xf32> to vector<8x32xf32>
    %994 = arith.addf %992, %993 : vector<8x32xf32>
    %cst_239 = arith.constant 0.00999999977 : f32
    %995 = vector.broadcast %cst_239 : f32 to vector<8x32xf32>
    %996 = arith.mulf %995, %994 : vector<8x32xf32>
    %997 = arith.maximumf %994, %996 : vector<8x32xf32>
    %cst_240 = arith.constant dense<0.000000e+00> : vector<8x2xf32>
    %998 = tpu.matmul %997, %7, %cst_240 {dimension_numbers = #tpu.dot_dimension_numbers<[1], [0], [0], [1], [0, 0, 1, 1], [], []>} : vector<8x32xf32>, vector<32x2xf32>, vector<8x2xf32> -> vector<8x2xf32>
    %999 = vector.broadcast %8 : vector<1x2xf32> to vector<8x2xf32>
    %1000 = arith.addf %998, %999 : vector<8x2xf32>
    %1001 = arith.addf %939, %1000 : vector<8x2xf32>
    %c16_i32 = arith.constant 16 : i32
    %1002 = vector.extract_strided_slice %1001 {offsets = [0, 0], sizes = [8, 1], strides = [1, 1]} : vector<8x2xf32> to vector<8x1xf32>
    %1003 = vector.broadcast %1002 : vector<8x1xf32> to vector<8x32xf32>
    %1004 = vector.broadcast %0 : vector<1x32xf32> to vector<8x32xf32>
    %1005 = arith.mulf %1003, %1004 : vector<8x32xf32>
    %1006 = vector.extract_strided_slice %1001 {offsets = [0, 1], sizes = [8, 1], strides = [1, 1]} : vector<8x2xf32> to vector<8x1xf32>
    %1007 = vector.broadcast %1006 : vector<8x1xf32> to vector<8x32xf32>
    %1008 = vector.broadcast %1 : vector<1x32xf32> to vector<8x32xf32>
    %1009 = arith.mulf %1007, %1008 : vector<8x32xf32>
    %1010 = arith.addf %1005, %1009 : vector<8x32xf32>
    %cst_241 = arith.constant dense<0.000000e+00> : vector<32xf32>
    %1011 = vector.multi_reduction <add>, %1010, %cst_241 [0] : vector<8x32xf32> to vector<32xf32>
    %1012 = vector.shape_cast %1011 : vector<32xf32> to vector<1x32xf32>
    %cst_242 = arith.constant 8.000000e+00 : f32
    %1013 = vector.broadcast %cst_242 : f32 to vector<1x32xf32>
    %1014 = arith.divf %1012, %1013 : vector<1x32xf32>
    %1015 = arith.mulf %1010, %1010 : vector<8x32xf32>
    %cst_243 = arith.constant dense<0.000000e+00> : vector<32xf32>
    %1016 = vector.multi_reduction <add>, %1015, %cst_243 [0] : vector<8x32xf32> to vector<32xf32>
    %1017 = vector.shape_cast %1016 : vector<32xf32> to vector<1x32xf32>
    %cst_244 = arith.constant 8.000000e+00 : f32
    %1018 = vector.broadcast %cst_244 : f32 to vector<1x32xf32>
    %1019 = arith.divf %1017, %1018 : vector<1x32xf32>
    %1020 = arith.mulf %1014, %1014 : vector<1x32xf32>
    %1021 = arith.subf %1019, %1020 : vector<1x32xf32>
    %cst_245 = arith.constant 9.99999974E-6 : f32
    %1022 = vector.broadcast %cst_245 : f32 to vector<1x32xf32>
    %1023 = arith.addf %1021, %1022 : vector<1x32xf32>
    %1024 = math.rsqrt %1023 : vector<1x32xf32>
    %1025 = arith.mulf %2, %1024 : vector<1x32xf32>
    %1026 = arith.mulf %1014, %1025 : vector<1x32xf32>
    %1027 = arith.subf %3, %1026 : vector<1x32xf32>
    %1028 = vector.broadcast %1025 : vector<1x32xf32> to vector<8x32xf32>
    %1029 = arith.mulf %1010, %1028 : vector<8x32xf32>
    %1030 = vector.broadcast %1027 : vector<1x32xf32> to vector<8x32xf32>
    %1031 = arith.addf %1029, %1030 : vector<8x32xf32>
    %cst_246 = arith.constant 0.00999999977 : f32
    %1032 = vector.broadcast %cst_246 : f32 to vector<8x32xf32>
    %1033 = arith.mulf %1032, %1031 : vector<8x32xf32>
    %1034 = arith.maximumf %1031, %1033 : vector<8x32xf32>
    %cst_247 = arith.constant dense<0.000000e+00> : vector<8x32xf32>
    %1035 = tpu.matmul %1034, %4, %cst_247 {dimension_numbers = #tpu.dot_dimension_numbers<[1], [0], [0], [1], [0, 0, 1, 1], [], []>} : vector<8x32xf32>, vector<32x32xf32>, vector<8x32xf32> -> vector<8x32xf32>
    %cst_248 = arith.constant dense<0.000000e+00> : vector<32xf32>
    %1036 = vector.multi_reduction <add>, %1035, %cst_248 [0] : vector<8x32xf32> to vector<32xf32>
    %1037 = vector.shape_cast %1036 : vector<32xf32> to vector<1x32xf32>
    %cst_249 = arith.constant 8.000000e+00 : f32
    %1038 = vector.broadcast %cst_249 : f32 to vector<1x32xf32>
    %1039 = arith.divf %1037, %1038 : vector<1x32xf32>
    %1040 = arith.mulf %1035, %1035 : vector<8x32xf32>
    %cst_250 = arith.constant dense<0.000000e+00> : vector<32xf32>
    %1041 = vector.multi_reduction <add>, %1040, %cst_250 [0] : vector<8x32xf32> to vector<32xf32>
    %1042 = vector.shape_cast %1041 : vector<32xf32> to vector<1x32xf32>
    %cst_251 = arith.constant 8.000000e+00 : f32
    %1043 = vector.broadcast %cst_251 : f32 to vector<1x32xf32>
    %1044 = arith.divf %1042, %1043 : vector<1x32xf32>
    %1045 = arith.mulf %1039, %1039 : vector<1x32xf32>
    %1046 = arith.subf %1044, %1045 : vector<1x32xf32>
    %cst_252 = arith.constant 9.99999974E-6 : f32
    %1047 = vector.broadcast %cst_252 : f32 to vector<1x32xf32>
    %1048 = arith.addf %1046, %1047 : vector<1x32xf32>
    %1049 = math.rsqrt %1048 : vector<1x32xf32>
    %1050 = arith.mulf %5, %1049 : vector<1x32xf32>
    %1051 = arith.mulf %1039, %1050 : vector<1x32xf32>
    %1052 = arith.subf %6, %1051 : vector<1x32xf32>
    %1053 = vector.broadcast %1050 : vector<1x32xf32> to vector<8x32xf32>
    %1054 = arith.mulf %1035, %1053 : vector<8x32xf32>
    %1055 = vector.broadcast %1052 : vector<1x32xf32> to vector<8x32xf32>
    %1056 = arith.addf %1054, %1055 : vector<8x32xf32>
    %cst_253 = arith.constant 0.00999999977 : f32
    %1057 = vector.broadcast %cst_253 : f32 to vector<8x32xf32>
    %1058 = arith.mulf %1057, %1056 : vector<8x32xf32>
    %1059 = arith.maximumf %1056, %1058 : vector<8x32xf32>
    %cst_254 = arith.constant dense<0.000000e+00> : vector<8x2xf32>
    %1060 = tpu.matmul %1059, %7, %cst_254 {dimension_numbers = #tpu.dot_dimension_numbers<[1], [0], [0], [1], [0, 0, 1, 1], [], []>} : vector<8x32xf32>, vector<32x2xf32>, vector<8x2xf32> -> vector<8x2xf32>
    %1061 = vector.broadcast %8 : vector<1x2xf32> to vector<8x2xf32>
    %1062 = arith.addf %1060, %1061 : vector<8x2xf32>
    %1063 = arith.addf %1001, %1062 : vector<8x2xf32>
    %c17_i32 = arith.constant 17 : i32
    %1064 = vector.extract_strided_slice %1063 {offsets = [0, 0], sizes = [8, 1], strides = [1, 1]} : vector<8x2xf32> to vector<8x1xf32>
    %1065 = vector.broadcast %1064 : vector<8x1xf32> to vector<8x32xf32>
    %1066 = vector.broadcast %0 : vector<1x32xf32> to vector<8x32xf32>
    %1067 = arith.mulf %1065, %1066 : vector<8x32xf32>
    %1068 = vector.extract_strided_slice %1063 {offsets = [0, 1], sizes = [8, 1], strides = [1, 1]} : vector<8x2xf32> to vector<8x1xf32>
    %1069 = vector.broadcast %1068 : vector<8x1xf32> to vector<8x32xf32>
    %1070 = vector.broadcast %1 : vector<1x32xf32> to vector<8x32xf32>
    %1071 = arith.mulf %1069, %1070 : vector<8x32xf32>
    %1072 = arith.addf %1067, %1071 : vector<8x32xf32>
    %cst_255 = arith.constant dense<0.000000e+00> : vector<32xf32>
    %1073 = vector.multi_reduction <add>, %1072, %cst_255 [0] : vector<8x32xf32> to vector<32xf32>
    %1074 = vector.shape_cast %1073 : vector<32xf32> to vector<1x32xf32>
    %cst_256 = arith.constant 8.000000e+00 : f32
    %1075 = vector.broadcast %cst_256 : f32 to vector<1x32xf32>
    %1076 = arith.divf %1074, %1075 : vector<1x32xf32>
    %1077 = arith.mulf %1072, %1072 : vector<8x32xf32>
    %cst_257 = arith.constant dense<0.000000e+00> : vector<32xf32>
    %1078 = vector.multi_reduction <add>, %1077, %cst_257 [0] : vector<8x32xf32> to vector<32xf32>
    %1079 = vector.shape_cast %1078 : vector<32xf32> to vector<1x32xf32>
    %cst_258 = arith.constant 8.000000e+00 : f32
    %1080 = vector.broadcast %cst_258 : f32 to vector<1x32xf32>
    %1081 = arith.divf %1079, %1080 : vector<1x32xf32>
    %1082 = arith.mulf %1076, %1076 : vector<1x32xf32>
    %1083 = arith.subf %1081, %1082 : vector<1x32xf32>
    %cst_259 = arith.constant 9.99999974E-6 : f32
    %1084 = vector.broadcast %cst_259 : f32 to vector<1x32xf32>
    %1085 = arith.addf %1083, %1084 : vector<1x32xf32>
    %1086 = math.rsqrt %1085 : vector<1x32xf32>
    %1087 = arith.mulf %2, %1086 : vector<1x32xf32>
    %1088 = arith.mulf %1076, %1087 : vector<1x32xf32>
    %1089 = arith.subf %3, %1088 : vector<1x32xf32>
    %1090 = vector.broadcast %1087 : vector<1x32xf32> to vector<8x32xf32>
    %1091 = arith.mulf %1072, %1090 : vector<8x32xf32>
    %1092 = vector.broadcast %1089 : vector<1x32xf32> to vector<8x32xf32>
    %1093 = arith.addf %1091, %1092 : vector<8x32xf32>
    %cst_260 = arith.constant 0.00999999977 : f32
    %1094 = vector.broadcast %cst_260 : f32 to vector<8x32xf32>
    %1095 = arith.mulf %1094, %1093 : vector<8x32xf32>
    %1096 = arith.maximumf %1093, %1095 : vector<8x32xf32>
    %cst_261 = arith.constant dense<0.000000e+00> : vector<8x32xf32>
    %1097 = tpu.matmul %1096, %4, %cst_261 {dimension_numbers = #tpu.dot_dimension_numbers<[1], [0], [0], [1], [0, 0, 1, 1], [], []>} : vector<8x32xf32>, vector<32x32xf32>, vector<8x32xf32> -> vector<8x32xf32>
    %cst_262 = arith.constant dense<0.000000e+00> : vector<32xf32>
    %1098 = vector.multi_reduction <add>, %1097, %cst_262 [0] : vector<8x32xf32> to vector<32xf32>
    %1099 = vector.shape_cast %1098 : vector<32xf32> to vector<1x32xf32>
    %cst_263 = arith.constant 8.000000e+00 : f32
    %1100 = vector.broadcast %cst_263 : f32 to vector<1x32xf32>
    %1101 = arith.divf %1099, %1100 : vector<1x32xf32>
    %1102 = arith.mulf %1097, %1097 : vector<8x32xf32>
    %cst_264 = arith.constant dense<0.000000e+00> : vector<32xf32>
    %1103 = vector.multi_reduction <add>, %1102, %cst_264 [0] : vector<8x32xf32> to vector<32xf32>
    %1104 = vector.shape_cast %1103 : vector<32xf32> to vector<1x32xf32>
    %cst_265 = arith.constant 8.000000e+00 : f32
    %1105 = vector.broadcast %cst_265 : f32 to vector<1x32xf32>
    %1106 = arith.divf %1104, %1105 : vector<1x32xf32>
    %1107 = arith.mulf %1101, %1101 : vector<1x32xf32>
    %1108 = arith.subf %1106, %1107 : vector<1x32xf32>
    %cst_266 = arith.constant 9.99999974E-6 : f32
    %1109 = vector.broadcast %cst_266 : f32 to vector<1x32xf32>
    %1110 = arith.addf %1108, %1109 : vector<1x32xf32>
    %1111 = math.rsqrt %1110 : vector<1x32xf32>
    %1112 = arith.mulf %5, %1111 : vector<1x32xf32>
    %1113 = arith.mulf %1101, %1112 : vector<1x32xf32>
    %1114 = arith.subf %6, %1113 : vector<1x32xf32>
    %1115 = vector.broadcast %1112 : vector<1x32xf32> to vector<8x32xf32>
    %1116 = arith.mulf %1097, %1115 : vector<8x32xf32>
    %1117 = vector.broadcast %1114 : vector<1x32xf32> to vector<8x32xf32>
    %1118 = arith.addf %1116, %1117 : vector<8x32xf32>
    %cst_267 = arith.constant 0.00999999977 : f32
    %1119 = vector.broadcast %cst_267 : f32 to vector<8x32xf32>
    %1120 = arith.mulf %1119, %1118 : vector<8x32xf32>
    %1121 = arith.maximumf %1118, %1120 : vector<8x32xf32>
    %cst_268 = arith.constant dense<0.000000e+00> : vector<8x2xf32>
    %1122 = tpu.matmul %1121, %7, %cst_268 {dimension_numbers = #tpu.dot_dimension_numbers<[1], [0], [0], [1], [0, 0, 1, 1], [], []>} : vector<8x32xf32>, vector<32x2xf32>, vector<8x2xf32> -> vector<8x2xf32>
    %1123 = vector.broadcast %8 : vector<1x2xf32> to vector<8x2xf32>
    %1124 = arith.addf %1122, %1123 : vector<8x2xf32>
    %1125 = arith.addf %1063, %1124 : vector<8x2xf32>
    %c18_i32 = arith.constant 18 : i32
    %1126 = vector.extract_strided_slice %1125 {offsets = [0, 0], sizes = [8, 1], strides = [1, 1]} : vector<8x2xf32> to vector<8x1xf32>
    %1127 = vector.broadcast %1126 : vector<8x1xf32> to vector<8x32xf32>
    %1128 = vector.broadcast %0 : vector<1x32xf32> to vector<8x32xf32>
    %1129 = arith.mulf %1127, %1128 : vector<8x32xf32>
    %1130 = vector.extract_strided_slice %1125 {offsets = [0, 1], sizes = [8, 1], strides = [1, 1]} : vector<8x2xf32> to vector<8x1xf32>
    %1131 = vector.broadcast %1130 : vector<8x1xf32> to vector<8x32xf32>
    %1132 = vector.broadcast %1 : vector<1x32xf32> to vector<8x32xf32>
    %1133 = arith.mulf %1131, %1132 : vector<8x32xf32>
    %1134 = arith.addf %1129, %1133 : vector<8x32xf32>
    %cst_269 = arith.constant dense<0.000000e+00> : vector<32xf32>
    %1135 = vector.multi_reduction <add>, %1134, %cst_269 [0] : vector<8x32xf32> to vector<32xf32>
    %1136 = vector.shape_cast %1135 : vector<32xf32> to vector<1x32xf32>
    %cst_270 = arith.constant 8.000000e+00 : f32
    %1137 = vector.broadcast %cst_270 : f32 to vector<1x32xf32>
    %1138 = arith.divf %1136, %1137 : vector<1x32xf32>
    %1139 = arith.mulf %1134, %1134 : vector<8x32xf32>
    %cst_271 = arith.constant dense<0.000000e+00> : vector<32xf32>
    %1140 = vector.multi_reduction <add>, %1139, %cst_271 [0] : vector<8x32xf32> to vector<32xf32>
    %1141 = vector.shape_cast %1140 : vector<32xf32> to vector<1x32xf32>
    %cst_272 = arith.constant 8.000000e+00 : f32
    %1142 = vector.broadcast %cst_272 : f32 to vector<1x32xf32>
    %1143 = arith.divf %1141, %1142 : vector<1x32xf32>
    %1144 = arith.mulf %1138, %1138 : vector<1x32xf32>
    %1145 = arith.subf %1143, %1144 : vector<1x32xf32>
    %cst_273 = arith.constant 9.99999974E-6 : f32
    %1146 = vector.broadcast %cst_273 : f32 to vector<1x32xf32>
    %1147 = arith.addf %1145, %1146 : vector<1x32xf32>
    %1148 = math.rsqrt %1147 : vector<1x32xf32>
    %1149 = arith.mulf %2, %1148 : vector<1x32xf32>
    %1150 = arith.mulf %1138, %1149 : vector<1x32xf32>
    %1151 = arith.subf %3, %1150 : vector<1x32xf32>
    %1152 = vector.broadcast %1149 : vector<1x32xf32> to vector<8x32xf32>
    %1153 = arith.mulf %1134, %1152 : vector<8x32xf32>
    %1154 = vector.broadcast %1151 : vector<1x32xf32> to vector<8x32xf32>
    %1155 = arith.addf %1153, %1154 : vector<8x32xf32>
    %cst_274 = arith.constant 0.00999999977 : f32
    %1156 = vector.broadcast %cst_274 : f32 to vector<8x32xf32>
    %1157 = arith.mulf %1156, %1155 : vector<8x32xf32>
    %1158 = arith.maximumf %1155, %1157 : vector<8x32xf32>
    %cst_275 = arith.constant dense<0.000000e+00> : vector<8x32xf32>
    %1159 = tpu.matmul %1158, %4, %cst_275 {dimension_numbers = #tpu.dot_dimension_numbers<[1], [0], [0], [1], [0, 0, 1, 1], [], []>} : vector<8x32xf32>, vector<32x32xf32>, vector<8x32xf32> -> vector<8x32xf32>
    %cst_276 = arith.constant dense<0.000000e+00> : vector<32xf32>
    %1160 = vector.multi_reduction <add>, %1159, %cst_276 [0] : vector<8x32xf32> to vector<32xf32>
    %1161 = vector.shape_cast %1160 : vector<32xf32> to vector<1x32xf32>
    %cst_277 = arith.constant 8.000000e+00 : f32
    %1162 = vector.broadcast %cst_277 : f32 to vector<1x32xf32>
    %1163 = arith.divf %1161, %1162 : vector<1x32xf32>
    %1164 = arith.mulf %1159, %1159 : vector<8x32xf32>
    %cst_278 = arith.constant dense<0.000000e+00> : vector<32xf32>
    %1165 = vector.multi_reduction <add>, %1164, %cst_278 [0] : vector<8x32xf32> to vector<32xf32>
    %1166 = vector.shape_cast %1165 : vector<32xf32> to vector<1x32xf32>
    %cst_279 = arith.constant 8.000000e+00 : f32
    %1167 = vector.broadcast %cst_279 : f32 to vector<1x32xf32>
    %1168 = arith.divf %1166, %1167 : vector<1x32xf32>
    %1169 = arith.mulf %1163, %1163 : vector<1x32xf32>
    %1170 = arith.subf %1168, %1169 : vector<1x32xf32>
    %cst_280 = arith.constant 9.99999974E-6 : f32
    %1171 = vector.broadcast %cst_280 : f32 to vector<1x32xf32>
    %1172 = arith.addf %1170, %1171 : vector<1x32xf32>
    %1173 = math.rsqrt %1172 : vector<1x32xf32>
    %1174 = arith.mulf %5, %1173 : vector<1x32xf32>
    %1175 = arith.mulf %1163, %1174 : vector<1x32xf32>
    %1176 = arith.subf %6, %1175 : vector<1x32xf32>
    %1177 = vector.broadcast %1174 : vector<1x32xf32> to vector<8x32xf32>
    %1178 = arith.mulf %1159, %1177 : vector<8x32xf32>
    %1179 = vector.broadcast %1176 : vector<1x32xf32> to vector<8x32xf32>
    %1180 = arith.addf %1178, %1179 : vector<8x32xf32>
    %cst_281 = arith.constant 0.00999999977 : f32
    %1181 = vector.broadcast %cst_281 : f32 to vector<8x32xf32>
    %1182 = arith.mulf %1181, %1180 : vector<8x32xf32>
    %1183 = arith.maximumf %1180, %1182 : vector<8x32xf32>
    %cst_282 = arith.constant dense<0.000000e+00> : vector<8x2xf32>
    %1184 = tpu.matmul %1183, %7, %cst_282 {dimension_numbers = #tpu.dot_dimension_numbers<[1], [0], [0], [1], [0, 0, 1, 1], [], []>} : vector<8x32xf32>, vector<32x2xf32>, vector<8x2xf32> -> vector<8x2xf32>
    %1185 = vector.broadcast %8 : vector<1x2xf32> to vector<8x2xf32>
    %1186 = arith.addf %1184, %1185 : vector<8x2xf32>
    %1187 = arith.addf %1125, %1186 : vector<8x2xf32>
    %c19_i32 = arith.constant 19 : i32
    %1188 = vector.extract_strided_slice %1187 {offsets = [0, 0], sizes = [8, 1], strides = [1, 1]} : vector<8x2xf32> to vector<8x1xf32>
    %1189 = vector.broadcast %1188 : vector<8x1xf32> to vector<8x32xf32>
    %1190 = vector.broadcast %0 : vector<1x32xf32> to vector<8x32xf32>
    %1191 = arith.mulf %1189, %1190 : vector<8x32xf32>
    %1192 = vector.extract_strided_slice %1187 {offsets = [0, 1], sizes = [8, 1], strides = [1, 1]} : vector<8x2xf32> to vector<8x1xf32>
    %1193 = vector.broadcast %1192 : vector<8x1xf32> to vector<8x32xf32>
    %1194 = vector.broadcast %1 : vector<1x32xf32> to vector<8x32xf32>
    %1195 = arith.mulf %1193, %1194 : vector<8x32xf32>
    %1196 = arith.addf %1191, %1195 : vector<8x32xf32>
    %cst_283 = arith.constant dense<0.000000e+00> : vector<32xf32>
    %1197 = vector.multi_reduction <add>, %1196, %cst_283 [0] : vector<8x32xf32> to vector<32xf32>
    %1198 = vector.shape_cast %1197 : vector<32xf32> to vector<1x32xf32>
    %cst_284 = arith.constant 8.000000e+00 : f32
    %1199 = vector.broadcast %cst_284 : f32 to vector<1x32xf32>
    %1200 = arith.divf %1198, %1199 : vector<1x32xf32>
    %1201 = arith.mulf %1196, %1196 : vector<8x32xf32>
    %cst_285 = arith.constant dense<0.000000e+00> : vector<32xf32>
    %1202 = vector.multi_reduction <add>, %1201, %cst_285 [0] : vector<8x32xf32> to vector<32xf32>
    %1203 = vector.shape_cast %1202 : vector<32xf32> to vector<1x32xf32>
    %cst_286 = arith.constant 8.000000e+00 : f32
    %1204 = vector.broadcast %cst_286 : f32 to vector<1x32xf32>
    %1205 = arith.divf %1203, %1204 : vector<1x32xf32>
    %1206 = arith.mulf %1200, %1200 : vector<1x32xf32>
    %1207 = arith.subf %1205, %1206 : vector<1x32xf32>
    %cst_287 = arith.constant 9.99999974E-6 : f32
    %1208 = vector.broadcast %cst_287 : f32 to vector<1x32xf32>
    %1209 = arith.addf %1207, %1208 : vector<1x32xf32>
    %1210 = math.rsqrt %1209 : vector<1x32xf32>
    %1211 = arith.mulf %2, %1210 : vector<1x32xf32>
    %1212 = arith.mulf %1200, %1211 : vector<1x32xf32>
    %1213 = arith.subf %3, %1212 : vector<1x32xf32>
    %1214 = vector.broadcast %1211 : vector<1x32xf32> to vector<8x32xf32>
    %1215 = arith.mulf %1196, %1214 : vector<8x32xf32>
    %1216 = vector.broadcast %1213 : vector<1x32xf32> to vector<8x32xf32>
    %1217 = arith.addf %1215, %1216 : vector<8x32xf32>
    %cst_288 = arith.constant 0.00999999977 : f32
    %1218 = vector.broadcast %cst_288 : f32 to vector<8x32xf32>
    %1219 = arith.mulf %1218, %1217 : vector<8x32xf32>
    %1220 = arith.maximumf %1217, %1219 : vector<8x32xf32>
    %cst_289 = arith.constant dense<0.000000e+00> : vector<8x32xf32>
    %1221 = tpu.matmul %1220, %4, %cst_289 {dimension_numbers = #tpu.dot_dimension_numbers<[1], [0], [0], [1], [0, 0, 1, 1], [], []>} : vector<8x32xf32>, vector<32x32xf32>, vector<8x32xf32> -> vector<8x32xf32>
    %cst_290 = arith.constant dense<0.000000e+00> : vector<32xf32>
    %1222 = vector.multi_reduction <add>, %1221, %cst_290 [0] : vector<8x32xf32> to vector<32xf32>
    %1223 = vector.shape_cast %1222 : vector<32xf32> to vector<1x32xf32>
    %cst_291 = arith.constant 8.000000e+00 : f32
    %1224 = vector.broadcast %cst_291 : f32 to vector<1x32xf32>
    %1225 = arith.divf %1223, %1224 : vector<1x32xf32>
    %1226 = arith.mulf %1221, %1221 : vector<8x32xf32>
    %cst_292 = arith.constant dense<0.000000e+00> : vector<32xf32>
    %1227 = vector.multi_reduction <add>, %1226, %cst_292 [0] : vector<8x32xf32> to vector<32xf32>
    %1228 = vector.shape_cast %1227 : vector<32xf32> to vector<1x32xf32>
    %cst_293 = arith.constant 8.000000e+00 : f32
    %1229 = vector.broadcast %cst_293 : f32 to vector<1x32xf32>
    %1230 = arith.divf %1228, %1229 : vector<1x32xf32>
    %1231 = arith.mulf %1225, %1225 : vector<1x32xf32>
    %1232 = arith.subf %1230, %1231 : vector<1x32xf32>
    %cst_294 = arith.constant 9.99999974E-6 : f32
    %1233 = vector.broadcast %cst_294 : f32 to vector<1x32xf32>
    %1234 = arith.addf %1232, %1233 : vector<1x32xf32>
    %1235 = math.rsqrt %1234 : vector<1x32xf32>
    %1236 = arith.mulf %5, %1235 : vector<1x32xf32>
    %1237 = arith.mulf %1225, %1236 : vector<1x32xf32>
    %1238 = arith.subf %6, %1237 : vector<1x32xf32>
    %1239 = vector.broadcast %1236 : vector<1x32xf32> to vector<8x32xf32>
    %1240 = arith.mulf %1221, %1239 : vector<8x32xf32>
    %1241 = vector.broadcast %1238 : vector<1x32xf32> to vector<8x32xf32>
    %1242 = arith.addf %1240, %1241 : vector<8x32xf32>
    %cst_295 = arith.constant 0.00999999977 : f32
    %1243 = vector.broadcast %cst_295 : f32 to vector<8x32xf32>
    %1244 = arith.mulf %1243, %1242 : vector<8x32xf32>
    %1245 = arith.maximumf %1242, %1244 : vector<8x32xf32>
    %cst_296 = arith.constant dense<0.000000e+00> : vector<8x2xf32>
    %1246 = tpu.matmul %1245, %7, %cst_296 {dimension_numbers = #tpu.dot_dimension_numbers<[1], [0], [0], [1], [0, 0, 1, 1], [], []>} : vector<8x32xf32>, vector<32x2xf32>, vector<8x2xf32> -> vector<8x2xf32>
    %1247 = vector.broadcast %8 : vector<1x2xf32> to vector<8x2xf32>
    %1248 = arith.addf %1246, %1247 : vector<8x2xf32>
    %1249 = arith.addf %1187, %1248 : vector<8x2xf32>
    %cst_297 = arith.constant dense<0xFF800000> : vector<8xf32>
    %1250 = vector.multi_reduction <maximumf>, %1249, %cst_297 [1] : vector<8x2xf32> to vector<8xf32>
    %1251 = vector.shape_cast %1250 : vector<8xf32> to vector<8x1xf32>
    %1252 = vector.broadcast %1251 : vector<8x1xf32> to vector<8x2xf32>
    %1253 = arith.subf %1249, %1252 : vector<8x2xf32>
    %1254 = math.exp %1253 : vector<8x2xf32>
    %cst_298 = arith.constant dense<0.000000e+00> : vector<8xf32>
    %1255 = vector.multi_reduction <add>, %1254, %cst_298 [1] : vector<8x2xf32> to vector<8xf32>
    %1256 = vector.shape_cast %1255 : vector<8xf32> to vector<8x1xf32>
    %1257 = vector.broadcast %1256 : vector<8x1xf32> to vector<8x2xf32>
    %1258 = arith.divf %1254, %1257 : vector<8x2xf32>
    %c0_299 = arith.constant 0 : index
    %c0_300 = arith.constant 0 : index
    %1259 = vector.load %arg9[%c0_299, %c0_300] : memref<8x2xf32, #tpu.memory_space<vmem>>, vector<8x2xf32>
    tpu.vector_store %arg9[%c0_299, %c0_300], %1258 {strides = array<i32>} : memref<8x2xf32, #tpu.memory_space<vmem>>, vector<8x2xf32>,
    return
  }
}

</mosaic_0001>

<bundles_post_ra>
// kernel: tpu_custom_call.1
= control target key start
LH: loop header
LB: loop body
LE: loop exit
PB: predicated region body
PF: predicated region fallthrough
CT: control target
= control target key end

     0   :  { %v5899_v0 = vmov 0   ;;  %v5900_v2 = vmov 1   ;;  %v5901_v6 = vmov 0.0|0.0   ;;  %vm5902_vm0 = vmmov 0   ;;  %s6822_s0 = inlined_call_operand.vmem [shape: f32[8,2], index: 0, kind: input, shape index: {}]   ;;  %s6823_s4 = inlined_call_operand.vmem [shape: f32[32,32], index: 4, kind: input, shape index: {}]   ;;  %s6824_s1 = inlined_call_operand.vmem [shape: f32[2,32], index: 1, kind: input, shape index: {}]   ;;  %s6825_s2 = inlined_call_operand.vmem [shape: f32[1,32], index: 2, kind: input, shape index: {}]   ;;  %s6826_s3 = inlined_call_operand.vmem [shape: f32[1,32], index: 3, kind: input, shape index: {}]   ;;  %s6827_s7 = inlined_call_operand.vmem [shape: f32[32,2], index: 7, kind: input, shape index: {}]   ;;  %s6828_s5 = inlined_call_operand.vmem [shape: f32[1,32], index: 5, kind: input, shape index: {}]   ;;  %s6829_s6 = inlined_call_operand.vmem [shape: f32[1,32], index: 6, kind: input, shape index: {}]   ;;  %s6830_s8 = inlined_call_operand.vmem [shape: f32[1,2], index: 8, kind: input, shape index: {}]   ;;  %s6831_s9 = inlined_call_operand.vmem [shape: f32[8,2], index: 9, kind: output, shape index: {}]  }
   0x1   :  { %5789 = vset.pattern.permute.xlu0 %v5899_v0  ;;  %v5958_v1 = vld [vmem:[%s6822_s0] sm:$0xff]  ;;  %5791 = vset.pattern.permute.xlu1 %v5899_v0  ;;  %v37_v4 = vld [vmem:[%s6823_s4 + $0x8] sm:$0xff]  ;;  %v38_v7 = vld [vmem:[%s6823_s4 + $0x10] sm:$0xff]  ;;  %v5903_v10 = vmov 0.0   ;;  %vm68_vm1 = vcmask 261120   ;;  %v95_v38 = vlaneseq  ;;  %vm4844_vm2 = vcmask 15360  }
   0x2   :  { %50 = vperm.xlu0 %5789, %v5958_v1   ;;  %v36_v3 = vld [vmem:[%s6823_s4] sm:$0xff]  ;;  %5544 = vmatprep.subr.bf16.mxu0 %v5901_v6  ;;  %v39_v8 = vld [vmem:[%s6823_s4 + $0x18] sm:$0xff]  ;;  %v43_v54 = vld [vmem:[%s6827_s7 + $0x8] sm:$0xff] }
   0x3   :  { %v5970_v5 = vpack.c.bf16 %v37_v4, %v36_v3  ;;  %5550 = vmatprep.subr.bf16.mxu1 %v5901_v6  ;;  %v5982_v9 = vpack.c.bf16 %v39_v8, %v38_v7  ;;  %5112 = vmatprep.mubr.msk.f32.mxu0 %vm5902_vm0, %v5903_v10  ;;  %v5993_v12 = vld [vmem:[%s6824_s1] ss:$0 sm:$0xff]  ;;  %v5998_v13 = vld [vmem:[%s6824_s1 + $0x1] ss:$0 sm:$0xff]  ;;  %v96_v39 = vshrl.u32 %v95_v38, 7  ;;  %v44_v56 = vld [vmem:[%s6827_s7 + $0x10] sm:$0xff] }
   0x4   :  { %5123 = vmatprep.mubr.msk.f32.mxu1 %vm5902_vm0, %v5903_v10  ;;  %v6007_v40 = vld [vmem:[%s6825_s2] sm:$0x1]  ;;  %v45_v57 = vld [vmem:[%s6827_s7 + $0x18] sm:$0xff] }
   0x5   :  { %5546 = vmatpush3.bf16.msra.mxu0 %v5970_v5  ;;  %v6009_v41 = vsub.s32 0, %v96_v39  ;;  %v6015_v44 = vld [vmem:[%s6826_s3] sm:$0x1]  ;;  %v6043_v58 = vpack.c.bf16 %v45_v57, %v44_v56 }
   0x6   :  { %5790 = vset.pattern.permute.xlu0 %v5900_v2  ;;  %5547 = vmatprep.subr.bf16.mxu0 %v5901_v6  ;;  %v42_v53 = vld [vmem:[%s6827_s7] sm:$0xff] }
   0x7   :  { %59 = vperm.xlu0 %5790, %v5958_v1   ;;  %v6033_v55 = vpack.c.bf16 %v43_v54, %v42_v53  ;;  %v6073_v38 = vld [vmem:[%s6830_s8] ss:$0 sm:$0xff] }
   0x9   :  { %5549 = vmatpush3.bf16.msra.mxu0 %v5982_v9  ;;  %5552 = vmatpush3.bf16.msra.mxu1 %v6033_v55 }
   0xa   :  { %5556 = vmatprep.subr.bf16.mxu0 %v5901_v6  ;;  %5553 = vmatprep.subr.bf16.mxu1 %v5901_v6 }
   0xd   :  { %5555 = vmatpush3.bf16.msra.mxu1 %v6043_v58 }
   0xe   :  { %5562 = vmatprep.subr.bf16.mxu1 %v5901_v6 }
  0x81   :  { %v51_v11 = vpop.permute.xlu0 %50 }
  0x82   :  { %v57_v15 = vmul.f32 %v5993_v12, %v51_v11 }
  0x86   :  { %v60_v14 = vpop.permute.xlu0 %59 }
  0x87   :  { %v66_v16 = vmul.f32 %v5998_v13, %v60_v14 }
  0x89   :  { %v67_v17 = vadd.f32 %v66_v16, %v57_v15 }
  0x8b   :  { %v69_v18 = vsel %vm68_vm1, %v67_v17, 0.0  ;;  %v78_v19 = vmul.f32 %v67_v17, %v67_v17 }
  0x8c   :  { %v70_v20 = vrot.slane %v69_v18, 4 }
  0x8d   :  { %v79_v21 = vsel %vm68_vm1, %v78_v19, 0.0 }
  0x8e   :  { %v71_v22 = vadd.f32 %v70_v20, %v69_v18  ;;  %v80_v23 = vrot.slane %v79_v21, 4 }
  0x90   :  { %v72_v24 = vrot.slane %v71_v22, 2  ;;  %v81_v25 = vadd.f32 %v80_v23, %v79_v21 }
  0x92   :  { %v73_v26 = vadd.f32 %v72_v24, %v71_v22  ;;  %v82_v27 = vrot.slane %v81_v25, 2 }
  0x94   :  { %v74_v28 = vrot.slane %v73_v26, 1  ;;  %v83_v29 = vadd.f32 %v82_v27, %v81_v25 }
  0x96   :  { %v75_v30 = vadd.f32 %v74_v28, %v73_v26  ;;  %v84_v31 = vrot.slane %v83_v29, 1  ;;  %v6052_v26 = vld [vmem:[%s6828_s5] sm:$0x1] }
  0x98   :  { %v77_v32 = vmul.f32 0.125, %v75_v30  ;;  %v85_v33 = vadd.f32 %v84_v31, %v83_v29  ;;  %v6058_v29 = vld [vmem:[%s6829_s6] sm:$0x1] }
  0x9a   :  { %v86_v34 = vmul.f32 0.125, %v85_v33  ;;  %v87_v35 = vmul.f32 %v77_v32, %v77_v32 }
  0x9c   :  { %v88_v36 = vsub.f32 %v86_v34, %v87_v35 }
  0x9e   :  { %v89_v37 = vadd.f32 1e-05, %v88_v36 }
  0xa0   :  { %5794 = vrsqrt.f32 %v89_v37 }
  0xaa   :  { %v5795_v42 = vpop.eup %5794 }
  0xab   :  { %v91_v43 = vmul.f32 %v5795_v42, %v6007_v40 }
  0xad   :  { %v92_v45 = vmul.f32 %v91_v43, %v77_v32  ;;  %v98_v46 = vrot.slane %v91_v43, %v6009_v41 }
  0xaf   :  { %v93_v47 = vsub.f32 %v6015_v44, %v92_v45  ;;  %v100_v48 = vmul.f32 %v98_v46, %v67_v17 }
  0xb1   :  { %v105_v49 = vrot.slane %v93_v47, %v6009_v41 }
  0xb3   :  { %v107_v50 = vadd.f32 %v105_v49, %v100_v48 }
  0xb5   :  { %v108_v51 = vmul.f32 0.01, %v107_v50 }
  0xb7   :  { %v109_v52 = vmax.f32 %v107_v50, %v108_v51 }
  0xb9   :  { %5113 = vmatmul.mubr.msk.f32.vlgmr.msra.gmra.mrb[0].mxu0 %vm68_vm1, %v109_v52 }
  0xba   :  { %5558 = vmatpush3.bf16.msra.mxu0 %v5970_v5  ;;  %5134 = vmatprep.mubr.msk.f32.mxu0 %vm5902_vm0, %v5903_v10 }
  0xbb   :  { %5559 = vmatprep.subr.bf16.mxu0 %v5901_v6 }
  0xbe   :  { %5561 = vmatpush3.bf16.msra.mxu0 %v5982_v9 }
  0xbf   :  { %5568 = vmatprep.subr.bf16.mxu0 %v5901_v6 }
 0x18c   :  { %v179_v59 = vpop.f32.mrb[0].mxu0 }
 0x18d   :  { %v183_v60 = vsel %vm68_vm1, %v179_v59, 0.0  ;;  %v191_v61 = vmul.f32 %v179_v59, %v179_v59  ;;  %v5114_v62 = vpop.f32.mrb[1].mxu0 }
 0x18e   :  { %v184_v63 = vrot.slane %v183_v60, 4 }
 0x18f   :  { %v192_v3 = vsel %vm68_vm1, %v191_v61, 0.0 }
 0x190   :  { %v185_v4 = vadd.f32 %v184_v63, %v183_v60  ;;  %v193_v7 = vrot.slane %v192_v3, 4 }
 0x192   :  { %v186_v8 = vrot.slane %v185_v4, 2  ;;  %v194_v11 = vadd.f32 %v193_v7, %v192_v3 }
 0x194   :  { %v187_v14 = vadd.f32 %v186_v8, %v185_v4  ;;  %v195_v15 = vrot.slane %v194_v11, 2 }
 0x196   :  { %v188_v16 = vrot.slane %v187_v14, 1  ;;  %v196_v17 = vadd.f32 %v195_v15, %v194_v11 }
 0x198   :  { %v189_v18 = vadd.f32 %v188_v16, %v187_v14  ;;  %v197_v19 = vrot.slane %v196_v17, 1 }
 0x19a   :  { %v190_v20 = vmul.f32 0.125, %v189_v18  ;;  %v198_v21 = vadd.f32 %v197_v19, %v196_v17 }
 0x19c   :  { %v199_v22 = vmul.f32 0.125, %v198_v21  ;;  %v200_v23 = vmul.f32 %v190_v20, %v190_v20 }
 0x19e   :  { %v201_v24 = vsub.f32 %v199_v22, %v200_v23 }
 0x1a0   :  { %v202_v25 = vadd.f32 1e-05, %v201_v24 }
 0x1a2   :  { %5796 = vrsqrt.f32 %v202_v25 }
 0x1ac   :  { %v5797_v27 = vpop.eup %5796 }
 0x1ad   :  { %v204_v28 = vmul.f32 %v5797_v27, %v6052_v26 }
 0x1af   :  { %v205_v30 = vmul.f32 %v204_v28, %v190_v20  ;;  %v211_v31 = vrot.slane %v204_v28, %v6009_v41 }
 0x1b1   :  { %v206_v32 = vsub.f32 %v6058_v29, %v205_v30  ;;  %v213_v33 = vmul.f32 %v211_v31, %v179_v59 }
 0x1b3   :  { %v218_v34 = vrot.slane %v206_v32, %v6009_v41 }
 0x1b5   :  { %v220_v35 = vadd.f32 %v218_v34, %v213_v33 }
 0x1b7   :  { %v221_v36 = vmul.f32 0.01, %v220_v35 }
 0x1b9   :  { %v222_v37 = vmax.f32 %v220_v35, %v221_v36 }
 0x1bb   :  { %5124 = vmatmul.mubr.msk.f32.vlgmr.msra.gmra.mrb[0].mxu1 %vm68_vm1, %v222_v37 }
 0x1bc   :  { %5564 = vmatpush3.bf16.msra.mxu1 %v6033_v55  ;;  %5145 = vmatprep.mubr.msk.f32.mxu1 %vm5902_vm0, %v5903_v10 }
 0x1bd   :  { %5565 = vmatprep.subr.bf16.mxu1 %v5901_v6 }
 0x1c0   :  { %5567 = vmatpush3.bf16.msra.mxu1 %v6043_v58 }
 0x1c1   :  { %5574 = vmatprep.subr.bf16.mxu1 %v5901_v6 }
 0x28e   :  { %v298_v39 = vpop.f32.mrb[0].mxu1 }
 0x28f   :  { %v299_v42 = vadd.f32 %v6073_v38, %v298_v39  ;;  %v5125_v43 = vpop.f32.mrb[1].mxu1 }
 0x291   :  { %v6077_v45 = vadd.f32 %v299_v42, %v5958_v1 }
 0x293   :  { %305 = vperm.xlu1 %5791, %v6077_v45  }
 0x297   :  { %5792 = vset.pattern.permute.xlu1 %v5900_v2 }
 0x298   :  { %310 = vperm.xlu1 %5792, %v6077_v45  }
 0x29c   :  { %5793 = vset.pattern.permute.xlu1 %v5899_v0 }
 0x312   :  { %v306_v46 = vpop.permute.xlu1 %305 }
 0x313   :  { %v308_v48 = vmul.f32 %v5993_v12, %v306_v46 }
 0x317   :  { %v311_v47 = vpop.permute.xlu1 %310 }
 0x318   :  { %v313_v49 = vmul.f32 %v5998_v13, %v311_v47 }
 0x31a   :  { %v314_v50 = vadd.f32 %v313_v49, %v308_v48 }
 0x31c   :  { %v315_v51 = vsel %vm68_vm1, %v314_v50, 0.0  ;;  %v323_v52 = vmul.f32 %v314_v50, %v314_v50 }
 0x31d   :  { %v316_v1 = vrot.slane %v315_v51, 4 }
 0x31e   :  { %v324_v53 = vsel %vm68_vm1, %v323_v52, 0.0 }
 0x31f   :  { %v317_v54 = vadd.f32 %v316_v1, %v315_v51  ;;  %v325_v56 = vrot.slane %v324_v53, 4 }
 0x321   :  { %v318_v2 = vrot.slane %v317_v54, 2  ;;  %v326_v57 = vadd.f32 %v325_v56, %v324_v53 }
 0x323   :  { %v319_v59 = vadd.f32 %v318_v2, %v317_v54  ;;  %v327_v60 = vrot.slane %v326_v57, 2 }
 0x325   :  { %v320_v0 = vrot.slane %v319_v59, 1  ;;  %v328_v61 = vadd.f32 %v327_v60, %v326_v57 }
 0x327   :  { %v321_v62 = vadd.f32 %v320_v0, %v319_v59  ;;  %v329_v63 = vrot.slane %v328_v61, 1 }
 0x329   :  { %v322_v3 = vmul.f32 0.125, %v321_v62  ;;  %v330_v4 = vadd.f32 %v329_v63, %v328_v61 }
 0x32b   :  { %v331_v7 = vmul.f32 0.125, %v330_v4  ;;  %v332_v8 = vmul.f32 %v322_v3, %v322_v3 }
 0x32d   :  { %v333_v11 = vsub.f32 %v331_v7, %v332_v8 }
 0x32f   :  { %v334_v14 = vadd.f32 1e-05, %v333_v11 }
 0x331   :  { %5798 = vrsqrt.f32 %v334_v14 }
 0x33b   :  { %v5799_v15 = vpop.eup %5798 }
 0x33c   :  { %v336_v16 = vmul.f32 %v5799_v15, %v6007_v40 }
 0x33e   :  { %v337_v17 = vmul.f32 %v336_v16, %v322_v3  ;;  %v343_v18 = vrot.slane %v336_v16, %v6009_v41 }
 0x340   :  { %v338_v19 = vsub.f32 %v6015_v44, %v337_v17  ;;  %v345_v20 = vmul.f32 %v343_v18, %v314_v50 }
 0x342   :  { %v350_v21 = vrot.slane %v338_v19, %v6009_v41 }
 0x344   :  { %v352_v22 = vadd.f32 %v350_v21, %v345_v20 }
 0x346   :  { %v353_v23 = vmul.f32 0.01, %v352_v22 }
 0x348   :  { %v354_v24 = vmax.f32 %v352_v22, %v353_v23 }
 0x34a   :  { %5135 = vmatmul.mubr.msk.f32.vlgmr.msra.gmra.mrb[2].mxu0 %vm68_vm1, %v354_v24 }
 0x34b   :  { %5570 = vmatpush3.bf16.msra.mxu0 %v5970_v5  ;;  %5156 = vmatprep.mubr.msk.f32.mxu0 %vm5902_vm0, %v5903_v10 }
 0x34c   :  { %5571 = vmatprep.subr.bf16.mxu0 %v5901_v6 }
 0x34f   :  { %5573 = vmatpush3.bf16.msra.mxu0 %v5982_v9 }
 0x350   :  { %5580 = vmatprep.subr.bf16.mxu0 %v5901_v6 }
 0x41d   :  { %v424_v25 = vpop.f32.mrb[2].mxu0 }
 0x41e   :  { %v428_v27 = vsel %vm68_vm1, %v424_v25, 0.0  ;;  %v436_v28 = vmul.f32 %v424_v25, %v424_v25  ;;  %v5136_v30 = vpop.f32.mrb[3].mxu0 }
 0x41f   :  { %v429_v31 = vrot.slane %v428_v27, 4 }
 0x420   :  { %v437_v32 = vsel %vm68_vm1, %v436_v28, 0.0 }
 0x421   :  { %v430_v33 = vadd.f32 %v429_v31, %v428_v27  ;;  %v438_v34 = vrot.slane %v437_v32, 4 }
 0x423   :  { %v431_v35 = vrot.slane %v430_v33, 2  ;;  %v439_v36 = vadd.f32 %v438_v34, %v437_v32 }
 0x425   :  { %v432_v37 = vadd.f32 %v431_v35, %v430_v33  ;;  %v440_v39 = vrot.slane %v439_v36, 2 }
 0x427   :  { %v433_v42 = vrot.slane %v432_v37, 1  ;;  %v441_v43 = vadd.f32 %v440_v39, %v439_v36 }
 0x429   :  { %v434_v46 = vadd.f32 %v433_v42, %v432_v37  ;;  %v442_v47 = vrot.slane %v441_v43, 1 }
 0x42b   :  { %v435_v48 = vmul.f32 0.125, %v434_v46  ;;  %v443_v49 = vadd.f32 %v442_v47, %v441_v43 }
 0x42d   :  { %v444_v50 = vmul.f32 0.125, %v443_v49  ;;  %v445_v51 = vmul.f32 %v435_v48, %v435_v48 }
 0x42f   :  { %v446_v52 = vsub.f32 %v444_v50, %v445_v51 }
 0x431   :  { %v447_v1 = vadd.f32 1e-05, %v446_v52 }
 0x433   :  { %5800 = vrsqrt.f32 %v447_v1 }
 0x43d   :  { %v5801_v53 = vpop.eup %5800 }
 0x43e   :  { %v449_v54 = vmul.f32 %v5801_v53, %v6052_v26 }
 0x440   :  { %v450_v56 = vmul.f32 %v449_v54, %v435_v48  ;;  %v456_v2 = vrot.slane %v449_v54, %v6009_v41 }
 0x442   :  { %v451_v57 = vsub.f32 %v6058_v29, %v450_v56  ;;  %v458_v59 = vmul.f32 %v456_v2, %v424_v25 }
 0x444   :  { %v463_v60 = vrot.slane %v451_v57, %v6009_v41 }
 0x446   :  { %v465_v0 = vadd.f32 %v463_v60, %v458_v59 }
 0x448   :  { %v466_v61 = vmul.f32 0.01, %v465_v0 }
 0x44a   :  { %v467_v62 = vmax.f32 %v465_v0, %v466_v61 }
 0x44c   :  { %5146 = vmatmul.mubr.msk.f32.vlgmr.msra.gmra.mrb[2].mxu1 %vm68_vm1, %v467_v62 }
 0x44d   :  { %5576 = vmatpush3.bf16.msra.mxu1 %v6033_v55  ;;  %5167 = vmatprep.mubr.msk.f32.mxu1 %vm5902_vm0, %v5903_v10 }
 0x44e   :  { %5577 = vmatprep.subr.bf16.mxu1 %v5901_v6 }
 0x451   :  { %5579 = vmatpush3.bf16.msra.mxu1 %v6043_v58 }
 0x452   :  { %5586 = vmatprep.subr.bf16.mxu1 %v5901_v6 }
 0x51f   :  { %v537_v63 = vpop.f32.mrb[2].mxu1 }
 0x520   :  { %v538_v3 = vadd.f32 %v6073_v38, %v537_v63  ;;  %v5147_v4 = vpop.f32.mrb[3].mxu1 }
 0x522   :  { %v6113_v7 = vadd.f32 %v538_v3, %v6077_v45 }
 0x524   :  { %549 = vperm.xlu0 %5790, %v6113_v7   ;;  %544 = vperm.xlu1 %5793, %v6113_v7  }
 0x5a3   :  { %v550_v8 = vpop.permute.xlu0 %549  ;;  %v545_v11 = vpop.permute.xlu1 %544 }
 0x5a4   :  { %v552_v14 = vmul.f32 %v5998_v13, %v550_v8  ;;  %v547_v15 = vmul.f32 %v5993_v12, %v545_v11 }
 0x5a6   :  { %v553_v16 = vadd.f32 %v552_v14, %v547_v15 }
 0x5a8   :  { %v554_v17 = vsel %vm68_vm1, %v553_v16, 0.0  ;;  %v562_v18 = vmul.f32 %v553_v16, %v553_v16 }
 0x5a9   :  { %v555_v19 = vrot.slane %v554_v17, 4 }
 0x5aa   :  { %v563_v20 = vsel %vm68_vm1, %v562_v18, 0.0 }
 0x5ab   :  { %v556_v21 = vadd.f32 %v555_v19, %v554_v17  ;;  %v564_v45 = vrot.slane %v563_v20, 4 }
 0x5ad   :  { %v557_v22 = vrot.slane %v556_v21, 2  ;;  %v565_v23 = vadd.f32 %v564_v45, %v563_v20 }
 0x5af   :  { %v558_v24 = vadd.f32 %v557_v22, %v556_v21  ;;  %v566_v25 = vrot.slane %v565_v23, 2 }
 0x5b1   :  { %v559_v27 = vrot.slane %v558_v24, 1  ;;  %v567_v28 = vadd.f32 %v566_v25, %v565_v23 }
 0x5b3   :  { %v560_v30 = vadd.f32 %v559_v27, %v558_v24  ;;  %v568_v31 = vrot.slane %v567_v28, 1 }
 0x5b5   :  { %v561_v32 = vmul.f32 0.125, %v560_v30  ;;  %v569_v33 = vadd.f32 %v568_v31, %v567_v28 }
 0x5b7   :  { %v570_v34 = vmul.f32 0.125, %v569_v33  ;;  %v571_v35 = vmul.f32 %v561_v32, %v561_v32 }
 0x5b9   :  { %v572_v36 = vsub.f32 %v570_v34, %v571_v35 }
 0x5bb   :  { %v573_v37 = vadd.f32 1e-05, %v572_v36 }
 0x5bd   :  { %5802 = vrsqrt.f32 %v573_v37 }
 0x5c7   :  { %v5803_v39 = vpop.eup %5802 }
 0x5c8   :  { %v575_v42 = vmul.f32 %v5803_v39, %v6007_v40 }
 0x5ca   :  { %v576_v43 = vmul.f32 %v575_v42, %v561_v32  ;;  %v582_v46 = vrot.slane %v575_v42, %v6009_v41 }
 0x5cc   :  { %v577_v47 = vsub.f32 %v6015_v44, %v576_v43  ;;  %v584_v48 = vmul.f32 %v582_v46, %v553_v16 }
 0x5ce   :  { %v589_v49 = vrot.slane %v577_v47, %v6009_v41 }
 0x5d0   :  { %v591_v50 = vadd.f32 %v589_v49, %v584_v48 }
 0x5d2   :  { %v592_v51 = vmul.f32 0.01, %v591_v50 }
 0x5d4   :  { %v593_v52 = vmax.f32 %v591_v50, %v592_v51 }
 0x5d6   :  { %5157 = vmatmul.mubr.msk.f32.vlgmr.msra.gmra.mrb[4].mxu0 %vm68_vm1, %v593_v52 }
 0x5d7   :  { %5582 = vmatpush3.bf16.msra.mxu0 %v5970_v5  ;;  %5178 = vmatprep.mubr.msk.f32.mxu0 %vm5902_vm0, %v5903_v10 }
 0x5d8   :  { %5583 = vmatprep.subr.bf16.mxu0 %v5901_v6 }
 0x5db   :  { %5585 = vmatpush3.bf16.msra.mxu0 %v5982_v9 }
 0x5dc   :  { %5592 = vmatprep.subr.bf16.mxu0 %v5901_v6 }
 0x6a9   :  { %v663_v1 = vpop.f32.mrb[4].mxu0 }
 0x6aa   :  { %v667_v53 = vsel %vm68_vm1, %v663_v1, 0.0  ;;  %v675_v54 = vmul.f32 %v663_v1, %v663_v1  ;;  %v5158_v56 = vpop.f32.mrb[5].mxu0 }
 0x6ab   :  { %v668_v2 = vrot.slane %v667_v53, 4 }
 0x6ac   :  { %v676_v57 = vsel %vm68_vm1, %v675_v54, 0.0 }
 0x6ad   :  { %v669_v59 = vadd.f32 %v668_v2, %v667_v53  ;;  %v677_v60 = vrot.slane %v676_v57, 4 }
 0x6af   :  { %v670_v0 = vrot.slane %v669_v59, 2  ;;  %v678_v61 = vadd.f32 %v677_v60, %v676_v57 }
 0x6b1   :  { %v671_v62 = vadd.f32 %v670_v0, %v669_v59  ;;  %v679_v63 = vrot.slane %v678_v61, 2 }
 0x6b3   :  { %v672_v3 = vrot.slane %v671_v62, 1  ;;  %v680_v4 = vadd.f32 %v679_v63, %v678_v61 }
 0x6b5   :  { %v673_v8 = vadd.f32 %v672_v3, %v671_v62  ;;  %v681_v11 = vrot.slane %v680_v4, 1 }
 0x6b7   :  { %v674_v14 = vmul.f32 0.125, %v673_v8  ;;  %v682_v15 = vadd.f32 %v681_v11, %v680_v4 }
 0x6b9   :  { %v683_v16 = vmul.f32 0.125, %v682_v15  ;;  %v684_v17 = vmul.f32 %v674_v14, %v674_v14 }
 0x6bb   :  { %v685_v18 = vsub.f32 %v683_v16, %v684_v17 }
 0x6bd   :  { %v686_v19 = vadd.f32 1e-05, %v685_v18 }
 0x6bf   :  { %5804 = vrsqrt.f32 %v686_v19 }
 0x6c9   :  { %v5805_v20 = vpop.eup %5804 }
 0x6ca   :  { %v688_v21 = vmul.f32 %v5805_v20, %v6052_v26 }
 0x6cc   :  { %v689_v45 = vmul.f32 %v688_v21, %v674_v14  ;;  %v695_v22 = vrot.slane %v688_v21, %v6009_v41 }
 0x6ce   :  { %v690_v23 = vsub.f32 %v6058_v29, %v689_v45  ;;  %v697_v24 = vmul.f32 %v695_v22, %v663_v1 }
 0x6d0   :  { %v702_v25 = vrot.slane %v690_v23, %v6009_v41 }
 0x6d2   :  { %v704_v27 = vadd.f32 %v702_v25, %v697_v24 }
 0x6d4   :  { %v705_v28 = vmul.f32 0.01, %v704_v27 }
 0x6d6   :  { %v706_v30 = vmax.f32 %v704_v27, %v705_v28 }
 0x6d8   :  { %5168 = vmatmul.mubr.msk.f32.vlgmr.msra.gmra.mrb[4].mxu1 %vm68_vm1, %v706_v30 }
 0x6d9   :  { %5588 = vmatpush3.bf16.msra.mxu1 %v6033_v55  ;;  %5189 = vmatprep.mubr.msk.f32.mxu1 %vm5902_vm0, %v5903_v10 }
 0x6da   :  { %5589 = vmatprep.subr.bf16.mxu1 %v5901_v6 }
 0x6dd   :  { %5591 = vmatpush3.bf16.msra.mxu1 %v6043_v58 }
 0x6de   :  { %5598 = vmatprep.subr.bf16.mxu1 %v5901_v6 }
 0x7ab   :  { %v776_v31 = vpop.f32.mrb[4].mxu1 }
 0x7ac   :  { %v777_v32 = vadd.f32 %v6073_v38, %v776_v31  ;;  %v5169_v33 = vpop.f32.mrb[5].mxu1 }
 0x7ae   :  { %v6147_v34 = vadd.f32 %v777_v32, %v6113_v7 }
 0x7b0   :  { %788 = vperm.xlu0 %5790, %v6147_v34   ;;  %783 = vperm.xlu1 %5793, %v6147_v34  }
 0x82f   :  { %v789_v35 = vpop.permute.xlu0 %788  ;;  %v784_v36 = vpop.permute.xlu1 %783 }
 0x830   :  { %v791_v37 = vmul.f32 %v5998_v13, %v789_v35  ;;  %v786_v39 = vmul.f32 %v5993_v12, %v784_v36 }
 0x832   :  { %v792_v42 = vadd.f32 %v791_v37, %v786_v39 }
 0x834   :  { %v793_v43 = vsel %vm68_vm1, %v792_v42, 0.0  ;;  %v801_v46 = vmul.f32 %v792_v42, %v792_v42 }
 0x835   :  { %v794_v47 = vrot.slane %v793_v43, 4 }
 0x836   :  { %v802_v48 = vsel %vm68_vm1, %v801_v46, 0.0 }
 0x837   :  { %v795_v49 = vadd.f32 %v794_v47, %v793_v43  ;;  %v803_v7 = vrot.slane %v802_v48, 4 }
 0x839   :  { %v796_v50 = vrot.slane %v795_v49, 2  ;;  %v804_v51 = vadd.f32 %v803_v7, %v802_v48 }
 0x83b   :  { %v797_v52 = vadd.f32 %v796_v50, %v795_v49  ;;  %v805_v1 = vrot.slane %v804_v51, 2 }
 0x83d   :  { %v798_v53 = vrot.slane %v797_v52, 1  ;;  %v806_v54 = vadd.f32 %v805_v1, %v804_v51 }
 0x83f   :  { %v799_v56 = vadd.f32 %v798_v53, %v797_v52  ;;  %v807_v2 = vrot.slane %v806_v54, 1 }
 0x841   :  { %v800_v57 = vmul.f32 0.125, %v799_v56  ;;  %v808_v59 = vadd.f32 %v807_v2, %v806_v54 }
 0x843   :  { %v809_v60 = vmul.f32 0.125, %v808_v59  ;;  %v810_v0 = vmul.f32 %v800_v57, %v800_v57 }
 0x845   :  { %v811_v61 = vsub.f32 %v809_v60, %v810_v0 }
 0x847   :  { %v812_v62 = vadd.f32 1e-05, %v811_v61 }
 0x849   :  { %5806 = vrsqrt.f32 %v812_v62 }
 0x853   :  { %v5807_v63 = vpop.eup %5806 }
 0x854   :  { %v814_v3 = vmul.f32 %v5807_v63, %v6007_v40 }
 0x856   :  { %v815_v4 = vmul.f32 %v814_v3, %v800_v57  ;;  %v821_v8 = vrot.slane %v814_v3, %v6009_v41 }
 0x858   :  { %v816_v11 = vsub.f32 %v6015_v44, %v815_v4  ;;  %v823_v14 = vmul.f32 %v821_v8, %v792_v42 }
 0x85a   :  { %v828_v15 = vrot.slane %v816_v11, %v6009_v41 }
 0x85c   :  { %v830_v16 = vadd.f32 %v828_v15, %v823_v14 }
 0x85e   :  { %v831_v17 = vmul.f32 0.01, %v830_v16 }
 0x860   :  { %v832_v18 = vmax.f32 %v830_v16, %v831_v17 }
 0x862   :  { %5179 = vmatmul.mubr.msk.f32.vlgmr.msra.gmra.mrb[6].mxu0 %vm68_vm1, %v832_v18 }
 0x863   :  { %5594 = vmatpush3.bf16.msra.mxu0 %v5970_v5  ;;  %5200 = vmatprep.mubr.msk.f32.mxu0 %vm5902_vm0, %v5903_v10 }
 0x864   :  { %5595 = vmatprep.subr.bf16.mxu0 %v5901_v6 }
 0x867   :  { %5597 = vmatpush3.bf16.msra.mxu0 %v5982_v9 }
 0x868   :  { %5604 = vmatprep.subr.bf16.mxu0 %v5901_v6 }
 0x935   :  { %v902_v19 = vpop.f32.mrb[6].mxu0 }
 0x936   :  { %v906_v20 = vsel %vm68_vm1, %v902_v19, 0.0  ;;  %v914_v21 = vmul.f32 %v902_v19, %v902_v19  ;;  %v5180_v45 = vpop.f32.mrb[7].mxu0 }
 0x937   :  { %v907_v22 = vrot.slane %v906_v20, 4 }
 0x938   :  { %v915_v23 = vsel %vm68_vm1, %v914_v21, 0.0 }
 0x939   :  { %v908_v24 = vadd.f32 %v907_v22, %v906_v20  ;;  %v916_v25 = vrot.slane %v915_v23, 4 }
 0x93b   :  { %v909_v27 = vrot.slane %v908_v24, 2  ;;  %v917_v28 = vadd.f32 %v916_v25, %v915_v23 }
 0x93d   :  { %v910_v30 = vadd.f32 %v909_v27, %v908_v24  ;;  %v918_v31 = vrot.slane %v917_v28, 2 }
 0x93f   :  { %v911_v32 = vrot.slane %v910_v30, 1  ;;  %v919_v33 = vadd.f32 %v918_v31, %v917_v28 }
 0x941   :  { %v912_v35 = vadd.f32 %v911_v32, %v910_v30  ;;  %v920_v36 = vrot.slane %v919_v33, 1 }
 0x943   :  { %v913_v37 = vmul.f32 0.125, %v912_v35  ;;  %v921_v39 = vadd.f32 %v920_v36, %v919_v33 }
 0x945   :  { %v922_v42 = vmul.f32 0.125, %v921_v39  ;;  %v923_v43 = vmul.f32 %v913_v37, %v913_v37 }
 0x947   :  { %v924_v46 = vsub.f32 %v922_v42, %v923_v43 }
 0x949   :  { %v925_v47 = vadd.f32 1e-05, %v924_v46 }
 0x94b   :  { %5808 = vrsqrt.f32 %v925_v47 }
 0x955   :  { %v5809_v48 = vpop.eup %5808 }
 0x956   :  { %v927_v49 = vmul.f32 %v5809_v48, %v6052_v26 }
 0x958   :  { %v928_v7 = vmul.f32 %v927_v49, %v913_v37  ;;  %v934_v50 = vrot.slane %v927_v49, %v6009_v41 }
 0x95a   :  { %v929_v51 = vsub.f32 %v6058_v29, %v928_v7  ;;  %v936_v52 = vmul.f32 %v934_v50, %v902_v19 }
 0x95c   :  { %v941_v1 = vrot.slane %v929_v51, %v6009_v41 }
 0x95e   :  { %v943_v53 = vadd.f32 %v941_v1, %v936_v52 }
 0x960   :  { %v944_v54 = vmul.f32 0.01, %v943_v53 }
 0x962   :  { %v945_v56 = vmax.f32 %v943_v53, %v944_v54 }
 0x964   :  { %5190 = vmatmul.mubr.msk.f32.vlgmr.msra.gmra.mrb[6].mxu1 %vm68_vm1, %v945_v56 }
 0x965   :  { %5600 = vmatpush3.bf16.msra.mxu1 %v6033_v55  ;;  %5211 = vmatprep.mubr.msk.f32.mxu1 %vm5902_vm0, %v5903_v10 }
 0x966   :  { %5601 = vmatprep.subr.bf16.mxu1 %v5901_v6 }
 0x969   :  { %5603 = vmatpush3.bf16.msra.mxu1 %v6043_v58 }
 0x96a   :  { %5610 = vmatprep.subr.bf16.mxu1 %v5901_v6 }
 0xa37   :  { %v1015_v2 = vpop.f32.mrb[6].mxu1 }
 0xa38   :  { %v1016_v57 = vadd.f32 %v6073_v38, %v1015_v2  ;;  %v5191_v59 = vpop.f32.mrb[7].mxu1 }
 0xa3a   :  { %v6181_v60 = vadd.f32 %v1016_v57, %v6147_v34 }
 0xa3c   :  { %1027 = vperm.xlu0 %5790, %v6181_v60   ;;  %1022 = vperm.xlu1 %5793, %v6181_v60  }
 0xabb   :  { %v1028_v0 = vpop.permute.xlu0 %1027  ;;  %v1023_v61 = vpop.permute.xlu1 %1022 }
 0xabc   :  { %v1030_v62 = vmul.f32 %v5998_v13, %v1028_v0  ;;  %v1025_v63 = vmul.f32 %v5993_v12, %v1023_v61 }
 0xabe   :  { %v1031_v3 = vadd.f32 %v1030_v62, %v1025_v63 }
 0xac0   :  { %v1032_v4 = vsel %vm68_vm1, %v1031_v3, 0.0  ;;  %v1040_v8 = vmul.f32 %v1031_v3, %v1031_v3 }
 0xac1   :  { %v1033_v11 = vrot.slane %v1032_v4, 4 }
 0xac2   :  { %v1041_v14 = vsel %vm68_vm1, %v1040_v8, 0.0 }
 0xac3   :  { %v1034_v15 = vadd.f32 %v1033_v11, %v1032_v4  ;;  %v1042_v34 = vrot.slane %v1041_v14, 4 }
 0xac5   :  { %v1035_v16 = vrot.slane %v1034_v15, 2  ;;  %v1043_v17 = vadd.f32 %v1042_v34, %v1041_v14 }
 0xac7   :  { %v1036_v18 = vadd.f32 %v1035_v16, %v1034_v15  ;;  %v1044_v19 = vrot.slane %v1043_v17, 2 }
 0xac9   :  { %v1037_v20 = vrot.slane %v1036_v18, 1  ;;  %v1045_v21 = vadd.f32 %v1044_v19, %v1043_v17 }
 0xacb   :  { %v1038_v45 = vadd.f32 %v1037_v20, %v1036_v18  ;;  %v1046_v22 = vrot.slane %v1045_v21, 1 }
 0xacd   :  { %v1039_v23 = vmul.f32 0.125, %v1038_v45  ;;  %v1047_v24 = vadd.f32 %v1046_v22, %v1045_v21 }
 0xacf   :  { %v1048_v25 = vmul.f32 0.125, %v1047_v24  ;;  %v1049_v27 = vmul.f32 %v1039_v23, %v1039_v23 }
 0xad1   :  { %v1050_v28 = vsub.f32 %v1048_v25, %v1049_v27 }
 0xad3   :  { %v1051_v30 = vadd.f32 1e-05, %v1050_v28 }
 0xad5   :  { %5810 = vrsqrt.f32 %v1051_v30 }
 0xadf   :  { %v5811_v31 = vpop.eup %5810 }
 0xae0   :  { %v1053_v32 = vmul.f32 %v5811_v31, %v6007_v40 }
 0xae2   :  { %v1054_v33 = vmul.f32 %v1053_v32, %v1039_v23  ;;  %v1060_v35 = vrot.slane %v1053_v32, %v6009_v41 }
 0xae4   :  { %v1055_v36 = vsub.f32 %v6015_v44, %v1054_v33  ;;  %v1062_v37 = vmul.f32 %v1060_v35, %v1031_v3 }
 0xae6   :  { %v1067_v39 = vrot.slane %v1055_v36, %v6009_v41 }
 0xae8   :  { %v1069_v42 = vadd.f32 %v1067_v39, %v1062_v37 }
 0xaea   :  { %v1070_v43 = vmul.f32 0.01, %v1069_v42 }
 0xaec   :  { %v1071_v46 = vmax.f32 %v1069_v42, %v1070_v43 }
 0xaee   :  { %5201 = vmatmul.mubr.msk.f32.vlgmr.msra.gmra.mrb[8].mxu0 %vm68_vm1, %v1071_v46 }
 0xaef   :  { %5606 = vmatpush3.bf16.msra.mxu0 %v5970_v5  ;;  %5222 = vmatprep.mubr.msk.f32.mxu0 %vm5902_vm0, %v5903_v10 }
 0xaf0   :  { %5607 = vmatprep.subr.bf16.mxu0 %v5901_v6 }
 0xaf3   :  { %5609 = vmatpush3.bf16.msra.mxu0 %v5982_v9 }
 0xaf4   :  { %5616 = vmatprep.subr.bf16.mxu0 %v5901_v6 }
 0xbc1   :  { %v1141_v47 = vpop.f32.mrb[8].mxu0 }
 0xbc2   :  { %v1145_v48 = vsel %vm68_vm1, %v1141_v47, 0.0  ;;  %v1153_v49 = vmul.f32 %v1141_v47, %v1141_v47  ;;  %v5202_v7 = vpop.f32.mrb[9].mxu0 }
 0xbc3   :  { %v1146_v50 = vrot.slane %v1145_v48, 4 }
 0xbc4   :  { %v1154_v51 = vsel %vm68_vm1, %v1153_v49, 0.0 }
 0xbc5   :  { %v1147_v52 = vadd.f32 %v1146_v50, %v1145_v48  ;;  %v1155_v1 = vrot.slane %v1154_v51, 4 }
 0xbc7   :  { %v1148_v53 = vrot.slane %v1147_v52, 2  ;;  %v1156_v54 = vadd.f32 %v1155_v1, %v1154_v51 }
 0xbc9   :  { %v1149_v56 = vadd.f32 %v1148_v53, %v1147_v52  ;;  %v1157_v2 = vrot.slane %v1156_v54, 2 }
 0xbcb   :  { %v1150_v57 = vrot.slane %v1149_v56, 1  ;;  %v1158_v59 = vadd.f32 %v1157_v2, %v1156_v54 }
 0xbcd   :  { %v1151_v0 = vadd.f32 %v1150_v57, %v1149_v56  ;;  %v1159_v61 = vrot.slane %v1158_v59, 1 }
 0xbcf   :  { %v1152_v62 = vmul.f32 0.125, %v1151_v0  ;;  %v1160_v63 = vadd.f32 %v1159_v61, %v1158_v59 }
 0xbd1   :  { %v1161_v3 = vmul.f32 0.125, %v1160_v63  ;;  %v1162_v4 = vmul.f32 %v1152_v62, %v1152_v62 }
 0xbd3   :  { %v1163_v8 = vsub.f32 %v1161_v3, %v1162_v4 }
 0xbd5   :  { %v1164_v11 = vadd.f32 1e-05, %v1163_v8 }
 0xbd7   :  { %5812 = vrsqrt.f32 %v1164_v11 }
 0xbe1   :  { %v5813_v14 = vpop.eup %5812 }
 0xbe2   :  { %v1166_v15 = vmul.f32 %v5813_v14, %v6052_v26 }
 0xbe4   :  { %v1167_v34 = vmul.f32 %v1166_v15, %v1152_v62  ;;  %v1173_v16 = vrot.slane %v1166_v15, %v6009_v41 }
 0xbe6   :  { %v1168_v17 = vsub.f32 %v6058_v29, %v1167_v34  ;;  %v1175_v18 = vmul.f32 %v1173_v16, %v1141_v47 }
 0xbe8   :  { %v1180_v19 = vrot.slane %v1168_v17, %v6009_v41 }
 0xbea   :  { %v1182_v20 = vadd.f32 %v1180_v19, %v1175_v18 }
 0xbec   :  { %v1183_v21 = vmul.f32 0.01, %v1182_v20 }
 0xbee   :  { %v1184_v45 = vmax.f32 %v1182_v20, %v1183_v21 }
 0xbf0   :  { %5212 = vmatmul.mubr.msk.f32.vlgmr.msra.gmra.mrb[8].mxu1 %vm68_vm1, %v1184_v45 }
 0xbf1   :  { %5612 = vmatpush3.bf16.msra.mxu1 %v6033_v55  ;;  %5233 = vmatprep.mubr.msk.f32.mxu1 %vm5902_vm0, %v5903_v10 }
 0xbf2   :  { %5613 = vmatprep.subr.bf16.mxu1 %v5901_v6 }
 0xbf5   :  { %5615 = vmatpush3.bf16.msra.mxu1 %v6043_v58 }
 0xbf6   :  { %5622 = vmatprep.subr.bf16.mxu1 %v5901_v6 }
 0xcc3   :  { %v1254_v22 = vpop.f32.mrb[8].mxu1 }
 0xcc4   :  { %v1255_v23 = vadd.f32 %v6073_v38, %v1254_v22  ;;  %v5213_v24 = vpop.f32.mrb[9].mxu1 }
 0xcc6   :  { %v6215_v25 = vadd.f32 %v1255_v23, %v6181_v60 }
 0xcc8   :  { %1266 = vperm.xlu0 %5790, %v6215_v25   ;;  %1261 = vperm.xlu1 %5793, %v6215_v25  }
 0xd47   :  { %v1267_v27 = vpop.permute.xlu0 %1266  ;;  %v1262_v28 = vpop.permute.xlu1 %1261 }
 0xd48   :  { %v1269_v30 = vmul.f32 %v5998_v13, %v1267_v27  ;;  %v1264_v31 = vmul.f32 %v5993_v12, %v1262_v28 }
 0xd4a   :  { %v1270_v32 = vadd.f32 %v1269_v30, %v1264_v31 }
 0xd4c   :  { %v1271_v33 = vsel %vm68_vm1, %v1270_v32, 0.0  ;;  %v1279_v35 = vmul.f32 %v1270_v32, %v1270_v32 }
 0xd4d   :  { %v1272_v36 = vrot.slane %v1271_v33, 4 }
 0xd4e   :  { %v1280_v37 = vsel %vm68_vm1, %v1279_v35, 0.0 }
 0xd4f   :  { %v1273_v39 = vadd.f32 %v1272_v36, %v1271_v33  ;;  %v1281_v60 = vrot.slane %v1280_v37, 4 }
 0xd51   :  { %v1274_v42 = vrot.slane %v1273_v39, 2  ;;  %v1282_v43 = vadd.f32 %v1281_v60, %v1280_v37 }
 0xd53   :  { %v1275_v46 = vadd.f32 %v1274_v42, %v1273_v39  ;;  %v1283_v47 = vrot.slane %v1282_v43, 2 }
 0xd55   :  { %v1276_v48 = vrot.slane %v1275_v46, 1  ;;  %v1284_v49 = vadd.f32 %v1283_v47, %v1282_v43 }
 0xd57   :  { %v1277_v7 = vadd.f32 %v1276_v48, %v1275_v46  ;;  %v1285_v50 = vrot.slane %v1284_v49, 1 }
 0xd59   :  { %v1278_v13 = vmul.f32 0.125, %v1277_v7  ;;  %v1286_v51 = vadd.f32 %v1285_v50, %v1284_v49  ;;  %v6256_v50 = vld [vmem:[%s6824_s1 + $0x1] ss:$0 sm:$0xff] }
 0xd5b   :  { %v1287_v12 = vmul.f32 0.125, %v1286_v51  ;;  %v1288_v52 = vmul.f32 %v1278_v13, %v1278_v13 }
 0xd5d   :  { %v1289_v1 = vsub.f32 %v1287_v12, %v1288_v52 }
 0xd5f   :  { %v1290_v53 = vadd.f32 1e-05, %v1289_v1 }
 0xd61   :  { %5814 = vrsqrt.f32 %v1290_v53 }
 0xd6b   :  { %v5815_v54 = vpop.eup %5814 }
 0xd6c   :  { %v1292_v56 = vmul.f32 %v5815_v54, %v6007_v40 }
 0xd6e   :  { %v1293_v2 = vmul.f32 %v1292_v56, %v1278_v13  ;;  %v1299_v57 = vrot.slane %v1292_v56, %v6009_v41 }
 0xd70   :  { %v1294_v59 = vsub.f32 %v6015_v44, %v1293_v2  ;;  %v1301_v0 = vmul.f32 %v1299_v57, %v1270_v32 }
 0xd72   :  { %v1306_v61 = vrot.slane %v1294_v59, %v6009_v41 }
 0xd74   :  { %v1308_v62 = vadd.f32 %v1306_v61, %v1301_v0 }
 0xd76   :  { %v1309_v63 = vmul.f32 0.01, %v1308_v62 }
 0xd78   :  { %v1310_v3 = vmax.f32 %v1308_v62, %v1309_v63 }
 0xd7a   :  { %5223 = vmatmul.mubr.msk.f32.vlgmr.msra.gmra.mrb[10].mxu0 %vm68_vm1, %v1310_v3 }
 0xd7b   :  { %5618 = vmatpush3.bf16.msra.mxu0 %v5970_v5  ;;  %5244 = vmatprep.mubr.msk.f32.mxu0 %vm5902_vm0, %v5903_v10 }
 0xd7c   :  { %5619 = vmatprep.subr.bf16.mxu0 %v5901_v6 }
 0xd7f   :  { %5621 = vmatpush3.bf16.msra.mxu0 %v5982_v9 }
 0xd80   :  { %5628 = vmatprep.subr.bf16.mxu0 %v5901_v6 }
 0xe4d   :  { %v1380_v40 = vpop.f32.mrb[10].mxu0 }
 0xe4e   :  { %v1384_v44 = vsel %vm68_vm1, %v1380_v40, 0.0  ;;  %v1392_v4 = vmul.f32 %v1380_v40, %v1380_v40  ;;  %v5224_v8 = vpop.f32.mrb[11].mxu0 }
 0xe4f   :  { %v1385_v11 = vrot.slane %v1384_v44, 4 }
 0xe50   :  { %v1393_v14 = vsel %vm68_vm1, %v1392_v4, 0.0 }
 0xe51   :  { %v1386_v15 = vadd.f32 %v1385_v11, %v1384_v44  ;;  %v1394_v34 = vrot.slane %v1393_v14, 4 }
 0xe53   :  { %v1387_v16 = vrot.slane %v1386_v15, 2  ;;  %v1395_v17 = vadd.f32 %v1394_v34, %v1393_v14  ;;  %v6270_v34 = vld [vmem:[%s6825_s2] sm:$0x1] }
 0xe55   :  { %v1388_v18 = vadd.f32 %v1387_v16, %v1386_v15  ;;  %v1396_v19 = vrot.slane %v1395_v17, 2 }
 0xe57   :  { %v1389_v20 = vrot.slane %v1388_v18, 1  ;;  %v1397_v21 = vadd.f32 %v1396_v19, %v1395_v17  ;;  %v6277_v19 = vld [vmem:[%s6826_s3] sm:$0x1] }
 0xe59   :  { %v1390_v45 = vadd.f32 %v1389_v20, %v1388_v18  ;;  %v1398_v22 = vrot.slane %v1397_v21, 1 }
 0xe5b   :  { %v1391_v23 = vmul.f32 0.125, %v1390_v45  ;;  %v1399_v24 = vadd.f32 %v1398_v22, %v1397_v21 }
 0xe5d   :  { %v1400_v27 = vmul.f32 0.125, %v1399_v24  ;;  %v1401_v28 = vmul.f32 %v1391_v23, %v1391_v23 }
 0xe5f   :  { %v1402_v30 = vsub.f32 %v1400_v27, %v1401_v28 }
 0xe61   :  { %v1403_v31 = vadd.f32 1e-05, %v1402_v30 }
 0xe63   :  { %5816 = vrsqrt.f32 %v1403_v31 }
 0xe6d   :  { %v5817_v32 = vpop.eup %5816 }
 0xe6e   :  { %v1405_v33 = vmul.f32 %v5817_v32, %v6052_v26 }
 0xe70   :  { %v1406_v35 = vmul.f32 %v1405_v33, %v1391_v23  ;;  %v1412_v36 = vrot.slane %v1405_v33, %v6009_v41 }
 0xe72   :  { %v1407_v37 = vsub.f32 %v6058_v29, %v1406_v35  ;;  %v1414_v39 = vmul.f32 %v1412_v36, %v1380_v40 }
 0xe74   :  { %v1419_v60 = vrot.slane %v1407_v37, %v6009_v41 }
 0xe76   :  { %v1421_v42 = vadd.f32 %v1419_v60, %v1414_v39 }
 0xe78   :  { %v1422_v43 = vmul.f32 0.01, %v1421_v42 }
 0xe7a   :  { %v1423_v46 = vmax.f32 %v1421_v42, %v1422_v43 }
 0xe7c   :  { %5234 = vmatmul.mubr.msk.f32.vlgmr.msra.gmra.mrb[10].mxu1 %vm68_vm1, %v1423_v46 }
 0xe7d   :  { %5624 = vmatpush3.bf16.msra.mxu1 %v6033_v55  ;;  %5255 = vmatprep.mubr.msk.f32.mxu1 %vm5902_vm0, %v5903_v10 }
 0xe7e   :  { %5625 = vmatprep.subr.bf16.mxu1 %v5901_v6 }
 0xe81   :  { %5627 = vmatpush3.bf16.msra.mxu1 %v6043_v58 }
 0xe82   :  { %5634 = vmatprep.subr.bf16.mxu1 %v5901_v6 }
 0xf4f   :  { %v1493_v26 = vpop.f32.mrb[10].mxu1 }
 0xf50   :  { %v1494_v29 = vadd.f32 %v6073_v38, %v1493_v26  ;;  %v5235_v47 = vpop.f32.mrb[11].mxu1  ;;  %v6262_v38 = vld [vmem:[%s6824_s1] ss:$0 sm:$0xff] }
 0xf52   :  { %v6249_v48 = vadd.f32 %v1494_v29, %v6215_v25 }
 0xf54   :  { %1505 = vperm.xlu0 %5790, %v6249_v48   ;;  %1500 = vperm.xlu1 %5793, %v6249_v48  }
 0xfd3   :  { %v1506_v49 = vpop.permute.xlu0 %1505  ;;  %v1501_v7 = vpop.permute.xlu1 %1500 }
 0xfd4   :  { %v1508_v13 = vmul.f32 %v6256_v50, %v1506_v49  ;;  %v1503_v25 = vmul.f32 %v6262_v38, %v1501_v7 }
 0xfd6   :  { %v1509_v51 = vadd.f32 %v1508_v13, %v1503_v25 }
 0xfd8   :  { %v1510_v12 = vsel %vm68_vm1, %v1509_v51, 0.0  ;;  %v1518_v52 = vmul.f32 %v1509_v51, %v1509_v51 }
 0xfd9   :  { %v1511_v1 = vrot.slane %v1510_v12, 4 }
 0xfda   :  { %v1519_v53 = vsel %vm68_vm1, %v1518_v52, 0.0  ;;  %v6293_v52 = vld [vmem:[%s6828_s5] sm:$0x1] }
 0xfdb   :  { %v1512_v54 = vadd.f32 %v1511_v1, %v1510_v12  ;;  %v1520_v56 = vrot.slane %v1519_v53, 4 }
 0xfdd   :  { %v1513_v2 = vrot.slane %v1512_v54, 2  ;;  %v1521_v57 = vadd.f32 %v1520_v56, %v1519_v53  ;;  %v6300_v56 = vld [vmem:[%s6829_s6] sm:$0x1] }
 0xfdf   :  { %v1514_v59 = vadd.f32 %v1513_v2, %v1512_v54  ;;  %v1522_v0 = vrot.slane %v1521_v57, 2 }
 0xfe1   :  { %v1515_v61 = vrot.slane %v1514_v59, 1  ;;  %v1523_v62 = vadd.f32 %v1522_v0, %v1521_v57 }
 0xfe3   :  { %v1516_v63 = vadd.f32 %v1515_v61, %v1514_v59  ;;  %v1524_v3 = vrot.slane %v1523_v62, 1 }
 0xfe5   :  { %v1517_v40 = vmul.f32 0.125, %v1516_v63  ;;  %v1525_v44 = vadd.f32 %v1524_v3, %v1523_v62  ;;  %v6314_v3 = vld [vmem:[%s6830_s8] ss:$0 sm:$0xff] }
 0xfe7   :  { %v1526_v4 = vmul.f32 0.125, %v1525_v44  ;;  %v1527_v8 = vmul.f32 %v1517_v40, %v1517_v40 }
 0xfe9   :  { %v1528_v11 = vsub.f32 %v1526_v4, %v1527_v8 }
 0xfeb   :  { %v1529_v14 = vadd.f32 1e-05, %v1528_v11 }
 0xfed   :  { %5818 = vrsqrt.f32 %v1529_v14 }
 0xff7   :  { %v5819_v15 = vpop.eup %5818 }
 0xff8   :  { %v1531_v16 = vmul.f32 %v6270_v34, %v5819_v15 }
 0xffa   :  { %v1532_v17 = vmul.f32 %v1531_v16, %v1517_v40  ;;  %v1538_v18 = vrot.slane %v1531_v16, %v6009_v41 }
 0xffc   :  { %v1533_v20 = vsub.f32 %v6277_v19, %v1532_v17  ;;  %v1540_v21 = vmul.f32 %v1538_v18, %v1509_v51 }
 0xffe   :  { %v1545_v45 = vrot.slane %v1533_v20, %v6009_v41 }
0x1000   :  { %v1547_v22 = vadd.f32 %v1545_v45, %v1540_v21 }
0x1002   :  { %v1548_v23 = vmul.f32 0.01, %v1547_v22 }
0x1004   :  { %v1549_v24 = vmax.f32 %v1547_v22, %v1548_v23 }
0x1006   :  { %5245 = vmatmul.mubr.msk.f32.vlgmr.msra.gmra.mrb[12].mxu0 %vm68_vm1, %v1549_v24 }
0x1007   :  { %5630 = vmatpush3.bf16.msra.mxu0 %v5970_v5  ;;  %5266 = vmatprep.mubr.msk.f32.mxu0 %vm5902_vm0, %v5903_v10 }
0x1008   :  { %5631 = vmatprep.subr.bf16.mxu0 %v5901_v6 }
0x100b   :  { %5633 = vmatpush3.bf16.msra.mxu0 %v5982_v9 }
0x100c   :  { %5640 = vmatprep.subr.bf16.mxu0 %v5901_v6 }
0x10d9   :  { %v1619_v27 = vpop.f32.mrb[12].mxu0 }
0x10da   :  { %v1623_v28 = vsel %vm68_vm1, %v1619_v27, 0.0  ;;  %v1631_v30 = vmul.f32 %v1619_v27, %v1619_v27  ;;  %v5246_v31 = vpop.f32.mrb[13].mxu0 }
0x10db   :  { %v1624_v32 = vrot.slane %v1623_v28, 4 }
0x10dc   :  { %v1632_v33 = vsel %vm68_vm1, %v1631_v30, 0.0 }
0x10dd   :  { %v1625_v35 = vadd.f32 %v1624_v32, %v1623_v28  ;;  %v1633_v36 = vrot.slane %v1632_v33, 4 }
0x10df   :  { %v1626_v37 = vrot.slane %v1625_v35, 2  ;;  %v1634_v39 = vadd.f32 %v1633_v36, %v1632_v33 }
0x10e1   :  { %v1627_v60 = vadd.f32 %v1626_v37, %v1625_v35  ;;  %v1635_v42 = vrot.slane %v1634_v39, 2 }
0x10e3   :  { %v1628_v43 = vrot.slane %v1627_v60, 1  ;;  %v1636_v46 = vadd.f32 %v1635_v42, %v1634_v39 }
0x10e5   :  { %v1629_v26 = vadd.f32 %v1628_v43, %v1627_v60  ;;  %v1637_v29 = vrot.slane %v1636_v46, 1 }
0x10e7   :  { %v1630_v47 = vmul.f32 0.125, %v1629_v26  ;;  %v1638_v49 = vadd.f32 %v1637_v29, %v1636_v46 }
0x10e9   :  { %v1639_v7 = vmul.f32 0.125, %v1638_v49  ;;  %v1640_v13 = vmul.f32 %v1630_v47, %v1630_v47 }
0x10eb   :  { %v1641_v25 = vsub.f32 %v1639_v7, %v1640_v13 }
0x10ed   :  { %v1642_v51 = vadd.f32 1e-05, %v1641_v25 }
0x10ef   :  { %5820 = vrsqrt.f32 %v1642_v51 }
0x10f9   :  { %v5821_v12 = vpop.eup %5820 }
0x10fa   :  { %v1644_v1 = vmul.f32 %v6293_v52, %v5821_v12 }
0x10fc   :  { %v1645_v53 = vmul.f32 %v1644_v1, %v1630_v47  ;;  %v1651_v54 = vrot.slane %v1644_v1, %v6009_v41 }
0x10fe   :  { %v1646_v2 = vsub.f32 %v6300_v56, %v1645_v53  ;;  %v1653_v57 = vmul.f32 %v1651_v54, %v1619_v27 }
0x1100   :  { %v1658_v59 = vrot.slane %v1646_v2, %v6009_v41 }
0x1102   :  { %v1660_v0 = vadd.f32 %v1658_v59, %v1653_v57 }
0x1104   :  { %v1661_v61 = vmul.f32 0.01, %v1660_v0 }
0x1106   :  { %v1662_v62 = vmax.f32 %v1660_v0, %v1661_v61 }
0x1108   :  { %5256 = vmatmul.mubr.msk.f32.vlgmr.msra.gmra.mrb[12].mxu1 %vm68_vm1, %v1662_v62 }
0x1109   :  { %5636 = vmatpush3.bf16.msra.mxu1 %v6033_v55  ;;  %5277 = vmatprep.mubr.msk.f32.mxu1 %vm5902_vm0, %v5903_v10 }
0x110a   :  { %5637 = vmatprep.subr.bf16.mxu1 %v5901_v6 }
0x110d   :  { %5639 = vmatpush3.bf16.msra.mxu1 %v6043_v58 }
0x110e   :  { %5646 = vmatprep.subr.bf16.mxu1 %v5901_v6 }
0x11db   :  { %v1732_v63 = vpop.f32.mrb[12].mxu1 }
0x11dc   :  { %v1733_v40 = vadd.f32 %v6314_v3, %v1732_v63  ;;  %v5257_v44 = vpop.f32.mrb[13].mxu1 }
0x11de   :  { %v6318_v4 = vadd.f32 %v1733_v40, %v6249_v48 }
0x11e0   :  { %1744 = vperm.xlu0 %5790, %v6318_v4   ;;  %1739 = vperm.xlu1 %5793, %v6318_v4  }
0x125f   :  { %v1745_v8 = vpop.permute.xlu0 %1744  ;;  %v1740_v11 = vpop.permute.xlu1 %1739 }
0x1260   :  { %v1747_v14 = vmul.f32 %v6256_v50, %v1745_v8  ;;  %v1742_v15 = vmul.f32 %v6262_v38, %v1740_v11 }
0x1262   :  { %v1748_v16 = vadd.f32 %v1747_v14, %v1742_v15 }
0x1264   :  { %v1749_v17 = vsel %vm68_vm1, %v1748_v16, 0.0  ;;  %v1757_v18 = vmul.f32 %v1748_v16, %v1748_v16 }
0x1265   :  { %v1750_v20 = vrot.slane %v1749_v17, 4 }
0x1266   :  { %v1758_v21 = vsel %vm68_vm1, %v1757_v18, 0.0 }
0x1267   :  { %v1751_v45 = vadd.f32 %v1750_v20, %v1749_v17  ;;  %v1759_v48 = vrot.slane %v1758_v21, 4 }
0x1269   :  { %v1752_v22 = vrot.slane %v1751_v45, 2  ;;  %v1760_v23 = vadd.f32 %v1759_v48, %v1758_v21 }
0x126b   :  { %v1753_v24 = vadd.f32 %v1752_v22, %v1751_v45  ;;  %v1761_v27 = vrot.slane %v1760_v23, 2 }
0x126d   :  { %v1754_v28 = vrot.slane %v1753_v24, 1  ;;  %v1762_v30 = vadd.f32 %v1761_v27, %v1760_v23 }
0x126f   :  { %v1755_v31 = vadd.f32 %v1754_v28, %v1753_v24  ;;  %v1763_v32 = vrot.slane %v1762_v30, 1 }
0x1271   :  { %v1756_v33 = vmul.f32 0.125, %v1755_v31  ;;  %v1764_v35 = vadd.f32 %v1763_v32, %v1762_v30 }
0x1273   :  { %v1765_v36 = vmul.f32 0.125, %v1764_v35  ;;  %v1766_v37 = vmul.f32 %v1756_v33, %v1756_v33 }
0x1275   :  { %v1767_v39 = vsub.f32 %v1765_v36, %v1766_v37 }
0x1277   :  { %v1768_v60 = vadd.f32 1e-05, %v1767_v39 }
0x1279   :  { %5822 = vrsqrt.f32 %v1768_v60 }
0x1283   :  { %v5823_v42 = vpop.eup %5822 }
0x1284   :  { %v1770_v43 = vmul.f32 %v6270_v34, %v5823_v42 }
0x1286   :  { %v1771_v46 = vmul.f32 %v1770_v43, %v1756_v33  ;;  %v1777_v26 = vrot.slane %v1770_v43, %v6009_v41 }
0x1288   :  { %v1772_v29 = vsub.f32 %v6277_v19, %v1771_v46  ;;  %v1779_v47 = vmul.f32 %v1777_v26, %v1748_v16 }
0x128a   :  { %v1784_v49 = vrot.slane %v1772_v29, %v6009_v41 }
0x128c   :  { %v1786_v7 = vadd.f32 %v1784_v49, %v1779_v47 }
0x128e   :  { %v1787_v13 = vmul.f32 0.01, %v1786_v7 }
0x1290   :  { %v1788_v25 = vmax.f32 %v1786_v7, %v1787_v13 }
0x1292   :  { %5267 = vmatmul.mubr.msk.f32.vlgmr.msra.gmra.mrb[14].mxu0 %vm68_vm1, %v1788_v25 }
0x1293   :  { %5642 = vmatpush3.bf16.msra.mxu0 %v5970_v5  ;;  %5288 = vmatprep.mubr.msk.f32.mxu0 %vm5902_vm0, %v5903_v10 }
0x1294   :  { %5643 = vmatprep.subr.bf16.mxu0 %v5901_v6 }
0x1297   :  { %5645 = vmatpush3.bf16.msra.mxu0 %v5982_v9 }
0x1298   :  { %5652 = vmatprep.subr.bf16.mxu0 %v5901_v6 }
0x1365   :  { %v1858_v51 = vpop.f32.mrb[14].mxu0 }
0x1366   :  { %v1862_v12 = vsel %vm68_vm1, %v1858_v51, 0.0  ;;  %v1870_v1 = vmul.f32 %v1858_v51, %v1858_v51  ;;  %v5268_v53 = vpop.f32.mrb[15].mxu0 }
0x1367   :  { %v1863_v54 = vrot.slane %v1862_v12, 4 }
0x1368   :  { %v1871_v2 = vsel %vm68_vm1, %v1870_v1, 0.0 }
0x1369   :  { %v1864_v57 = vadd.f32 %v1863_v54, %v1862_v12  ;;  %v1872_v59 = vrot.slane %v1871_v2, 4 }
0x136b   :  { %v1865_v0 = vrot.slane %v1864_v57, 2  ;;  %v1873_v61 = vadd.f32 %v1872_v59, %v1871_v2 }
0x136d   :  { %v1866_v62 = vadd.f32 %v1865_v0, %v1864_v57  ;;  %v1874_v63 = vrot.slane %v1873_v61, 2 }
0x136f   :  { %v1867_v40 = vrot.slane %v1866_v62, 1  ;;  %v1875_v44 = vadd.f32 %v1874_v63, %v1873_v61 }
0x1371   :  { %v1868_v8 = vadd.f32 %v1867_v40, %v1866_v62  ;;  %v1876_v11 = vrot.slane %v1875_v44, 1 }
0x1373   :  { %v1869_v14 = vmul.f32 0.125, %v1868_v8  ;;  %v1877_v15 = vadd.f32 %v1876_v11, %v1875_v44 }
0x1375   :  { %v1878_v16 = vmul.f32 0.125, %v1877_v15  ;;  %v1879_v17 = vmul.f32 %v1869_v14, %v1869_v14 }
0x1377   :  { %v1880_v18 = vsub.f32 %v1878_v16, %v1879_v17 }
0x1379   :  { %v1881_v20 = vadd.f32 1e-05, %v1880_v18 }
0x137b   :  { %5824 = vrsqrt.f32 %v1881_v20 }
0x1385   :  { %v5825_v21 = vpop.eup %5824 }
0x1386   :  { %v1883_v45 = vmul.f32 %v6293_v52, %v5825_v21 }
0x1388   :  { %v1884_v48 = vmul.f32 %v1883_v45, %v1869_v14  ;;  %v1890_v22 = vrot.slane %v1883_v45, %v6009_v41 }
0x138a   :  { %v1885_v23 = vsub.f32 %v6300_v56, %v1884_v48  ;;  %v1892_v24 = vmul.f32 %v1890_v22, %v1858_v51 }
0x138c   :  { %v1897_v27 = vrot.slane %v1885_v23, %v6009_v41 }
0x138e   :  { %v1899_v28 = vadd.f32 %v1897_v27, %v1892_v24 }
0x1390   :  { %v1900_v30 = vmul.f32 0.01, %v1899_v28 }
0x1392   :  { %v1901_v31 = vmax.f32 %v1899_v28, %v1900_v30 }
0x1394   :  { %5278 = vmatmul.mubr.msk.f32.vlgmr.msra.gmra.mrb[14].mxu1 %vm68_vm1, %v1901_v31 }
0x1395   :  { %5648 = vmatpush3.bf16.msra.mxu1 %v6033_v55  ;;  %5299 = vmatprep.mubr.msk.f32.mxu1 %vm5902_vm0, %v5903_v10 }
0x1396   :  { %5649 = vmatprep.subr.bf16.mxu1 %v5901_v6 }
0x1399   :  { %5651 = vmatpush3.bf16.msra.mxu1 %v6043_v58 }
0x139a   :  { %5658 = vmatprep.subr.bf16.mxu1 %v5901_v6 }
0x1467   :  { %v1971_v32 = vpop.f32.mrb[14].mxu1 }
0x1468   :  { %v1972_v33 = vadd.f32 %v6314_v3, %v1971_v32  ;;  %v5279_v35 = vpop.f32.mrb[15].mxu1 }
0x146a   :  { %v6352_v36 = vadd.f32 %v1972_v33, %v6318_v4 }
0x146c   :  { %1983 = vperm.xlu0 %5790, %v6352_v36   ;;  %1978 = vperm.xlu1 %5793, %v6352_v36  }
0x14eb   :  { %v1984_v37 = vpop.permute.xlu0 %1983  ;;  %v1979_v39 = vpop.permute.xlu1 %1978 }
0x14ec   :  { %v1986_v60 = vmul.f32 %v6256_v50, %v1984_v37  ;;  %v1981_v42 = vmul.f32 %v6262_v38, %v1979_v39 }
0x14ee   :  { %v1987_v43 = vadd.f32 %v1986_v60, %v1981_v42 }
0x14f0   :  { %v1988_v46 = vsel %vm68_vm1, %v1987_v43, 0.0  ;;  %v1996_v26 = vmul.f32 %v1987_v43, %v1987_v43 }
0x14f1   :  { %v1989_v29 = vrot.slane %v1988_v46, 4 }
0x14f2   :  { %v1997_v47 = vsel %vm68_vm1, %v1996_v26, 0.0 }
0x14f3   :  { %v1990_v49 = vadd.f32 %v1989_v29, %v1988_v46  ;;  %v1998_v4 = vrot.slane %v1997_v47, 4 }
0x14f5   :  { %v1991_v7 = vrot.slane %v1990_v49, 2  ;;  %v1999_v13 = vadd.f32 %v1998_v4, %v1997_v47 }
0x14f7   :  { %v1992_v25 = vadd.f32 %v1991_v7, %v1990_v49  ;;  %v2000_v51 = vrot.slane %v1999_v13, 2 }
0x14f9   :  { %v1993_v12 = vrot.slane %v1992_v25, 1  ;;  %v2001_v1 = vadd.f32 %v2000_v51, %v1999_v13 }
0x14fb   :  { %v1994_v53 = vadd.f32 %v1993_v12, %v1992_v25  ;;  %v2002_v54 = vrot.slane %v2001_v1, 1 }
0x14fd   :  { %v1995_v2 = vmul.f32 0.125, %v1994_v53  ;;  %v2003_v57 = vadd.f32 %v2002_v54, %v2001_v1 }
0x14ff   :  { %v2004_v59 = vmul.f32 0.125, %v2003_v57  ;;  %v2005_v0 = vmul.f32 %v1995_v2, %v1995_v2 }
0x1501   :  { %v2006_v61 = vsub.f32 %v2004_v59, %v2005_v0 }
0x1503   :  { %v2007_v62 = vadd.f32 1e-05, %v2006_v61 }
0x1505   :  { %5826 = vrsqrt.f32 %v2007_v62 }
0x150f   :  { %v5827_v63 = vpop.eup %5826 }
0x1510   :  { %v2009_v40 = vmul.f32 %v6270_v34, %v5827_v63 }
0x1512   :  { %v2010_v44 = vmul.f32 %v2009_v40, %v1995_v2  ;;  %v2016_v8 = vrot.slane %v2009_v40, %v6009_v41 }
0x1514   :  { %v2011_v11 = vsub.f32 %v6277_v19, %v2010_v44  ;;  %v2018_v14 = vmul.f32 %v2016_v8, %v1987_v43 }
0x1516   :  { %v2023_v15 = vrot.slane %v2011_v11, %v6009_v41 }
0x1518   :  { %v2025_v16 = vadd.f32 %v2023_v15, %v2018_v14 }
0x151a   :  { %v2026_v17 = vmul.f32 0.01, %v2025_v16 }
0x151c   :  { %v2027_v18 = vmax.f32 %v2025_v16, %v2026_v17 }
0x151e   :  { %5289 = vmatmul.mubr.msk.f32.vlgmr.msra.gmra.mrb[16].mxu0 %vm68_vm1, %v2027_v18 }
0x151f   :  { %5654 = vmatpush3.bf16.msra.mxu0 %v5970_v5  ;;  %5310 = vmatprep.mubr.msk.f32.mxu0 %vm5902_vm0, %v5903_v10 }
0x1520   :  { %5655 = vmatprep.subr.bf16.mxu0 %v5901_v6 }
0x1523   :  { %5657 = vmatpush3.bf16.msra.mxu0 %v5982_v9 }
0x1524   :  { %5664 = vmatprep.subr.bf16.mxu0 %v5901_v6 }
0x15f1   :  { %v2097_v20 = vpop.f32.mrb[16].mxu0 }
0x15f2   :  { %v2101_v21 = vsel %vm68_vm1, %v2097_v20, 0.0  ;;  %v2109_v45 = vmul.f32 %v2097_v20, %v2097_v20  ;;  %v5290_v48 = vpop.f32.mrb[17].mxu0 }
0x15f3   :  { %v2102_v22 = vrot.slane %v2101_v21, 4 }
0x15f4   :  { %v2110_v23 = vsel %vm68_vm1, %v2109_v45, 0.0 }
0x15f5   :  { %v2103_v24 = vadd.f32 %v2102_v22, %v2101_v21  ;;  %v2111_v27 = vrot.slane %v2110_v23, 4 }
0x15f7   :  { %v2104_v28 = vrot.slane %v2103_v24, 2  ;;  %v2112_v30 = vadd.f32 %v2111_v27, %v2110_v23 }
0x15f9   :  { %v2105_v31 = vadd.f32 %v2104_v28, %v2103_v24  ;;  %v2113_v32 = vrot.slane %v2112_v30, 2 }
0x15fb   :  { %v2106_v33 = vrot.slane %v2105_v31, 1  ;;  %v2114_v35 = vadd.f32 %v2113_v32, %v2112_v30 }
0x15fd   :  { %v2107_v37 = vadd.f32 %v2106_v33, %v2105_v31  ;;  %v2115_v39 = vrot.slane %v2114_v35, 1 }
0x15ff   :  { %v2108_v60 = vmul.f32 0.125, %v2107_v37  ;;  %v2116_v42 = vadd.f32 %v2115_v39, %v2114_v35 }
0x1601   :  { %v2117_v43 = vmul.f32 0.125, %v2116_v42  ;;  %v2118_v46 = vmul.f32 %v2108_v60, %v2108_v60 }
0x1603   :  { %v2119_v26 = vsub.f32 %v2117_v43, %v2118_v46 }
0x1605   :  { %v2120_v29 = vadd.f32 1e-05, %v2119_v26 }
0x1607   :  { %5828 = vrsqrt.f32 %v2120_v29 }
0x1611   :  { %v5829_v47 = vpop.eup %5828 }
0x1612   :  { %v2122_v49 = vmul.f32 %v6293_v52, %v5829_v47 }
0x1614   :  { %v2123_v4 = vmul.f32 %v2122_v49, %v2108_v60  ;;  %v2129_v7 = vrot.slane %v2122_v49, %v6009_v41 }
0x1616   :  { %v2124_v13 = vsub.f32 %v6300_v56, %v2123_v4  ;;  %v2131_v25 = vmul.f32 %v2129_v7, %v2097_v20 }
0x1618   :  { %v2136_v51 = vrot.slane %v2124_v13, %v6009_v41 }
0x161a   :  { %v2138_v12 = vadd.f32 %v2136_v51, %v2131_v25 }
0x161c   :  { %v2139_v1 = vmul.f32 0.01, %v2138_v12 }
0x161e   :  { %v2140_v53 = vmax.f32 %v2138_v12, %v2139_v1 }
0x1620   :  { %5300 = vmatmul.mubr.msk.f32.vlgmr.msra.gmra.mrb[16].mxu1 %vm68_vm1, %v2140_v53 }
0x1621   :  { %5660 = vmatpush3.bf16.msra.mxu1 %v6033_v55  ;;  %5321 = vmatprep.mubr.msk.f32.mxu1 %vm5902_vm0, %v5903_v10 }
0x1622   :  { %5661 = vmatprep.subr.bf16.mxu1 %v5901_v6 }
0x1625   :  { %5663 = vmatpush3.bf16.msra.mxu1 %v6043_v58 }
0x1626   :  { %5670 = vmatprep.subr.bf16.mxu1 %v5901_v6 }
0x16f3   :  { %v2210_v54 = vpop.f32.mrb[16].mxu1 }
0x16f4   :  { %v2211_v2 = vadd.f32 %v6314_v3, %v2210_v54  ;;  %v5301_v57 = vpop.f32.mrb[17].mxu1 }
0x16f6   :  { %v6386_v59 = vadd.f32 %v2211_v2, %v6352_v36 }
0x16f8   :  { %2222 = vperm.xlu0 %5790, %v6386_v59   ;;  %2217 = vperm.xlu1 %5793, %v6386_v59  }
0x1777   :  { %v2223_v0 = vpop.permute.xlu0 %2222  ;;  %v2218_v61 = vpop.permute.xlu1 %2217 }
0x1778   :  { %v2225_v62 = vmul.f32 %v6256_v50, %v2223_v0  ;;  %v2220_v63 = vmul.f32 %v6262_v38, %v2218_v61 }
0x177a   :  { %v2226_v40 = vadd.f32 %v2225_v62, %v2220_v63 }
0x177c   :  { %v2227_v44 = vsel %vm68_vm1, %v2226_v40, 0.0  ;;  %v2235_v8 = vmul.f32 %v2226_v40, %v2226_v40 }
0x177d   :  { %v2228_v11 = vrot.slane %v2227_v44, 4 }
0x177e   :  { %v2236_v14 = vsel %vm68_vm1, %v2235_v8, 0.0 }
0x177f   :  { %v2229_v15 = vadd.f32 %v2228_v11, %v2227_v44  ;;  %v2237_v36 = vrot.slane %v2236_v14, 4 }
0x1781   :  { %v2230_v16 = vrot.slane %v2229_v15, 2  ;;  %v2238_v17 = vadd.f32 %v2237_v36, %v2236_v14 }
0x1783   :  { %v2231_v18 = vadd.f32 %v2230_v16, %v2229_v15  ;;  %v2239_v20 = vrot.slane %v2238_v17, 2 }
0x1785   :  { %v2232_v21 = vrot.slane %v2231_v18, 1  ;;  %v2240_v45 = vadd.f32 %v2239_v20, %v2238_v17 }
0x1787   :  { %v2233_v48 = vadd.f32 %v2232_v21, %v2231_v18  ;;  %v2241_v22 = vrot.slane %v2240_v45, 1 }
0x1789   :  { %v2234_v23 = vmul.f32 0.125, %v2233_v48  ;;  %v2242_v24 = vadd.f32 %v2241_v22, %v2240_v45 }
0x178b   :  { %v2243_v27 = vmul.f32 0.125, %v2242_v24  ;;  %v2244_v28 = vmul.f32 %v2234_v23, %v2234_v23 }
0x178d   :  { %v2245_v30 = vsub.f32 %v2243_v27, %v2244_v28 }
0x178f   :  { %v2246_v31 = vadd.f32 1e-05, %v2245_v30 }
0x1791   :  { %5830 = vrsqrt.f32 %v2246_v31 }
0x179b   :  { %v5831_v32 = vpop.eup %5830 }
0x179c   :  { %v2248_v33 = vmul.f32 %v6270_v34, %v5831_v32 }
0x179e   :  { %v2249_v35 = vmul.f32 %v2248_v33, %v2234_v23  ;;  %v2255_v37 = vrot.slane %v2248_v33, %v6009_v41 }
0x17a0   :  { %v2250_v39 = vsub.f32 %v6277_v19, %v2249_v35  ;;  %v2257_v60 = vmul.f32 %v2255_v37, %v2226_v40 }
0x17a2   :  { %v2262_v42 = vrot.slane %v2250_v39, %v6009_v41 }
0x17a4   :  { %v2264_v43 = vadd.f32 %v2262_v42, %v2257_v60 }
0x17a6   :  { %v2265_v46 = vmul.f32 0.01, %v2264_v43 }
0x17a8   :  { %v2266_v26 = vmax.f32 %v2264_v43, %v2265_v46 }
0x17aa   :  { %5311 = vmatmul.mubr.msk.f32.vlgmr.msra.gmra.mrb[18].mxu0 %vm68_vm1, %v2266_v26 }
0x17ab   :  { %5666 = vmatpush3.bf16.msra.mxu0 %v5970_v5  ;;  %5332 = vmatprep.mubr.msk.f32.mxu0 %vm5902_vm0, %v5903_v10 }
0x17ac   :  { %5667 = vmatprep.subr.bf16.mxu0 %v5901_v6 }
0x17af   :  { %5669 = vmatpush3.bf16.msra.mxu0 %v5982_v9 }
0x17b0   :  { %5676 = vmatprep.subr.bf16.mxu0 %v5901_v6 }
0x187d   :  { %v2336_v29 = vpop.f32.mrb[18].mxu0 }
0x187e   :  { %v2340_v47 = vsel %vm68_vm1, %v2336_v29, 0.0  ;;  %v2348_v49 = vmul.f32 %v2336_v29, %v2336_v29  ;;  %v5312_v4 = vpop.f32.mrb[19].mxu0 }
0x187f   :  { %v2341_v7 = vrot.slane %v2340_v47, 4 }
0x1880   :  { %v2349_v13 = vsel %vm68_vm1, %v2348_v49, 0.0 }
0x1881   :  { %v2342_v25 = vadd.f32 %v2341_v7, %v2340_v47  ;;  %v2350_v51 = vrot.slane %v2349_v13, 4 }
0x1883   :  { %v2343_v12 = vrot.slane %v2342_v25, 2  ;;  %v2351_v1 = vadd.f32 %v2350_v51, %v2349_v13 }
0x1885   :  { %v2344_v53 = vadd.f32 %v2343_v12, %v2342_v25  ;;  %v2352_v54 = vrot.slane %v2351_v1, 2 }
0x1887   :  { %v2345_v2 = vrot.slane %v2344_v53, 1  ;;  %v2353_v57 = vadd.f32 %v2352_v54, %v2351_v1 }
0x1889   :  { %v2346_v0 = vadd.f32 %v2345_v2, %v2344_v53  ;;  %v2354_v61 = vrot.slane %v2353_v57, 1 }
0x188b   :  { %v2347_v62 = vmul.f32 0.125, %v2346_v0  ;;  %v2355_v63 = vadd.f32 %v2354_v61, %v2353_v57 }
0x188d   :  { %v2356_v40 = vmul.f32 0.125, %v2355_v63  ;;  %v2357_v44 = vmul.f32 %v2347_v62, %v2347_v62 }
0x188f   :  { %v2358_v8 = vsub.f32 %v2356_v40, %v2357_v44 }
0x1891   :  { %v2359_v11 = vadd.f32 1e-05, %v2358_v8 }
0x1893   :  { %5832 = vrsqrt.f32 %v2359_v11 }
0x189d   :  { %v5833_v14 = vpop.eup %5832 }
0x189e   :  { %v2361_v15 = vmul.f32 %v6293_v52, %v5833_v14 }
0x18a0   :  { %v2362_v36 = vmul.f32 %v2361_v15, %v2347_v62  ;;  %v2368_v16 = vrot.slane %v2361_v15, %v6009_v41 }
0x18a2   :  { %v2363_v17 = vsub.f32 %v6300_v56, %v2362_v36  ;;  %v2370_v18 = vmul.f32 %v2368_v16, %v2336_v29 }
0x18a4   :  { %v2375_v20 = vrot.slane %v2363_v17, %v6009_v41 }
0x18a6   :  { %v2377_v21 = vadd.f32 %v2375_v20, %v2370_v18 }
0x18a8   :  { %v2378_v45 = vmul.f32 0.01, %v2377_v21 }
0x18aa   :  { %v2379_v48 = vmax.f32 %v2377_v21, %v2378_v45 }
0x18ac   :  { %5322 = vmatmul.mubr.msk.f32.vlgmr.msra.gmra.mrb[18].mxu1 %vm68_vm1, %v2379_v48 }
0x18ad   :  { %5672 = vmatpush3.bf16.msra.mxu1 %v6033_v55  ;;  %5343 = vmatprep.mubr.msk.f32.mxu1 %vm5902_vm0, %v5903_v10 }
0x18ae   :  { %5673 = vmatprep.subr.bf16.mxu1 %v5901_v6 }
0x18b1   :  { %5675 = vmatpush3.bf16.msra.mxu1 %v6043_v58 }
0x18b2   :  { %5682 = vmatprep.subr.bf16.mxu1 %v5901_v6 }
0x197f   :  { %v2449_v22 = vpop.f32.mrb[18].mxu1 }
0x1980   :  { %v2450_v23 = vadd.f32 %v6314_v3, %v2449_v22  ;;  %v5323_v24 = vpop.f32.mrb[19].mxu1 }
0x1982   :  { %v6420_v27 = vadd.f32 %v2450_v23, %v6386_v59 }
0x1984   :  { %2461 = vperm.xlu0 %5790, %v6420_v27   ;;  %2456 = vperm.xlu1 %5793, %v6420_v27  }
0x1a03   :  { %v2462_v28 = vpop.permute.xlu0 %2461  ;;  %v2457_v30 = vpop.permute.xlu1 %2456 }
0x1a04   :  { %v2464_v31 = vmul.f32 %v6256_v50, %v2462_v28  ;;  %v2459_v32 = vmul.f32 %v6262_v38, %v2457_v30 }
0x1a06   :  { %v2465_v33 = vadd.f32 %v2464_v31, %v2459_v32 }
0x1a08   :  { %v2466_v35 = vsel %vm68_vm1, %v2465_v33, 0.0  ;;  %v2474_v37 = vmul.f32 %v2465_v33, %v2465_v33 }
0x1a09   :  { %v2467_v39 = vrot.slane %v2466_v35, 4 }
0x1a0a   :  { %v2475_v60 = vsel %vm68_vm1, %v2474_v37, 0.0 }
0x1a0b   :  { %v2468_v42 = vadd.f32 %v2467_v39, %v2466_v35  ;;  %v2476_v59 = vrot.slane %v2475_v60, 4 }
0x1a0d   :  { %v2469_v43 = vrot.slane %v2468_v42, 2  ;;  %v2477_v46 = vadd.f32 %v2476_v59, %v2475_v60 }
0x1a0f   :  { %v2470_v26 = vadd.f32 %v2469_v43, %v2468_v42  ;;  %v2478_v29 = vrot.slane %v2477_v46, 2 }
0x1a11   :  { %v2471_v47 = vrot.slane %v2470_v26, 1  ;;  %v2479_v49 = vadd.f32 %v2478_v29, %v2477_v46 }
0x1a13   :  { %v2472_v4 = vadd.f32 %v2471_v47, %v2470_v26  ;;  %v2480_v7 = vrot.slane %v2479_v49, 1 }
0x1a15   :  { %v2473_v13 = vmul.f32 0.125, %v2472_v4  ;;  %v2481_v25 = vadd.f32 %v2480_v7, %v2479_v49 }
0x1a17   :  { %v2482_v51 = vmul.f32 0.125, %v2481_v25  ;;  %v2483_v12 = vmul.f32 %v2473_v13, %v2473_v13 }
0x1a19   :  { %v2484_v1 = vsub.f32 %v2482_v51, %v2483_v12 }
0x1a1b   :  { %v2485_v53 = vadd.f32 1e-05, %v2484_v1 }
0x1a1d   :  { %5834 = vrsqrt.f32 %v2485_v53 }
0x1a27   :  { %v5835_v54 = vpop.eup %5834 }
0x1a28   :  { %v2487_v2 = vmul.f32 %v6270_v34, %v5835_v54 }
0x1a2a   :  { %v2488_v57 = vmul.f32 %v2487_v2, %v2473_v13  ;;  %v2494_v0 = vrot.slane %v2487_v2, %v6009_v41 }
0x1a2c   :  { %v2489_v61 = vsub.f32 %v6277_v19, %v2488_v57  ;;  %v2496_v62 = vmul.f32 %v2494_v0, %v2465_v33 }
0x1a2e   :  { %v2501_v63 = vrot.slane %v2489_v61, %v6009_v41 }
0x1a30   :  { %v2503_v40 = vadd.f32 %v2501_v63, %v2496_v62 }
0x1a32   :  { %v2504_v44 = vmul.f32 0.01, %v2503_v40 }
0x1a34   :  { %v2505_v8 = vmax.f32 %v2503_v40, %v2504_v44 }
0x1a36   :  { %5333 = vmatmul.mubr.msk.f32.vlgmr.msra.gmra.mrb[20].mxu0 %vm68_vm1, %v2505_v8 }
0x1a37   :  { %5678 = vmatpush3.bf16.msra.mxu0 %v5970_v5  ;;  %5354 = vmatprep.mubr.msk.f32.mxu0 %vm5902_vm0, %v5903_v10 }
0x1a38   :  { %5679 = vmatprep.subr.bf16.mxu0 %v5901_v6 }
0x1a3b   :  { %5681 = vmatpush3.bf16.msra.mxu0 %v5982_v9 }
0x1a3c   :  { %5688 = vmatprep.subr.bf16.mxu0 %v5901_v6 }
0x1b09   :  { %v2575_v11 = vpop.f32.mrb[20].mxu0 }
0x1b0a   :  { %v2579_v14 = vsel %vm68_vm1, %v2575_v11, 0.0  ;;  %v2587_v15 = vmul.f32 %v2575_v11, %v2575_v11  ;;  %v5334_v36 = vpop.f32.mrb[21].mxu0 }
0x1b0b   :  { %v2580_v16 = vrot.slane %v2579_v14, 4 }
0x1b0c   :  { %v2588_v17 = vsel %vm68_vm1, %v2587_v15, 0.0 }
0x1b0d   :  { %v2581_v18 = vadd.f32 %v2580_v16, %v2579_v14  ;;  %v2589_v20 = vrot.slane %v2588_v17, 4 }
0x1b0f   :  { %v2582_v21 = vrot.slane %v2581_v18, 2  ;;  %v2590_v45 = vadd.f32 %v2589_v20, %v2588_v17 }
0x1b11   :  { %v2583_v48 = vadd.f32 %v2582_v21, %v2581_v18  ;;  %v2591_v22 = vrot.slane %v2590_v45, 2 }
0x1b13   :  { %v2584_v23 = vrot.slane %v2583_v48, 1  ;;  %v2592_v24 = vadd.f32 %v2591_v22, %v2590_v45 }
0x1b15   :  { %v2585_v28 = vadd.f32 %v2584_v23, %v2583_v48  ;;  %v2593_v30 = vrot.slane %v2592_v24, 1 }
0x1b17   :  { %v2586_v31 = vmul.f32 0.125, %v2585_v28  ;;  %v2594_v32 = vadd.f32 %v2593_v30, %v2592_v24 }
0x1b19   :  { %v2595_v33 = vmul.f32 0.125, %v2594_v32  ;;  %v2596_v35 = vmul.f32 %v2586_v31, %v2586_v31 }
0x1b1b   :  { %v2597_v37 = vsub.f32 %v2595_v33, %v2596_v35 }
0x1b1d   :  { %v2598_v39 = vadd.f32 1e-05, %v2597_v37 }
0x1b1f   :  { %5836 = vrsqrt.f32 %v2598_v39 }
0x1b29   :  { %v5837_v60 = vpop.eup %5836 }
0x1b2a   :  { %v2600_v42 = vmul.f32 %v6293_v52, %v5837_v60 }
0x1b2c   :  { %v2601_v59 = vmul.f32 %v2600_v42, %v2586_v31  ;;  %v2607_v43 = vrot.slane %v2600_v42, %v6009_v41 }
0x1b2e   :  { %v2602_v46 = vsub.f32 %v6300_v56, %v2601_v59  ;;  %v2609_v26 = vmul.f32 %v2607_v43, %v2575_v11 }
0x1b30   :  { %v2614_v29 = vrot.slane %v2602_v46, %v6009_v41 }
0x1b32   :  { %v2616_v47 = vadd.f32 %v2614_v29, %v2609_v26 }
0x1b34   :  { %v2617_v49 = vmul.f32 0.01, %v2616_v47 }
0x1b36   :  { %v2618_v4 = vmax.f32 %v2616_v47, %v2617_v49 }
0x1b38   :  { %5344 = vmatmul.mubr.msk.f32.vlgmr.msra.gmra.mrb[20].mxu1 %vm68_vm1, %v2618_v4 }
0x1b39   :  { %5684 = vmatpush3.bf16.msra.mxu1 %v6033_v55  ;;  %5365 = vmatprep.mubr.msk.f32.mxu1 %vm5902_vm0, %v5903_v10 }
0x1b3a   :  { %5685 = vmatprep.subr.bf16.mxu1 %v5901_v6 }
0x1b3d   :  { %5687 = vmatpush3.bf16.msra.mxu1 %v6043_v58 }
0x1b3e   :  { %5694 = vmatprep.subr.bf16.mxu1 %v5901_v6 }
0x1c0b   :  { %v2688_v7 = vpop.f32.mrb[20].mxu1 }
0x1c0c   :  { %v2689_v13 = vadd.f32 %v6314_v3, %v2688_v7  ;;  %v5345_v25 = vpop.f32.mrb[21].mxu1 }
0x1c0e   :  { %v6454_v51 = vadd.f32 %v2689_v13, %v6420_v27 }
0x1c10   :  { %2700 = vperm.xlu0 %5790, %v6454_v51   ;;  %2695 = vperm.xlu1 %5793, %v6454_v51  }
0x1c8f   :  { %v2701_v12 = vpop.permute.xlu0 %2700  ;;  %v2696_v1 = vpop.permute.xlu1 %2695 }
0x1c90   :  { %v2703_v53 = vmul.f32 %v6256_v50, %v2701_v12  ;;  %v2698_v54 = vmul.f32 %v6262_v38, %v2696_v1 }
0x1c92   :  { %v2704_v2 = vadd.f32 %v2703_v53, %v2698_v54 }
0x1c94   :  { %v2705_v57 = vsel %vm68_vm1, %v2704_v2, 0.0  ;;  %v2713_v0 = vmul.f32 %v2704_v2, %v2704_v2 }
0x1c95   :  { %v2706_v61 = vrot.slane %v2705_v57, 4 }
0x1c96   :  { %v2714_v62 = vsel %vm68_vm1, %v2713_v0, 0.0 }
0x1c97   :  { %v2707_v63 = vadd.f32 %v2706_v61, %v2705_v57  ;;  %v2715_v27 = vrot.slane %v2714_v62, 4 }
0x1c99   :  { %v2708_v40 = vrot.slane %v2707_v63, 2  ;;  %v2716_v44 = vadd.f32 %v2715_v27, %v2714_v62 }
0x1c9b   :  { %v2709_v8 = vadd.f32 %v2708_v40, %v2707_v63  ;;  %v2717_v11 = vrot.slane %v2716_v44, 2 }
0x1c9d   :  { %v2710_v14 = vrot.slane %v2709_v8, 1  ;;  %v2718_v15 = vadd.f32 %v2717_v11, %v2716_v44 }
0x1c9f   :  { %v2711_v36 = vadd.f32 %v2710_v14, %v2709_v8  ;;  %v2719_v16 = vrot.slane %v2718_v15, 1 }
0x1ca1   :  { %v2712_v50 = vmul.f32 0.125, %v2711_v36  ;;  %v2720_v17 = vadd.f32 %v2719_v16, %v2718_v15  ;;  %v6495_v16 = vld [vmem:[%s6824_s1 + $0x1] ss:$0 sm:$0xff] }
0x1ca3   :  { %v2721_v38 = vmul.f32 0.125, %v2720_v17  ;;  %v2722_v18 = vmul.f32 %v2712_v50, %v2712_v50 }
0x1ca5   :  { %v2723_v20 = vsub.f32 %v2721_v38, %v2722_v18 }
0x1ca7   :  { %v2724_v21 = vadd.f32 1e-05, %v2723_v20 }
0x1ca9   :  { %5838 = vrsqrt.f32 %v2724_v21 }
0x1cb3   :  { %v5839_v45 = vpop.eup %5838 }
0x1cb4   :  { %v2726_v48 = vmul.f32 %v6270_v34, %v5839_v45 }
0x1cb6   :  { %v2727_v22 = vmul.f32 %v2726_v48, %v2712_v50  ;;  %v2733_v23 = vrot.slane %v2726_v48, %v6009_v41 }
0x1cb8   :  { %v2728_v24 = vsub.f32 %v6277_v19, %v2727_v22  ;;  %v2735_v28 = vmul.f32 %v2733_v23, %v2704_v2 }
0x1cba   :  { %v2740_v30 = vrot.slane %v2728_v24, %v6009_v41 }
0x1cbc   :  { %v2742_v31 = vadd.f32 %v2740_v30, %v2735_v28 }
0x1cbe   :  { %v2743_v32 = vmul.f32 0.01, %v2742_v31 }
0x1cc0   :  { %v2744_v33 = vmax.f32 %v2742_v31, %v2743_v32 }
0x1cc2   :  { %5355 = vmatmul.mubr.msk.f32.vlgmr.msra.gmra.mrb[22].mxu0 %vm68_vm1, %v2744_v33 }
0x1cc3   :  { %5690 = vmatpush3.bf16.msra.mxu0 %v5970_v5  ;;  %5376 = vmatprep.mubr.msk.f32.mxu0 %vm5902_vm0, %v5903_v10 }
0x1cc4   :  { %5691 = vmatprep.subr.bf16.mxu0 %v5901_v6 }
0x1cc7   :  { %5693 = vmatpush3.bf16.msra.mxu0 %v5982_v9 }
0x1cc8   :  { %5700 = vmatprep.subr.bf16.mxu0 %v5901_v6 }
0x1d95   :  { %v2814_v34 = vpop.f32.mrb[22].mxu0 }
0x1d96   :  { %v2818_v19 = vsel %vm68_vm1, %v2814_v34, 0.0  ;;  %v2826_v35 = vmul.f32 %v2814_v34, %v2814_v34  ;;  %v5356_v37 = vpop.f32.mrb[23].mxu0 }
0x1d97   :  { %v2819_v39 = vrot.slane %v2818_v19, 4 }
0x1d98   :  { %v2827_v60 = vsel %vm68_vm1, %v2826_v35, 0.0 }
0x1d99   :  { %v2820_v42 = vadd.f32 %v2819_v39, %v2818_v19  ;;  %v2828_v59 = vrot.slane %v2827_v60, 4 }
0x1d9b   :  { %v2821_v43 = vrot.slane %v2820_v42, 2  ;;  %v2829_v46 = vadd.f32 %v2828_v59, %v2827_v60  ;;  %v6509_v59 = vld [vmem:[%s6825_s2] sm:$0x1] }
0x1d9d   :  { %v2822_v26 = vadd.f32 %v2821_v43, %v2820_v42  ;;  %v2830_v29 = vrot.slane %v2829_v46, 2 }
0x1d9f   :  { %v2823_v47 = vrot.slane %v2822_v26, 1  ;;  %v2831_v49 = vadd.f32 %v2830_v29, %v2829_v46  ;;  %v6516_v29 = vld [vmem:[%s6826_s3] sm:$0x1] }
0x1da1   :  { %v2824_v4 = vadd.f32 %v2823_v47, %v2822_v26  ;;  %v2832_v7 = vrot.slane %v2831_v49, 1 }
0x1da3   :  { %v2825_v13 = vmul.f32 0.125, %v2824_v4  ;;  %v2833_v25 = vadd.f32 %v2832_v7, %v2831_v49 }
0x1da5   :  { %v2834_v12 = vmul.f32 0.125, %v2833_v25  ;;  %v2835_v1 = vmul.f32 %v2825_v13, %v2825_v13 }
0x1da7   :  { %v2836_v53 = vsub.f32 %v2834_v12, %v2835_v1 }
0x1da9   :  { %v2837_v54 = vadd.f32 1e-05, %v2836_v53 }
0x1dab   :  { %5840 = vrsqrt.f32 %v2837_v54 }
0x1db5   :  { %v5841_v2 = vpop.eup %5840 }
0x1db6   :  { %v2839_v57 = vmul.f32 %v6293_v52, %v5841_v2 }
0x1db8   :  { %v2840_v0 = vmul.f32 %v2839_v57, %v2825_v13  ;;  %v2846_v61 = vrot.slane %v2839_v57, %v6009_v41 }
0x1dba   :  { %v2841_v62 = vsub.f32 %v6300_v56, %v2840_v0  ;;  %v2848_v63 = vmul.f32 %v2846_v61, %v2814_v34 }
0x1dbc   :  { %v2853_v27 = vrot.slane %v2841_v62, %v6009_v41 }
0x1dbe   :  { %v2855_v40 = vadd.f32 %v2853_v27, %v2848_v63 }
0x1dc0   :  { %v2856_v44 = vmul.f32 0.01, %v2855_v40 }
0x1dc2   :  { %v2857_v8 = vmax.f32 %v2855_v40, %v2856_v44 }
0x1dc4   :  { %5366 = vmatmul.mubr.msk.f32.vlgmr.msra.gmra.mrb[22].mxu1 %vm68_vm1, %v2857_v8 }
0x1dc5   :  { %5696 = vmatpush3.bf16.msra.mxu1 %v6033_v55  ;;  %5387 = vmatprep.mubr.msk.f32.mxu1 %vm5902_vm0, %v5903_v10 }
0x1dc6   :  { %5697 = vmatprep.subr.bf16.mxu1 %v5901_v6 }
0x1dc9   :  { %5699 = vmatpush3.bf16.msra.mxu1 %v6043_v58 }
0x1dca   :  { %5706 = vmatprep.subr.bf16.mxu1 %v5901_v6 }
0x1e97   :  { %v2927_v52 = vpop.f32.mrb[22].mxu1 }
0x1e98   :  { %v2928_v56 = vadd.f32 %v6314_v3, %v2927_v52  ;;  %v5367_v11 = vpop.f32.mrb[23].mxu1  ;;  %v6501_v3 = vld [vmem:[%s6824_s1] ss:$0 sm:$0xff] }
0x1e9a   :  { %v6488_v14 = vadd.f32 %v2928_v56, %v6454_v51 }
0x1e9c   :  { %2939 = vperm.xlu0 %5790, %v6488_v14   ;;  %2934 = vperm.xlu1 %5793, %v6488_v14  }
0x1f1b   :  { %v2940_v15 = vpop.permute.xlu0 %2939  ;;  %v2935_v36 = vpop.permute.xlu1 %2934 }
0x1f1c   :  { %v2942_v50 = vmul.f32 %v6495_v16, %v2940_v15  ;;  %v2937_v51 = vmul.f32 %v6501_v3, %v2935_v36 }
0x1f1e   :  { %v2943_v17 = vadd.f32 %v2942_v50, %v2937_v51 }
0x1f20   :  { %v2944_v38 = vsel %vm68_vm1, %v2943_v17, 0.0  ;;  %v2952_v18 = vmul.f32 %v2943_v17, %v2943_v17 }
0x1f21   :  { %v2945_v20 = vrot.slane %v2944_v38, 4 }
0x1f22   :  { %v2953_v21 = vsel %vm68_vm1, %v2952_v18, 0.0  ;;  %v6532_v18 = vld [vmem:[%s6828_s5] sm:$0x1] }
0x1f23   :  { %v2946_v45 = vadd.f32 %v2945_v20, %v2944_v38  ;;  %v2954_v48 = vrot.slane %v2953_v21, 4 }
0x1f25   :  { %v2947_v22 = vrot.slane %v2946_v45, 2  ;;  %v2955_v23 = vadd.f32 %v2954_v48, %v2953_v21  ;;  %v6539_v48 = vld [vmem:[%s6829_s6] sm:$0x1] }
0x1f27   :  { %v2948_v24 = vadd.f32 %v2947_v22, %v2946_v45  ;;  %v2956_v28 = vrot.slane %v2955_v23, 2 }
0x1f29   :  { %v2949_v30 = vrot.slane %v2948_v24, 1  ;;  %v2957_v31 = vadd.f32 %v2956_v28, %v2955_v23 }
0x1f2b   :  { %v2950_v32 = vadd.f32 %v2949_v30, %v2948_v24  ;;  %v2958_v33 = vrot.slane %v2957_v31, 1 }
0x1f2d   :  { %v2951_v34 = vmul.f32 0.125, %v2950_v32  ;;  %v2959_v19 = vadd.f32 %v2958_v33, %v2957_v31  ;;  %v6553_v33 = vld [vmem:[%s6830_s8] ss:$0 sm:$0xff] }
0x1f2f   :  { %v2960_v35 = vmul.f32 0.125, %v2959_v19  ;;  %v2961_v37 = vmul.f32 %v2951_v34, %v2951_v34 }
0x1f31   :  { %v2962_v39 = vsub.f32 %v2960_v35, %v2961_v37 }
0x1f33   :  { %v2963_v60 = vadd.f32 1e-05, %v2962_v39 }
0x1f35   :  { %5842 = vrsqrt.f32 %v2963_v60 }
0x1f3f   :  { %v5843_v42 = vpop.eup %5842 }
0x1f40   :  { %v2965_v43 = vmul.f32 %v6509_v59, %v5843_v42 }
0x1f42   :  { %v2966_v46 = vmul.f32 %v2965_v43, %v2951_v34  ;;  %v2972_v26 = vrot.slane %v2965_v43, %v6009_v41 }
0x1f44   :  { %v2967_v47 = vsub.f32 %v6516_v29, %v2966_v46  ;;  %v2974_v49 = vmul.f32 %v2972_v26, %v2943_v17 }
0x1f46   :  { %v2979_v4 = vrot.slane %v2967_v47, %v6009_v41 }
0x1f48   :  { %v2981_v7 = vadd.f32 %v2979_v4, %v2974_v49 }
0x1f4a   :  { %v2982_v13 = vmul.f32 0.01, %v2981_v7 }
0x1f4c   :  { %v2983_v25 = vmax.f32 %v2981_v7, %v2982_v13 }
0x1f4e   :  { %5377 = vmatmul.mubr.msk.f32.vlgmr.msra.gmra.mrb[24].mxu0 %vm68_vm1, %v2983_v25 }
0x1f4f   :  { %5702 = vmatpush3.bf16.msra.mxu0 %v5970_v5  ;;  %5398 = vmatprep.mubr.msk.f32.mxu0 %vm5902_vm0, %v5903_v10 }
0x1f50   :  { %5703 = vmatprep.subr.bf16.mxu0 %v5901_v6 }
0x1f53   :  { %5705 = vmatpush3.bf16.msra.mxu0 %v5982_v9 }
0x1f54   :  { %5712 = vmatprep.subr.bf16.mxu0 %v5901_v6 }
0x2021   :  { %v3053_v12 = vpop.f32.mrb[24].mxu0 }
0x2022   :  { %v3057_v1 = vsel %vm68_vm1, %v3053_v12, 0.0  ;;  %v3065_v53 = vmul.f32 %v3053_v12, %v3053_v12  ;;  %v5378_v54 = vpop.f32.mrb[25].mxu0 }
0x2023   :  { %v3058_v2 = vrot.slane %v3057_v1, 4 }
0x2024   :  { %v3066_v57 = vsel %vm68_vm1, %v3065_v53, 0.0 }
0x2025   :  { %v3059_v0 = vadd.f32 %v3058_v2, %v3057_v1  ;;  %v3067_v61 = vrot.slane %v3066_v57, 4 }
0x2027   :  { %v3060_v62 = vrot.slane %v3059_v0, 2  ;;  %v3068_v63 = vadd.f32 %v3067_v61, %v3066_v57 }
0x2029   :  { %v3061_v27 = vadd.f32 %v3060_v62, %v3059_v0  ;;  %v3069_v40 = vrot.slane %v3068_v63, 2 }
0x202b   :  { %v3062_v44 = vrot.slane %v3061_v27, 1  ;;  %v3070_v8 = vadd.f32 %v3069_v40, %v3068_v63 }
0x202d   :  { %v3063_v52 = vadd.f32 %v3062_v44, %v3061_v27  ;;  %v3071_v56 = vrot.slane %v3070_v8, 1 }
0x202f   :  { %v3064_v11 = vmul.f32 0.125, %v3063_v52  ;;  %v3072_v15 = vadd.f32 %v3071_v56, %v3070_v8 }
0x2031   :  { %v3073_v36 = vmul.f32 0.125, %v3072_v15  ;;  %v3074_v50 = vmul.f32 %v3064_v11, %v3064_v11 }
0x2033   :  { %v3075_v51 = vsub.f32 %v3073_v36, %v3074_v50 }
0x2035   :  { %v3076_v17 = vadd.f32 1e-05, %v3075_v51 }
0x2037   :  { %5844 = vrsqrt.f32 %v3076_v17 }
0x2041   :  { %v5845_v38 = vpop.eup %5844 }
0x2042   :  { %v3078_v20 = vmul.f32 %v6532_v18, %v5845_v38 }
0x2044   :  { %v3079_v21 = vmul.f32 %v3078_v20, %v3064_v11  ;;  %v3085_v45 = vrot.slane %v3078_v20, %v6009_v41 }
0x2046   :  { %v3080_v22 = vsub.f32 %v6539_v48, %v3079_v21  ;;  %v3087_v23 = vmul.f32 %v3085_v45, %v3053_v12 }
0x2048   :  { %v3092_v24 = vrot.slane %v3080_v22, %v6009_v41 }
0x204a   :  { %v3094_v28 = vadd.f32 %v3092_v24, %v3087_v23 }
0x204c   :  { %v3095_v30 = vmul.f32 0.01, %v3094_v28 }
0x204e   :  { %v3096_v31 = vmax.f32 %v3094_v28, %v3095_v30 }
0x2050   :  { %5388 = vmatmul.mubr.msk.f32.vlgmr.msra.gmra.mrb[24].mxu1 %vm68_vm1, %v3096_v31 }
0x2051   :  { %5708 = vmatpush3.bf16.msra.mxu1 %v6033_v55  ;;  %5409 = vmatprep.mubr.msk.f32.mxu1 %vm5902_vm0, %v5903_v10 }
0x2052   :  { %5709 = vmatprep.subr.bf16.mxu1 %v5901_v6 }
0x2055   :  { %5711 = vmatpush3.bf16.msra.mxu1 %v6043_v58 }
0x2056   :  { %5718 = vmatprep.subr.bf16.mxu1 %v5901_v6 }
0x2123   :  { %v3166_v32 = vpop.f32.mrb[24].mxu1 }
0x2124   :  { %v3167_v34 = vadd.f32 %v6553_v33, %v3166_v32  ;;  %v5389_v19 = vpop.f32.mrb[25].mxu1 }
0x2126   :  { %v6557_v35 = vadd.f32 %v3167_v34, %v6488_v14 }
0x2128   :  { %3178 = vperm.xlu0 %5790, %v6557_v35   ;;  %3173 = vperm.xlu1 %5793, %v6557_v35  }
0x21a7   :  { %v3179_v37 = vpop.permute.xlu0 %3178  ;;  %v3174_v39 = vpop.permute.xlu1 %3173 }
0x21a8   :  { %v3181_v60 = vmul.f32 %v6495_v16, %v3179_v37  ;;  %v3176_v42 = vmul.f32 %v6501_v3, %v3174_v39 }
0x21aa   :  { %v3182_v43 = vadd.f32 %v3181_v60, %v3176_v42 }
0x21ac   :  { %v3183_v46 = vsel %vm68_vm1, %v3182_v43, 0.0  ;;  %v3191_v26 = vmul.f32 %v3182_v43, %v3182_v43 }
0x21ad   :  { %v3184_v47 = vrot.slane %v3183_v46, 4 }
0x21ae   :  { %v3192_v49 = vsel %vm68_vm1, %v3191_v26, 0.0 }
0x21af   :  { %v3185_v4 = vadd.f32 %v3184_v47, %v3183_v46  ;;  %v3193_v14 = vrot.slane %v3192_v49, 4 }
0x21b1   :  { %v3186_v7 = vrot.slane %v3185_v4, 2  ;;  %v3194_v13 = vadd.f32 %v3193_v14, %v3192_v49 }
0x21b3   :  { %v3187_v25 = vadd.f32 %v3186_v7, %v3185_v4  ;;  %v3195_v12 = vrot.slane %v3194_v13, 2 }
0x21b5   :  { %v3188_v1 = vrot.slane %v3187_v25, 1  ;;  %v3196_v53 = vadd.f32 %v3195_v12, %v3194_v13 }
0x21b7   :  { %v3189_v54 = vadd.f32 %v3188_v1, %v3187_v25  ;;  %v3197_v2 = vrot.slane %v3196_v53, 1 }
0x21b9   :  { %v3190_v57 = vmul.f32 0.125, %v3189_v54  ;;  %v3198_v0 = vadd.f32 %v3197_v2, %v3196_v53 }
0x21bb   :  { %v3199_v61 = vmul.f32 0.125, %v3198_v0  ;;  %v3200_v62 = vmul.f32 %v3190_v57, %v3190_v57 }
0x21bd   :  { %v3201_v63 = vsub.f32 %v3199_v61, %v3200_v62 }
0x21bf   :  { %v3202_v27 = vadd.f32 1e-05, %v3201_v63 }
0x21c1   :  { %5846 = vrsqrt.f32 %v3202_v27 }
0x21cb   :  { %v5847_v40 = vpop.eup %5846 }
0x21cc   :  { %v3204_v44 = vmul.f32 %v6509_v59, %v5847_v40 }
0x21ce   :  { %v3205_v8 = vmul.f32 %v3204_v44, %v3190_v57  ;;  %v3211_v52 = vrot.slane %v3204_v44, %v6009_v41 }
0x21d0   :  { %v3206_v56 = vsub.f32 %v6516_v29, %v3205_v8  ;;  %v3213_v11 = vmul.f32 %v3211_v52, %v3182_v43 }
0x21d2   :  { %v3218_v15 = vrot.slane %v3206_v56, %v6009_v41 }
0x21d4   :  { %v3220_v36 = vadd.f32 %v3218_v15, %v3213_v11 }
0x21d6   :  { %v3221_v50 = vmul.f32 0.01, %v3220_v36 }
0x21d8   :  { %v3222_v51 = vmax.f32 %v3220_v36, %v3221_v50 }
0x21da   :  { %5399 = vmatmul.mubr.msk.f32.vlgmr.msra.gmra.mrb[26].mxu0 %vm68_vm1, %v3222_v51 }
0x21db   :  { %5714 = vmatpush3.bf16.msra.mxu0 %v5970_v5  ;;  %5420 = vmatprep.mubr.msk.f32.mxu0 %vm5902_vm0, %v5903_v10 }
0x21dc   :  { %5715 = vmatprep.subr.bf16.mxu0 %v5901_v6 }
0x21df   :  { %5717 = vmatpush3.bf16.msra.mxu0 %v5982_v9 }
0x21e0   :  { %5724 = vmatprep.subr.bf16.mxu0 %v5901_v6 }
0x22ad   :  { %v3292_v17 = vpop.f32.mrb[26].mxu0 }
0x22ae   :  { %v3296_v38 = vsel %vm68_vm1, %v3292_v17, 0.0  ;;  %v3304_v20 = vmul.f32 %v3292_v17, %v3292_v17  ;;  %v5400_v21 = vpop.f32.mrb[27].mxu0 }
0x22af   :  { %v3297_v45 = vrot.slane %v3296_v38, 4 }
0x22b0   :  { %v3305_v22 = vsel %vm68_vm1, %v3304_v20, 0.0 }
0x22b1   :  { %v3298_v23 = vadd.f32 %v3297_v45, %v3296_v38  ;;  %v3306_v24 = vrot.slane %v3305_v22, 4 }
0x22b3   :  { %v3299_v28 = vrot.slane %v3298_v23, 2  ;;  %v3307_v30 = vadd.f32 %v3306_v24, %v3305_v22 }
0x22b5   :  { %v3300_v31 = vadd.f32 %v3299_v28, %v3298_v23  ;;  %v3308_v32 = vrot.slane %v3307_v30, 2 }
0x22b7   :  { %v3301_v34 = vrot.slane %v3300_v31, 1  ;;  %v3309_v19 = vadd.f32 %v3308_v32, %v3307_v30 }
0x22b9   :  { %v3302_v37 = vadd.f32 %v3301_v34, %v3300_v31  ;;  %v3310_v39 = vrot.slane %v3309_v19, 1 }
0x22bb   :  { %v3303_v60 = vmul.f32 0.125, %v3302_v37  ;;  %v3311_v42 = vadd.f32 %v3310_v39, %v3309_v19 }
0x22bd   :  { %v3312_v43 = vmul.f32 0.125, %v3311_v42  ;;  %v3313_v46 = vmul.f32 %v3303_v60, %v3303_v60 }
0x22bf   :  { %v3314_v26 = vsub.f32 %v3312_v43, %v3313_v46 }
0x22c1   :  { %v3315_v47 = vadd.f32 1e-05, %v3314_v26 }
0x22c3   :  { %5848 = vrsqrt.f32 %v3315_v47 }
0x22cd   :  { %v5849_v49 = vpop.eup %5848 }
0x22ce   :  { %v3317_v4 = vmul.f32 %v6532_v18, %v5849_v49 }
0x22d0   :  { %v3318_v14 = vmul.f32 %v3317_v4, %v3303_v60  ;;  %v3324_v7 = vrot.slane %v3317_v4, %v6009_v41 }
0x22d2   :  { %v3319_v13 = vsub.f32 %v6539_v48, %v3318_v14  ;;  %v3326_v25 = vmul.f32 %v3324_v7, %v3292_v17 }
0x22d4   :  { %v3331_v12 = vrot.slane %v3319_v13, %v6009_v41 }
0x22d6   :  { %v3333_v1 = vadd.f32 %v3331_v12, %v3326_v25 }
0x22d8   :  { %v3334_v53 = vmul.f32 0.01, %v3333_v1 }
0x22da   :  { %v3335_v54 = vmax.f32 %v3333_v1, %v3334_v53 }
0x22dc   :  { %5410 = vmatmul.mubr.msk.f32.vlgmr.msra.gmra.mrb[26].mxu1 %vm68_vm1, %v3335_v54 }
0x22dd   :  { %5720 = vmatpush3.bf16.msra.mxu1 %v6033_v55  ;;  %5431 = vmatprep.mubr.msk.f32.mxu1 %vm5902_vm0, %v5903_v10 }
0x22de   :  { %5721 = vmatprep.subr.bf16.mxu1 %v5901_v6 }
0x22e1   :  { %5723 = vmatpush3.bf16.msra.mxu1 %v6043_v58 }
0x22e2   :  { %5730 = vmatprep.subr.bf16.mxu1 %v5901_v6 }
0x23af   :  { %v3405_v2 = vpop.f32.mrb[26].mxu1 }
0x23b0   :  { %v3406_v57 = vadd.f32 %v6553_v33, %v3405_v2  ;;  %v5411_v0 = vpop.f32.mrb[27].mxu1 }
0x23b2   :  { %v6591_v61 = vadd.f32 %v3406_v57, %v6557_v35 }
0x23b4   :  { %3417 = vperm.xlu0 %5790, %v6591_v61   ;;  %3412 = vperm.xlu1 %5793, %v6591_v61  }
0x2433   :  { %v3418_v62 = vpop.permute.xlu0 %3417  ;;  %v3413_v63 = vpop.permute.xlu1 %3412 }
0x2434   :  { %v3420_v27 = vmul.f32 %v6495_v16, %v3418_v62  ;;  %v3415_v40 = vmul.f32 %v6501_v3, %v3413_v63 }
0x2436   :  { %v3421_v44 = vadd.f32 %v3420_v27, %v3415_v40 }
0x2438   :  { %v3422_v8 = vsel %vm68_vm1, %v3421_v44, 0.0  ;;  %v3430_v52 = vmul.f32 %v3421_v44, %v3421_v44 }
0x2439   :  { %v3423_v56 = vrot.slane %v3422_v8, 4 }
0x243a   :  { %v3431_v11 = vsel %vm68_vm1, %v3430_v52, 0.0 }
0x243b   :  { %v3424_v15 = vadd.f32 %v3423_v56, %v3422_v8  ;;  %v3432_v35 = vrot.slane %v3431_v11, 4 }
0x243d   :  { %v3425_v36 = vrot.slane %v3424_v15, 2  ;;  %v3433_v50 = vadd.f32 %v3432_v35, %v3431_v11 }
0x243f   :  { %v3426_v51 = vadd.f32 %v3425_v36, %v3424_v15  ;;  %v3434_v17 = vrot.slane %v3433_v50, 2 }
0x2441   :  { %v3427_v38 = vrot.slane %v3426_v51, 1  ;;  %v3435_v20 = vadd.f32 %v3434_v17, %v3433_v50 }
0x2443   :  { %v3428_v21 = vadd.f32 %v3427_v38, %v3426_v51  ;;  %v3436_v45 = vrot.slane %v3435_v20, 1 }
0x2445   :  { %v3429_v22 = vmul.f32 0.125, %v3428_v21  ;;  %v3437_v23 = vadd.f32 %v3436_v45, %v3435_v20 }
0x2447   :  { %v3438_v24 = vmul.f32 0.125, %v3437_v23  ;;  %v3439_v28 = vmul.f32 %v3429_v22, %v3429_v22 }
0x2449   :  { %v3440_v30 = vsub.f32 %v3438_v24, %v3439_v28 }
0x244b   :  { %v3441_v31 = vadd.f32 1e-05, %v3440_v30 }
0x244d   :  { %5850 = vrsqrt.f32 %v3441_v31 }
0x2457   :  { %v5851_v32 = vpop.eup %5850 }
0x2458   :  { %v3443_v34 = vmul.f32 %v6509_v59, %v5851_v32 }
0x245a   :  { %v3444_v19 = vmul.f32 %v3443_v34, %v3429_v22  ;;  %v3450_v37 = vrot.slane %v3443_v34, %v6009_v41 }
0x245c   :  { %v3445_v39 = vsub.f32 %v6516_v29, %v3444_v19  ;;  %v3452_v60 = vmul.f32 %v3450_v37, %v3421_v44 }
0x245e   :  { %v3457_v42 = vrot.slane %v3445_v39, %v6009_v41 }
0x2460   :  { %v3459_v43 = vadd.f32 %v3457_v42, %v3452_v60 }
0x2462   :  { %v3460_v46 = vmul.f32 0.01, %v3459_v43 }
0x2464   :  { %v3461_v26 = vmax.f32 %v3459_v43, %v3460_v46 }
0x2466   :  { %5421 = vmatmul.mubr.msk.f32.vlgmr.msra.gmra.mrb[28].mxu0 %vm68_vm1, %v3461_v26 }
0x2467   :  { %5726 = vmatpush3.bf16.msra.mxu0 %v5970_v5  ;;  %5442 = vmatprep.mubr.msk.f32.mxu0 %vm5902_vm0, %v5903_v10 }
0x2468   :  { %5727 = vmatprep.subr.bf16.mxu0 %v5901_v6 }
0x246b   :  { %5729 = vmatpush3.bf16.msra.mxu0 %v5982_v9 }
0x246c   :  { %5736 = vmatprep.subr.bf16.mxu0 %v5901_v6 }
0x2539   :  { %v3531_v47 = vpop.f32.mrb[28].mxu0 }
0x253a   :  { %v3535_v49 = vsel %vm68_vm1, %v3531_v47, 0.0  ;;  %v3543_v4 = vmul.f32 %v3531_v47, %v3531_v47  ;;  %v5422_v14 = vpop.f32.mrb[29].mxu0 }
0x253b   :  { %v3536_v7 = vrot.slane %v3535_v49, 4 }
0x253c   :  { %v3544_v13 = vsel %vm68_vm1, %v3543_v4, 0.0 }
0x253d   :  { %v3537_v25 = vadd.f32 %v3536_v7, %v3535_v49  ;;  %v3545_v12 = vrot.slane %v3544_v13, 4 }
0x253f   :  { %v3538_v1 = vrot.slane %v3537_v25, 2  ;;  %v3546_v53 = vadd.f32 %v3545_v12, %v3544_v13 }
0x2541   :  { %v3539_v54 = vadd.f32 %v3538_v1, %v3537_v25  ;;  %v3547_v2 = vrot.slane %v3546_v53, 2 }
0x2543   :  { %v3540_v57 = vrot.slane %v3539_v54, 1  ;;  %v3548_v0 = vadd.f32 %v3547_v2, %v3546_v53 }
0x2545   :  { %v3541_v62 = vadd.f32 %v3540_v57, %v3539_v54  ;;  %v3549_v63 = vrot.slane %v3548_v0, 1 }
0x2547   :  { %v3542_v27 = vmul.f32 0.125, %v3541_v62  ;;  %v3550_v40 = vadd.f32 %v3549_v63, %v3548_v0 }
0x2549   :  { %v3551_v44 = vmul.f32 0.125, %v3550_v40  ;;  %v3552_v8 = vmul.f32 %v3542_v27, %v3542_v27 }
0x254b   :  { %v3553_v52 = vsub.f32 %v3551_v44, %v3552_v8 }
0x254d   :  { %v3554_v56 = vadd.f32 1e-05, %v3553_v52 }
0x254f   :  { %5852 = vrsqrt.f32 %v3554_v56 }
0x2559   :  { %v5853_v11 = vpop.eup %5852 }
0x255a   :  { %v3556_v15 = vmul.f32 %v6532_v18, %v5853_v11 }
0x255c   :  { %v3557_v35 = vmul.f32 %v3556_v15, %v3542_v27  ;;  %v3563_v36 = vrot.slane %v3556_v15, %v6009_v41 }
0x255e   :  { %v3558_v50 = vsub.f32 %v6539_v48, %v3557_v35  ;;  %v3565_v51 = vmul.f32 %v3563_v36, %v3531_v47 }
0x2560   :  { %v3570_v17 = vrot.slane %v3558_v50, %v6009_v41 }
0x2562   :  { %v3572_v38 = vadd.f32 %v3570_v17, %v3565_v51 }
0x2564   :  { %v3573_v20 = vmul.f32 0.01, %v3572_v38 }
0x2566   :  { %v3574_v21 = vmax.f32 %v3572_v38, %v3573_v20 }
0x2568   :  { %5432 = vmatmul.mubr.msk.f32.vlgmr.msra.gmra.mrb[28].mxu1 %vm68_vm1, %v3574_v21 }
0x2569   :  { %5732 = vmatpush3.bf16.msra.mxu1 %v6033_v55  ;;  %5453 = vmatprep.mubr.msk.f32.mxu1 %vm5902_vm0, %v5903_v10 }
0x256a   :  { %5733 = vmatprep.subr.bf16.mxu1 %v5901_v6 }
0x256d   :  { %5735 = vmatpush3.bf16.msra.mxu1 %v6043_v58 }
0x256e   :  { %5742 = vmatprep.subr.bf16.mxu1 %v5901_v6 }
0x263b   :  { %v3644_v45 = vpop.f32.mrb[28].mxu1 }
0x263c   :  { %v3645_v22 = vadd.f32 %v6553_v33, %v3644_v45  ;;  %v5433_v23 = vpop.f32.mrb[29].mxu1 }
0x263e   :  { %v6625_v24 = vadd.f32 %v3645_v22, %v6591_v61 }
0x2640   :  { %3656 = vperm.xlu0 %5790, %v6625_v24   ;;  %3651 = vperm.xlu1 %5793, %v6625_v24  }
0x26bf   :  { %v3657_v28 = vpop.permute.xlu0 %3656  ;;  %v3652_v30 = vpop.permute.xlu1 %3651 }
0x26c0   :  { %v3659_v31 = vmul.f32 %v6495_v16, %v3657_v28  ;;  %v3654_v32 = vmul.f32 %v6501_v3, %v3652_v30 }
0x26c2   :  { %v3660_v34 = vadd.f32 %v3659_v31, %v3654_v32 }
0x26c4   :  { %v3661_v19 = vsel %vm68_vm1, %v3660_v34, 0.0  ;;  %v3669_v37 = vmul.f32 %v3660_v34, %v3660_v34 }
0x26c5   :  { %v3662_v39 = vrot.slane %v3661_v19, 4 }
0x26c6   :  { %v3670_v60 = vsel %vm68_vm1, %v3669_v37, 0.0 }
0x26c7   :  { %v3663_v42 = vadd.f32 %v3662_v39, %v3661_v19  ;;  %v3671_v61 = vrot.slane %v3670_v60, 4 }
0x26c9   :  { %v3664_v43 = vrot.slane %v3663_v42, 2  ;;  %v3672_v46 = vadd.f32 %v3671_v61, %v3670_v60 }
0x26cb   :  { %v3665_v26 = vadd.f32 %v3664_v43, %v3663_v42  ;;  %v3673_v47 = vrot.slane %v3672_v46, 2 }
0x26cd   :  { %v3666_v49 = vrot.slane %v3665_v26, 1  ;;  %v3674_v4 = vadd.f32 %v3673_v47, %v3672_v46 }
0x26cf   :  { %v3667_v14 = vadd.f32 %v3666_v49, %v3665_v26  ;;  %v3675_v7 = vrot.slane %v3674_v4, 1 }
0x26d1   :  { %v3668_v13 = vmul.f32 0.125, %v3667_v14  ;;  %v3676_v25 = vadd.f32 %v3675_v7, %v3674_v4 }
0x26d3   :  { %v3677_v12 = vmul.f32 0.125, %v3676_v25  ;;  %v3678_v1 = vmul.f32 %v3668_v13, %v3668_v13 }
0x26d5   :  { %v3679_v53 = vsub.f32 %v3677_v12, %v3678_v1 }
0x26d7   :  { %v3680_v54 = vadd.f32 1e-05, %v3679_v53 }
0x26d9   :  { %5854 = vrsqrt.f32 %v3680_v54 }
0x26e3   :  { %v5855_v2 = vpop.eup %5854 }
0x26e4   :  { %v3682_v57 = vmul.f32 %v6509_v59, %v5855_v2 }
0x26e6   :  { %v3683_v0 = vmul.f32 %v3682_v57, %v3668_v13  ;;  %v3689_v62 = vrot.slane %v3682_v57, %v6009_v41 }
0x26e8   :  { %v3684_v63 = vsub.f32 %v6516_v29, %v3683_v0  ;;  %v3691_v27 = vmul.f32 %v3689_v62, %v3660_v34 }
0x26ea   :  { %v3696_v40 = vrot.slane %v3684_v63, %v6009_v41 }
0x26ec   :  { %v3698_v44 = vadd.f32 %v3696_v40, %v3691_v27 }
0x26ee   :  { %v3699_v8 = vmul.f32 0.01, %v3698_v44 }
0x26f0   :  { %v3700_v52 = vmax.f32 %v3698_v44, %v3699_v8 }
0x26f2   :  { %5443 = vmatmul.mubr.msk.f32.vlgmr.msra.gmra.mrb[30].mxu0 %vm68_vm1, %v3700_v52 }
0x26f3   :  { %5738 = vmatpush3.bf16.msra.mxu0 %v5970_v5  ;;  %5464 = vmatprep.mubr.msk.f32.mxu0 %vm5902_vm0, %v5903_v10 }
0x26f4   :  { %5739 = vmatprep.subr.bf16.mxu0 %v5901_v6 }
0x26f7   :  { %5741 = vmatpush3.bf16.msra.mxu0 %v5982_v9 }
0x26f8   :  { %5748 = vmatprep.subr.bf16.mxu0 %v5901_v6 }
0x27c5   :  { %v3770_v56 = vpop.f32.mrb[30].mxu0 }
0x27c6   :  { %v3774_v11 = vsel %vm68_vm1, %v3770_v56, 0.0  ;;  %v3782_v15 = vmul.f32 %v3770_v56, %v3770_v56  ;;  %v5444_v35 = vpop.f32.mrb[31].mxu0 }
0x27c7   :  { %v3775_v36 = vrot.slane %v3774_v11, 4 }
0x27c8   :  { %v3783_v50 = vsel %vm68_vm1, %v3782_v15, 0.0 }
0x27c9   :  { %v3776_v51 = vadd.f32 %v3775_v36, %v3774_v11  ;;  %v3784_v17 = vrot.slane %v3783_v50, 4 }
0x27cb   :  { %v3777_v38 = vrot.slane %v3776_v51, 2  ;;  %v3785_v20 = vadd.f32 %v3784_v17, %v3783_v50 }
0x27cd   :  { %v3778_v21 = vadd.f32 %v3777_v38, %v3776_v51  ;;  %v3786_v45 = vrot.slane %v3785_v20, 2 }
0x27cf   :  { %v3779_v22 = vrot.slane %v3778_v21, 1  ;;  %v3787_v23 = vadd.f32 %v3786_v45, %v3785_v20 }
0x27d1   :  { %v3780_v28 = vadd.f32 %v3779_v22, %v3778_v21  ;;  %v3788_v30 = vrot.slane %v3787_v23, 1 }
0x27d3   :  { %v3781_v31 = vmul.f32 0.125, %v3780_v28  ;;  %v3789_v32 = vadd.f32 %v3788_v30, %v3787_v23 }
0x27d5   :  { %v3790_v34 = vmul.f32 0.125, %v3789_v32  ;;  %v3791_v19 = vmul.f32 %v3781_v31, %v3781_v31 }
0x27d7   :  { %v3792_v37 = vsub.f32 %v3790_v34, %v3791_v19 }
0x27d9   :  { %v3793_v39 = vadd.f32 1e-05, %v3792_v37 }
0x27db   :  { %5856 = vrsqrt.f32 %v3793_v39 }
0x27e5   :  { %v5857_v60 = vpop.eup %5856 }
0x27e6   :  { %v3795_v42 = vmul.f32 %v6532_v18, %v5857_v60 }
0x27e8   :  { %v3796_v61 = vmul.f32 %v3795_v42, %v3781_v31  ;;  %v3802_v43 = vrot.slane %v3795_v42, %v6009_v41 }
0x27ea   :  { %v3797_v46 = vsub.f32 %v6539_v48, %v3796_v61  ;;  %v3804_v26 = vmul.f32 %v3802_v43, %v3770_v56 }
0x27ec   :  { %v3809_v47 = vrot.slane %v3797_v46, %v6009_v41 }
0x27ee   :  { %v3811_v49 = vadd.f32 %v3809_v47, %v3804_v26 }
0x27f0   :  { %v3812_v4 = vmul.f32 0.01, %v3811_v49 }
0x27f2   :  { %v3813_v14 = vmax.f32 %v3811_v49, %v3812_v4 }
0x27f4   :  { %5454 = vmatmul.mubr.msk.f32.vlgmr.msra.gmra.mrb[30].mxu1 %vm68_vm1, %v3813_v14 }
0x27f5   :  { %5744 = vmatpush3.bf16.msra.mxu1 %v6033_v55  ;;  %5475 = vmatprep.mubr.msk.f32.mxu1 %vm5902_vm0, %v5903_v10 }
0x27f6   :  { %5745 = vmatprep.subr.bf16.mxu1 %v5901_v6 }
0x27f9   :  { %5747 = vmatpush3.bf16.msra.mxu1 %v6043_v58 }
0x27fa   :  { %5754 = vmatprep.subr.bf16.mxu1 %v5901_v6 }
0x28c7   :  { %v3883_v7 = vpop.f32.mrb[30].mxu1 }
0x28c8   :  { %v3884_v13 = vadd.f32 %v6553_v33, %v3883_v7  ;;  %v5455_v25 = vpop.f32.mrb[31].mxu1 }
0x28ca   :  { %v6659_v12 = vadd.f32 %v3884_v13, %v6625_v24 }
0x28cc   :  { %3895 = vperm.xlu0 %5790, %v6659_v12   ;;  %3890 = vperm.xlu1 %5793, %v6659_v12  }
0x294b   :  { %v3896_v1 = vpop.permute.xlu0 %3895  ;;  %v3891_v53 = vpop.permute.xlu1 %3890 }
0x294c   :  { %v3898_v54 = vmul.f32 %v6495_v16, %v3896_v1  ;;  %v3893_v2 = vmul.f32 %v6501_v3, %v3891_v53 }
0x294e   :  { %v3899_v57 = vadd.f32 %v3898_v54, %v3893_v2 }
0x2950   :  { %v3900_v0 = vsel %vm68_vm1, %v3899_v57, 0.0  ;;  %v3908_v62 = vmul.f32 %v3899_v57, %v3899_v57 }
0x2951   :  { %v3901_v63 = vrot.slane %v3900_v0, 4 }
0x2952   :  { %v3909_v27 = vsel %vm68_vm1, %v3908_v62, 0.0 }
0x2953   :  { %v3902_v40 = vadd.f32 %v3901_v63, %v3900_v0  ;;  %v3910_v24 = vrot.slane %v3909_v27, 4 }
0x2955   :  { %v3903_v44 = vrot.slane %v3902_v40, 2  ;;  %v3911_v8 = vadd.f32 %v3910_v24, %v3909_v27 }
0x2957   :  { %v3904_v52 = vadd.f32 %v3903_v44, %v3902_v40  ;;  %v3912_v56 = vrot.slane %v3911_v8, 2 }
0x2959   :  { %v3905_v11 = vrot.slane %v3904_v52, 1  ;;  %v3913_v15 = vadd.f32 %v3912_v56, %v3911_v8 }
0x295b   :  { %v3906_v35 = vadd.f32 %v3905_v11, %v3904_v52  ;;  %v3914_v36 = vrot.slane %v3913_v15, 1 }
0x295d   :  { %v3907_v50 = vmul.f32 0.125, %v3906_v35  ;;  %v3915_v51 = vadd.f32 %v3914_v36, %v3913_v15 }
0x295f   :  { %v3916_v17 = vmul.f32 0.125, %v3915_v51  ;;  %v3917_v38 = vmul.f32 %v3907_v50, %v3907_v50 }
0x2961   :  { %v3918_v20 = vsub.f32 %v3916_v17, %v3917_v38 }
0x2963   :  { %v3919_v21 = vadd.f32 1e-05, %v3918_v20 }
0x2965   :  { %5858 = vrsqrt.f32 %v3919_v21 }
0x296f   :  { %v5859_v45 = vpop.eup %5858 }
0x2970   :  { %v3921_v22 = vmul.f32 %v6509_v59, %v5859_v45 }
0x2972   :  { %v3922_v23 = vmul.f32 %v3921_v22, %v3907_v50  ;;  %v3928_v28 = vrot.slane %v3921_v22, %v6009_v41 }
0x2974   :  { %v3923_v30 = vsub.f32 %v6516_v29, %v3922_v23  ;;  %v3930_v31 = vmul.f32 %v3928_v28, %v3899_v57 }
0x2976   :  { %v3935_v32 = vrot.slane %v3923_v30, %v6009_v41 }
0x2978   :  { %v3937_v34 = vadd.f32 %v3935_v32, %v3930_v31 }
0x297a   :  { %v3938_v19 = vmul.f32 0.01, %v3937_v34 }
0x297c   :  { %v3939_v37 = vmax.f32 %v3937_v34, %v3938_v19 }
0x297e   :  { %5465 = vmatmul.mubr.msk.f32.vlgmr.msra.gmra.mrb[32].mxu0 %vm68_vm1, %v3939_v37 }
0x297f   :  { %5750 = vmatpush3.bf16.msra.mxu0 %v5970_v5  ;;  %5486 = vmatprep.mubr.msk.f32.mxu0 %vm5902_vm0, %v5903_v10 }
0x2980   :  { %5751 = vmatprep.subr.bf16.mxu0 %v5901_v6 }
0x2983   :  { %5753 = vmatpush3.bf16.msra.mxu0 %v5982_v9 }
0x2984   :  { %5760 = vmatprep.subr.bf16.mxu0 %v5901_v6 }
0x2a51   :  { %v4009_v39 = vpop.f32.mrb[32].mxu0 }
0x2a52   :  { %v4013_v60 = vsel %vm68_vm1, %v4009_v39, 0.0  ;;  %v4021_v42 = vmul.f32 %v4009_v39, %v4009_v39  ;;  %v5466_v61 = vpop.f32.mrb[33].mxu0 }
0x2a53   :  { %v4014_v43 = vrot.slane %v4013_v60, 4 }
0x2a54   :  { %v4022_v46 = vsel %vm68_vm1, %v4021_v42, 0.0 }
0x2a55   :  { %v4015_v26 = vadd.f32 %v4014_v43, %v4013_v60  ;;  %v4023_v47 = vrot.slane %v4022_v46, 4 }
0x2a57   :  { %v4016_v49 = vrot.slane %v4015_v26, 2  ;;  %v4024_v4 = vadd.f32 %v4023_v47, %v4022_v46 }
0x2a59   :  { %v4017_v14 = vadd.f32 %v4016_v49, %v4015_v26  ;;  %v4025_v7 = vrot.slane %v4024_v4, 2 }
0x2a5b   :  { %v4018_v13 = vrot.slane %v4017_v14, 1  ;;  %v4026_v25 = vadd.f32 %v4025_v7, %v4024_v4 }
0x2a5d   :  { %v4019_v1 = vadd.f32 %v4018_v13, %v4017_v14  ;;  %v4027_v53 = vrot.slane %v4026_v25, 1 }
0x2a5f   :  { %v4020_v54 = vmul.f32 0.125, %v4019_v1  ;;  %v4028_v2 = vadd.f32 %v4027_v53, %v4026_v25 }
0x2a61   :  { %v4029_v57 = vmul.f32 0.125, %v4028_v2  ;;  %v4030_v0 = vmul.f32 %v4020_v54, %v4020_v54 }
0x2a63   :  { %v4031_v62 = vsub.f32 %v4029_v57, %v4030_v0 }
0x2a65   :  { %v4032_v63 = vadd.f32 1e-05, %v4031_v62 }
0x2a67   :  { %5860 = vrsqrt.f32 %v4032_v63 }
0x2a71   :  { %v5861_v27 = vpop.eup %5860 }
0x2a72   :  { %v4034_v40 = vmul.f32 %v6532_v18, %v5861_v27 }
0x2a74   :  { %v4035_v24 = vmul.f32 %v4034_v40, %v4020_v54  ;;  %v4041_v44 = vrot.slane %v4034_v40, %v6009_v41 }
0x2a76   :  { %v4036_v8 = vsub.f32 %v6539_v48, %v4035_v24  ;;  %v4043_v52 = vmul.f32 %v4041_v44, %v4009_v39 }
0x2a78   :  { %v4048_v56 = vrot.slane %v4036_v8, %v6009_v41 }
0x2a7a   :  { %v4050_v11 = vadd.f32 %v4048_v56, %v4043_v52 }
0x2a7c   :  { %v4051_v15 = vmul.f32 0.01, %v4050_v11 }
0x2a7e   :  { %v4052_v35 = vmax.f32 %v4050_v11, %v4051_v15 }
0x2a80   :  { %5476 = vmatmul.mubr.msk.f32.vlgmr.msra.gmra.mrb[32].mxu1 %vm68_vm1, %v4052_v35 }
0x2a81   :  { %5756 = vmatpush3.bf16.msra.mxu1 %v6033_v55  ;;  %5497 = vmatprep.mubr.msk.f32.mxu1 %vm5902_vm0, %v5903_v10 }
0x2a82   :  { %5757 = vmatprep.subr.bf16.mxu1 %v5901_v6 }
0x2a85   :  { %5759 = vmatpush3.bf16.msra.mxu1 %v6043_v58 }
0x2a86   :  { %5766 = vmatprep.subr.bf16.mxu1 %v5901_v6 }
0x2b53   :  { %v4122_v36 = vpop.f32.mrb[32].mxu1 }
0x2b54   :  { %v4123_v50 = vadd.f32 %v6553_v33, %v4122_v36  ;;  %v5477_v51 = vpop.f32.mrb[33].mxu1 }
0x2b56   :  { %v6693_v17 = vadd.f32 %v4123_v50, %v6659_v12 }
0x2b58   :  { %4134 = vperm.xlu0 %5790, %v6693_v17   ;;  %4129 = vperm.xlu1 %5793, %v6693_v17  }
0x2bd7   :  { %v4135_v38 = vpop.permute.xlu0 %4134  ;;  %v4130_v20 = vpop.permute.xlu1 %4129 }
0x2bd8   :  { %v4137_v21 = vmul.f32 %v6495_v16, %v4135_v38  ;;  %v4132_v45 = vmul.f32 %v6501_v3, %v4130_v20 }
0x2bda   :  { %v4138_v22 = vadd.f32 %v4137_v21, %v4132_v45 }
0x2bdc   :  { %v4139_v23 = vsel %vm68_vm1, %v4138_v22, 0.0  ;;  %v4147_v28 = vmul.f32 %v4138_v22, %v4138_v22 }
0x2bdd   :  { %v4140_v30 = vrot.slane %v4139_v23, 4 }
0x2bde   :  { %v4148_v31 = vsel %vm68_vm1, %v4147_v28, 0.0 }
0x2bdf   :  { %v4141_v32 = vadd.f32 %v4140_v30, %v4139_v23  ;;  %v4149_v12 = vrot.slane %v4148_v31, 4 }
0x2be1   :  { %v4142_v34 = vrot.slane %v4141_v32, 2  ;;  %v4150_v19 = vadd.f32 %v4149_v12, %v4148_v31 }
0x2be3   :  { %v4143_v37 = vadd.f32 %v4142_v34, %v4141_v32  ;;  %v4151_v39 = vrot.slane %v4150_v19, 2 }
0x2be5   :  { %v4144_v60 = vrot.slane %v4143_v37, 1  ;;  %v4152_v42 = vadd.f32 %v4151_v39, %v4150_v19 }
0x2be7   :  { %v4145_v61 = vadd.f32 %v4144_v60, %v4143_v37  ;;  %v4153_v43 = vrot.slane %v4152_v42, 1 }
0x2be9   :  { %v4146_v16 = vmul.f32 0.125, %v4145_v61  ;;  %v4154_v46 = vadd.f32 %v4153_v43, %v4152_v42  ;;  %v6734_v43 = vld [vmem:[%s6824_s1 + $0x1] ss:$0 sm:$0xff] }
0x2beb   :  { %v4155_v3 = vmul.f32 0.125, %v4154_v46  ;;  %v4156_v26 = vmul.f32 %v4146_v16, %v4146_v16 }
0x2bed   :  { %v4157_v47 = vsub.f32 %v4155_v3, %v4156_v26 }
0x2bef   :  { %v4158_v49 = vadd.f32 1e-05, %v4157_v47 }
0x2bf1   :  { %5862 = vrsqrt.f32 %v4158_v49 }
0x2bfb   :  { %v5863_v4 = vpop.eup %5862 }
0x2bfc   :  { %v4160_v14 = vmul.f32 %v6509_v59, %v5863_v4 }
0x2bfe   :  { %v4161_v7 = vmul.f32 %v4160_v14, %v4146_v16  ;;  %v4167_v13 = vrot.slane %v4160_v14, %v6009_v41 }
0x2c00   :  { %v4162_v25 = vsub.f32 %v6516_v29, %v4161_v7  ;;  %v4169_v1 = vmul.f32 %v4167_v13, %v4138_v22 }
0x2c02   :  { %v4174_v53 = vrot.slane %v4162_v25, %v6009_v41 }
0x2c04   :  { %v4176_v54 = vadd.f32 %v4174_v53, %v4169_v1 }
0x2c06   :  { %v4177_v2 = vmul.f32 0.01, %v4176_v54 }
0x2c08   :  { %v4178_v57 = vmax.f32 %v4176_v54, %v4177_v2 }
0x2c0a   :  { %5487 = vmatmul.mubr.msk.f32.vlgmr.msra.gmra.mrb[34].mxu0 %vm68_vm1, %v4178_v57 }
0x2c0b   :  { %5762 = vmatpush3.bf16.msra.mxu0 %v5970_v5  ;;  %5508 = vmatprep.mubr.msk.f32.mxu0 %vm5902_vm0, %v5903_v10 }
0x2c0c   :  { %5763 = vmatprep.subr.bf16.mxu0 %v5901_v6 }
0x2c0f   :  { %5765 = vmatpush3.bf16.msra.mxu0 %v5982_v9 }
0x2c10   :  { %5772 = vmatprep.subr.bf16.mxu0 %v5901_v6 }
0x2cdd   :  { %v4248_v59 = vpop.f32.mrb[34].mxu0 }
0x2cde   :  { %v4252_v29 = vsel %vm68_vm1, %v4248_v59, 0.0  ;;  %v4260_v0 = vmul.f32 %v4248_v59, %v4248_v59  ;;  %v5488_v62 = vpop.f32.mrb[35].mxu0 }
0x2cdf   :  { %v4253_v63 = vrot.slane %v4252_v29, 4 }
0x2ce0   :  { %v4261_v27 = vsel %vm68_vm1, %v4260_v0, 0.0 }
0x2ce1   :  { %v4254_v40 = vadd.f32 %v4253_v63, %v4252_v29  ;;  %v4262_v24 = vrot.slane %v4261_v27, 4 }
0x2ce3   :  { %v4255_v44 = vrot.slane %v4254_v40, 2  ;;  %v4263_v8 = vadd.f32 %v4262_v24, %v4261_v27  ;;  %v6748_v24 = vld [vmem:[%s6825_s2] sm:$0x1] }
0x2ce5   :  { %v4256_v52 = vadd.f32 %v4255_v44, %v4254_v40  ;;  %v4264_v56 = vrot.slane %v4263_v8, 2 }
0x2ce7   :  { %v4257_v11 = vrot.slane %v4256_v52, 1  ;;  %v4265_v15 = vadd.f32 %v4264_v56, %v4263_v8  ;;  %v6755_v56 = vld [vmem:[%s6826_s3] sm:$0x1] }
0x2ce9   :  { %v4258_v35 = vadd.f32 %v4257_v11, %v4256_v52  ;;  %v4266_v36 = vrot.slane %v4265_v15, 1 }
0x2ceb   :  { %v4259_v50 = vmul.f32 0.125, %v4258_v35  ;;  %v4267_v51 = vadd.f32 %v4266_v36, %v4265_v15 }
0x2ced   :  { %v4268_v38 = vmul.f32 0.125, %v4267_v51  ;;  %v4269_v20 = vmul.f32 %v4259_v50, %v4259_v50 }
0x2cef   :  { %v4270_v21 = vsub.f32 %v4268_v38, %v4269_v20 }
0x2cf1   :  { %v4271_v45 = vadd.f32 1e-05, %v4270_v21 }
0x2cf3   :  { %5864 = vrsqrt.f32 %v4271_v45 }
0x2cfd   :  { %v5865_v22 = vpop.eup %5864 }
0x2cfe   :  { %v4273_v23 = vmul.f32 %v6532_v18, %v5865_v22 }
0x2d00   :  { %v4274_v28 = vmul.f32 %v4273_v23, %v4259_v50  ;;  %v4280_v30 = vrot.slane %v4273_v23, %v6009_v41 }
0x2d02   :  { %v4275_v31 = vsub.f32 %v6539_v48, %v4274_v28  ;;  %v4282_v32 = vmul.f32 %v4280_v30, %v4248_v59 }
0x2d04   :  { %v4287_v12 = vrot.slane %v4275_v31, %v6009_v41 }
0x2d06   :  { %v4289_v34 = vadd.f32 %v4287_v12, %v4282_v32 }
0x2d08   :  { %v4290_v19 = vmul.f32 0.01, %v4289_v34 }
0x2d0a   :  { %v4291_v37 = vmax.f32 %v4289_v34, %v4290_v19 }
0x2d0c   :  { %5498 = vmatmul.mubr.msk.f32.vlgmr.msra.gmra.mrb[34].mxu1 %vm68_vm1, %v4291_v37 }
0x2d0d   :  { %5768 = vmatpush3.bf16.msra.mxu1 %v6033_v55  ;;  %5519 = vmatprep.mubr.msk.f32.mxu1 %vm5902_vm0, %v5903_v10 }
0x2d0e   :  { %5769 = vmatprep.subr.bf16.mxu1 %v5901_v6 }
0x2d11   :  { %5771 = vmatpush3.bf16.msra.mxu1 %v6043_v58 }
0x2d12   :  { %5778 = vmatprep.subr.bf16.mxu1 %v5901_v6 }
0x2ddf   :  { %v4361_v18 = vpop.f32.mrb[34].mxu1 }
0x2de0   :  { %v4362_v48 = vadd.f32 %v6553_v33, %v4361_v18  ;;  %v5499_v39 = vpop.f32.mrb[35].mxu1  ;;  %v6740_v33 = vld [vmem:[%s6824_s1] ss:$0 sm:$0xff] }
0x2de2   :  { %v6727_v60 = vadd.f32 %v4362_v48, %v6693_v17 }
0x2de4   :  { %4373 = vperm.xlu0 %5790, %v6727_v60   ;;  %4368 = vperm.xlu1 %5793, %v6727_v60  }
0x2e63   :  { %v4374_v42 = vpop.permute.xlu0 %4373  ;;  %v4369_v61 = vpop.permute.xlu1 %4368 }
0x2e64   :  { %v4376_v16 = vmul.f32 %v6734_v43, %v4374_v42  ;;  %v4371_v17 = vmul.f32 %v6740_v33, %v4369_v61 }
0x2e66   :  { %v4377_v46 = vadd.f32 %v4376_v16, %v4371_v17 }
0x2e68   :  { %v4378_v3 = vsel %vm68_vm1, %v4377_v46, 0.0  ;;  %v4386_v26 = vmul.f32 %v4377_v46, %v4377_v46 }
0x2e69   :  { %v4379_v47 = vrot.slane %v4378_v3, 4 }
0x2e6a   :  { %v4387_v49 = vsel %vm68_vm1, %v4386_v26, 0.0 }
0x2e6b   :  { %v4380_v4 = vadd.f32 %v4379_v47, %v4378_v3  ;;  %v4388_v14 = vrot.slane %v4387_v49, 4 }
0x2e6d   :  { %v4381_v7 = vrot.slane %v4380_v4, 2  ;;  %v4389_v13 = vadd.f32 %v4388_v14, %v4387_v49  ;;  %v6777_v49 = vld [vmem:[%s6829_s6] sm:$0x1] }
0x2e6f   :  { %v4382_v25 = vadd.f32 %v4381_v7, %v4380_v4  ;;  %v4390_v1 = vrot.slane %v4389_v13, 2 }
0x2e71   :  { %v4383_v53 = vrot.slane %v4382_v25, 1  ;;  %v4391_v54 = vadd.f32 %v4390_v1, %v4389_v13 }
0x2e73   :  { %v4384_v2 = vadd.f32 %v4383_v53, %v4382_v25  ;;  %v4392_v57 = vrot.slane %v4391_v54, 1 }
0x2e75   :  { %v4385_v59 = vmul.f32 0.125, %v4384_v2  ;;  %v4393_v29 = vadd.f32 %v4392_v57, %v4391_v54  ;;  %v6790_v54 = vld [vmem:[%s6830_s8] ss:$0 sm:$0xff] }
0x2e77   :  { %v4394_v0 = vmul.f32 0.125, %v4393_v29  ;;  %v4395_v62 = vmul.f32 %v4385_v59, %v4385_v59 }
0x2e79   :  { %v4396_v63 = vsub.f32 %v4394_v0, %v4395_v62 }
0x2e7b   :  { %v4397_v27 = vadd.f32 1e-05, %v4396_v63 }
0x2e7d   :  { %5866 = vrsqrt.f32 %v4397_v27 }
0x2e87   :  { %v5867_v40 = vpop.eup %5866 }
0x2e88   :  { %v4399_v44 = vmul.f32 %v6748_v24, %v5867_v40 }
0x2e8a   :  { %v4400_v8 = vmul.f32 %v4399_v44, %v4385_v59  ;;  %v4406_v52 = vrot.slane %v4399_v44, %v6009_v41 }
0x2e8c   :  { %v4401_v11 = vsub.f32 %v6755_v56, %v4400_v8  ;;  %v4408_v15 = vmul.f32 %v4406_v52, %v4377_v46  ;;  %v6770_v46 = vld [vmem:[%s6828_s5] sm:$0x1] }
0x2e8e   :  { %v4413_v35 = vrot.slane %v4401_v11, %v6009_v41 }
0x2e90   :  { %v4415_v36 = vadd.f32 %v4413_v35, %v4408_v15 }
0x2e92   :  { %v4416_v50 = vmul.f32 0.01, %v4415_v36 }
0x2e94   :  { %v4417_v51 = vmax.f32 %v4415_v36, %v4416_v50 }
0x2e96   :  { %5509 = vmatmul.mubr.msk.f32.vlgmr.msra.gmra.mrb[36].mxu0 %vm68_vm1, %v4417_v51 }
0x2e97   :  { %5774 = vmatpush3.bf16.msra.mxu0 %v5970_v5  ;;  %5530 = vmatprep.mubr.msk.f32.mxu0 %vm5902_vm0, %v5903_v10 }
0x2e98   :  { %5775 = vmatprep.subr.bf16.mxu0 %v5901_v6 }
0x2e9b   :  { %5777 = vmatpush3.bf16.msra.mxu0 %v5982_v9 }
0x2f69   :  { %v4487_v38 = vpop.f32.mrb[36].mxu0 }
0x2f6a   :  { %v4491_v20 = vsel %vm68_vm1, %v4487_v38, 0.0  ;;  %v4499_v21 = vmul.f32 %v4487_v38, %v4487_v38  ;;  %v5510_v45 = vpop.f32.mrb[37].mxu0 }
0x2f6b   :  { %v4492_v22 = vrot.slane %v4491_v20, 4 }
0x2f6c   :  { %v4500_v23 = vsel %vm68_vm1, %v4499_v21, 0.0 }
0x2f6d   :  { %v4493_v28 = vadd.f32 %v4492_v22, %v4491_v20  ;;  %v4501_v30 = vrot.slane %v4500_v23, 4 }
0x2f6f   :  { %v4494_v31 = vrot.slane %v4493_v28, 2  ;;  %v4502_v32 = vadd.f32 %v4501_v30, %v4500_v23 }
0x2f71   :  { %v4495_v5 = vadd.f32 %v4494_v31, %v4493_v28  ;;  %v4503_v12 = vrot.slane %v4502_v32, 2 }
0x2f73   :  { %v4496_v34 = vrot.slane %v4495_v5, 1  ;;  %v4504_v19 = vadd.f32 %v4503_v12, %v4502_v32 }
0x2f75   :  { %v4497_v37 = vadd.f32 %v4496_v34, %v4495_v5  ;;  %v4505_v18 = vrot.slane %v4504_v19, 1 }
0x2f77   :  { %v4498_v48 = vmul.f32 0.125, %v4497_v37  ;;  %v4506_v9 = vadd.f32 %v4505_v18, %v4504_v19 }
0x2f79   :  { %v4507_v39 = vmul.f32 0.125, %v4506_v9  ;;  %v4508_v42 = vmul.f32 %v4498_v48, %v4498_v48 }
0x2f7b   :  { %v4509_v61 = vsub.f32 %v4507_v39, %v4508_v42 }
0x2f7d   :  { %v4510_v16 = vadd.f32 1e-05, %v4509_v61 }
0x2f7f   :  { %5868 = vrsqrt.f32 %v4510_v16 }
0x2f89   :  { %v5869_v17 = vpop.eup %5868 }
0x2f8a   :  { %v4512_v3 = vmul.f32 %v6770_v46, %v5869_v17 }
0x2f8c   :  { %v4513_v26 = vmul.f32 %v4512_v3, %v4498_v48  ;;  %v4519_v47 = vrot.slane %v4512_v3, %v6009_v41 }
0x2f8e   :  { %v4514_v4 = vsub.f32 %v6777_v49, %v4513_v26  ;;  %v4521_v14 = vmul.f32 %v4519_v47, %v4487_v38 }
0x2f90   :  { %v4526_v7 = vrot.slane %v4514_v4, %v6009_v41 }
0x2f92   :  { %v4528_v13 = vadd.f32 %v4526_v7, %v4521_v14 }
0x2f94   :  { %v4529_v25 = vmul.f32 0.01, %v4528_v13 }
0x2f96   :  { %v4530_v1 = vmax.f32 %v4528_v13, %v4529_v25 }
0x2f98   :  { %5520 = vmatmul.mubr.msk.f32.vlgmr.msra.gmra.mrb[36].mxu1 %vm68_vm1, %v4530_v1 }
0x2f99   :  { %5780 = vmatpush3.bf16.msra.mxu1 %v6033_v55  ;;  %5541 = vmatprep.mubr.msk.f32.mxu1 %vm5902_vm0, %v5903_v10 }
0x2f9a   :  { %5781 = vmatprep.subr.bf16.mxu1 %v5901_v6 }
0x2f9d   :  { %5783 = vmatpush3.bf16.msra.mxu1 %v6043_v58 }
0x306b   :  { %v4600_v53 = vpop.f32.mrb[36].mxu1 }
0x306c   :  { %v4601_v2 = vadd.f32 %v6790_v54, %v4600_v53  ;;  %v5521_v57 = vpop.f32.mrb[37].mxu1 }
0x306e   :  { %v6794_v59 = vadd.f32 %v4601_v2, %v6727_v60 }
0x3070   :  { %4612 = vperm.xlu0 %5790, %v6794_v59   ;;  %4607 = vperm.xlu1 %5793, %v6794_v59  }
0x30ef   :  { %v4613_v10 = vpop.permute.xlu0 %4612  ;;  %v4608_v6 = vpop.permute.xlu1 %4607 }
0x30f0   :  { %v4615_v55 = vmul.f32 %v6734_v43, %v4613_v10  ;;  %v4610_v58 = vmul.f32 %v6740_v33, %v4608_v6 }
0x30f2   :  { %v4616_v29 = vadd.f32 %v4615_v55, %v4610_v58 }
0x30f4   :  { %v4617_v0 = vsel %vm68_vm1, %v4616_v29, 0.0  ;;  %v4625_v62 = vmul.f32 %v4616_v29, %v4616_v29 }
0x30f5   :  { %v4618_v63 = vrot.slane %v4617_v0, 4 }
0x30f6   :  { %v4626_v27 = vsel %vm68_vm1, %v4625_v62, 0.0 }
0x30f7   :  { %v4619_v40 = vadd.f32 %v4618_v63, %v4617_v0  ;;  %v4627_v60 = vrot.slane %v4626_v27, 4 }
0x30f9   :  { %v4620_v44 = vrot.slane %v4619_v40, 2  ;;  %v4628_v8 = vadd.f32 %v4627_v60, %v4626_v27 }
0x30fb   :  { %v4621_v52 = vadd.f32 %v4620_v44, %v4619_v40  ;;  %v4629_v11 = vrot.slane %v4628_v8, 2 }
0x30fd   :  { %v4622_v15 = vrot.slane %v4621_v52, 1  ;;  %v4630_v35 = vadd.f32 %v4629_v11, %v4628_v8 }
0x30ff   :  { %v4623_v36 = vadd.f32 %v4622_v15, %v4621_v52  ;;  %v4631_v50 = vrot.slane %v4630_v35, 1 }
0x3101   :  { %v4624_v43 = vmul.f32 0.125, %v4623_v36  ;;  %v4632_v51 = vadd.f32 %v4631_v50, %v4630_v35 }
0x3103   :  { %v4633_v33 = vmul.f32 0.125, %v4632_v51  ;;  %v4634_v38 = vmul.f32 %v4624_v43, %v4624_v43 }
0x3105   :  { %v4635_v20 = vsub.f32 %v4633_v33, %v4634_v38 }
0x3107   :  { %v4636_v21 = vadd.f32 1e-05, %v4635_v20 }
0x3109   :  { %5870 = vrsqrt.f32 %v4636_v21 }
0x3113   :  { %v5871_v45 = vpop.eup %5870 }
0x3114   :  { %v4638_v22 = vmul.f32 %v6748_v24, %v5871_v45 }
0x3116   :  { %v4639_v23 = vmul.f32 %v4638_v22, %v4624_v43  ;;  %v4645_v28 = vrot.slane %v4638_v22, %v6009_v41 }
0x3118   :  { %v4640_v30 = vsub.f32 %v6755_v56, %v4639_v23  ;;  %v4647_v31 = vmul.f32 %v4645_v28, %v4616_v29 }
0x311a   :  { %v4652_v32 = vrot.slane %v4640_v30, %v6009_v41 }
0x311c   :  { %v4654_v5 = vadd.f32 %v4652_v32, %v4647_v31 }
0x311e   :  { %v4655_v12 = vmul.f32 0.01, %v4654_v5 }
0x3120   :  { %v4656_v34 = vmax.f32 %v4654_v5, %v4655_v12 }
0x3122   :  { %5531 = vmatmul.mubr.msk.f32.vlgmr.msra.gmra.mrb[38].mxu0 %vm68_vm1, %v4656_v34 }
0x31f5   :  { %v4726_v19 = vpop.f32.mrb[38].mxu0 }
0x31f6   :  { %v4730_v37 = vsel %vm68_vm1, %v4726_v19, 0.0  ;;  %v4738_v18 = vmul.f32 %v4726_v19, %v4726_v19  ;;  %v5532_v48 = vpop.f32.mrb[39].mxu0 }
0x31f7   :  { %v4731_v9 = vrot.slane %v4730_v37, 4 }
0x31f8   :  { %v4739_v24 = vsel %vm68_vm1, %v4738_v18, 0.0 }
0x31f9   :  { %v4732_v39 = vadd.f32 %v4731_v9, %v4730_v37  ;;  %v4740_v42 = vrot.slane %v4739_v24, 4 }
0x31fb   :  { %v4733_v61 = vrot.slane %v4732_v39, 2  ;;  %v4741_v56 = vadd.f32 %v4740_v42, %v4739_v24 }
0x31fd   :  { %v4734_v16 = vadd.f32 %v4733_v61, %v4732_v39  ;;  %v4742_v17 = vrot.slane %v4741_v56, 2 }
0x31ff   :  { %v4735_v3 = vrot.slane %v4734_v16, 1  ;;  %v4743_v26 = vadd.f32 %v4742_v17, %v4741_v56 }
0x3201   :  { %v4736_v47 = vadd.f32 %v4735_v3, %v4734_v16  ;;  %v4744_v4 = vrot.slane %v4743_v26, 1 }
0x3203   :  { %v4737_v14 = vmul.f32 0.125, %v4736_v47  ;;  %v4745_v7 = vadd.f32 %v4744_v4, %v4743_v26 }
0x3205   :  { %v4746_v13 = vmul.f32 0.125, %v4745_v7  ;;  %v4747_v25 = vmul.f32 %v4737_v14, %v4737_v14 }
0x3207   :  { %v4748_v1 = vsub.f32 %v4746_v13, %v4747_v25 }
0x3209   :  { %v4749_v53 = vadd.f32 1e-05, %v4748_v1 }
0x320b   :  { %5872 = vrsqrt.f32 %v4749_v53 }
0x3215   :  { %v5873_v2 = vpop.eup %5872 }
0x3216   :  { %v4751_v57 = vmul.f32 %v6770_v46, %v5873_v2 }
0x3218   :  { %v4752_v10 = vmul.f32 %v4751_v57, %v4737_v14  ;;  %v4758_v6 = vrot.slane %v4751_v57, %v6009_v41 }
0x321a   :  { %v4753_v55 = vsub.f32 %v6777_v49, %v4752_v10  ;;  %v4760_v58 = vmul.f32 %v4758_v6, %v4726_v19 }
0x321c   :  { %v4765_v29 = vrot.slane %v4753_v55, %v6009_v41 }
0x321e   :  { %v4767_v0 = vadd.f32 %v4765_v29, %v4760_v58 }
0x3220   :  { %v4768_v62 = vmul.f32 0.01, %v4767_v0 }
0x3222   :  { %v4769_v63 = vmax.f32 %v4767_v0, %v4768_v62 }
0x3224   :  { %5542 = vmatmul.mubr.msk.f32.vlgmr.msra.gmra.mrb[38].mxu1 %vm68_vm1, %v4769_v63 }
0x32f7   :  { %v4839_v27 = vpop.f32.mrb[38].mxu1 }
0x32f8   :  { %v4840_v40 = vadd.f32 %v6790_v54, %v4839_v27  ;;  %v5543_v60 = vpop.f32.mrb[39].mxu1 }
0x32fa   :  { %v4843_v46 = vadd.f32 %v4840_v40, %v6794_v59 }
0x32fc   :  { %v4845_v44 = vsel %vm4844_vm2, %v4843_v46, -inf }
0x32fd   :  { %4846 = vmax.xlane.f32.xlu1 %v4845_v44 }
0x338a   :  { %v4847_v8 = vpop.xlane.xlu1 %4846 }
0x338b   :  { %v4848_v49 = vsub.f32 %v4843_v46, %v4847_v8 }
0x338d   :  { %v4849_v52 = vmul.f32 1.442695, %v4848_v49 }
0x338f   :  { %5874 = vpow2.f32 %v4849_v52 }
0x3399   :  { %v5875_v41 = vpop.eup %5874 }
0x339a   :  { %v4851_v11 = vsel %vm4844_vm2, %v5875_v41, 0.0 }
0x339b   :  { %4852 = vadd.xlane.f32.xlu0 %v4851_v11 }
0x3428   :  { %v4853_v15 = vpop.xlane.xlu0 %4852 }
0x3429   :  { %5876 = vrcp.f32 %v4853_v15 }
0x3433   :  { %v5877_v35 = vpop.eup %5876 }
0x3434   :  { %v4855_v36 = vmul.f32 %v5877_v35, %v5875_v41 }
0x3436   :  { %4856 = vst.msk [vmem:[%s6831_s9] sm:$0xff] %vm4844_vm2, %v4855_v36 }

</bundles_post_ra>
